<compile_context>
chip_gen: v7x
topology: tpu7x:2x2x1
jax: 0.10.0
libtpu: 0.0.40
codegen_flags: <defaults>
</compile_context>

<pallas_src>
import functools
import numpy as np
import jax
import jax.numpy as jnp
from jax import lax
from jax.experimental import pallas as pl
from jax.experimental.pallas import tpu as pltpu

N_FEATS = 16
_SUB, _LANE = 8, 128


def _round_up(x, m):
    return ((x + m - 1) // m) * m


def _recip(x):
    """EUP reciprocal + one Newton step: ~fp32 accurate, avoids VALU divide."""
    r = pl.reciprocal(x, approx=True)
    return r * (2.0 - x * r)


def _jacobi_rotation(A, V, p, q, one, zero):
    """One vectorized Jacobi rotation zeroing A[p][q] for a batch of 3x3
    symmetric matrices stored as 3x3 nested lists of [8, CL] arrays."""
    app, aqq, apq = A[p][p], A[q][q], A[p][q]
    # relative (scale-aware) convergence / zero-division guard
    small = jnp.abs(apq) <= 1e-30 + 1e-12 * (jnp.abs(app) + jnp.abs(aqq))
    apq_safe = jnp.where(small, one, apq)
    tau = (aqq - app) * 0.5 * _recip(apq_safe)
    sgn = jnp.where(tau >= 0.0, one, -one)
    t = sgn * _recip(jnp.abs(tau) + jnp.sqrt(1.0 + tau * tau))
    t = jnp.where(small, zero, t)
    c = lax.rsqrt(1.0 + t * t)
    s = t * c

    r = 3 - p - q
    arp, arq = A[r][p], A[r][q]

    nA = [[A[i][j] for j in range(3)] for i in range(3)]
    nA[p][p] = app - t * apq
    nA[q][q] = aqq + t * apq
    nA[p][q] = zero
    nA[q][p] = zero
    new_rp = c * arp - s * arq
    new_rq = s * arp + c * arq
    nA[r][p] = new_rp
    nA[p][r] = new_rp
    nA[r][q] = new_rq
    nA[q][r] = new_rq

    nV = [[V[i][j] for j in range(3)] for i in range(3)]
    for i in range(3):
        vip, viq = V[i][p], V[i][q]
        nV[i][p] = c * vip - s * viq
        nV[i][q] = s * vip + c * viq
    return nA, nV


def _geo_kernel(lens_ref, pts_ref, out_ref, *, delta, n_sweeps):
    # pts_ref block: [3, P, 8, CL]  (x/y/z planes, points on the leading axis,
    #                               clusters folded onto sublanes x lanes)
    # lens_ref block: [8, CL] int32 cluster sizes.
    P = pts_ref.shape[1]
    R, CL = lens_ref.shape

    n_i = lens_ref[...]                                  # [8, CL] int32
    n = n_i.astype(jnp.float32)
    # in-kernel point-validity mask (replaces the old fp32 mask plane)
    m = (lax.broadcasted_iota(jnp.int32, (P, R, CL), 0) < n_i).astype(jnp.float32)

    x = pts_ref[0]                                       # [P, 8, CL]
    y = pts_ref[1]
    z = pts_ref[2]

    inv_n = _recip(jnp.maximum(n, 1.0))
    # centroids: reductions over the leading P axis -> dense [8, CL]
    cx = jnp.sum(x * m, axis=0) * inv_n
    cy = jnp.sum(y * m, axis=0) * inv_n
    cz = jnp.sum(z * m, axis=0) * inv_n

    # centered & masked coordinates
    dx = (x - cx) * m
    dy = (y - cy) * m
    dz = (z - cz) * m

    # 3x3 scatter matrix A = x^T x per cluster
    a00 = jnp.sum(dx * dx, axis=0)
    a01 = jnp.sum(dx * dy, axis=0)
    a02 = jnp.sum(dx * dz, axis=0)
    a11 = jnp.sum(dy * dy, axis=0)
    a12 = jnp.sum(dy * dz, axis=0)
    a22 = jnp.sum(dz * dz, axis=0)

    one = jnp.ones_like(a00)
    zero = jnp.zeros_like(a00)

    A = [[a00, a01, a02], [a01, a11, a12], [a02, a12, a22]]
    V = [[one, zero, zero], [zero, one, zero], [zero, zero, one]]

    # cyclic Jacobi eigendecomposition, vectorized over clusters
    for _ in range(n_sweeps):
        for (p, q) in ((0, 1), (0, 2), (1, 2)):
            A, V = _jacobi_rotation(A, V, p, q, one, zero)

    w0, w1, w2 = A[0][0], A[1][1], A[2][2]
    c0 = [V[0][0], V[1][0], V[2][0]]
    c1 = [V[0][1], V[1][1], V[2][1]]
    c2 = [V[0][2], V[1][2], V[2][2]]

    # sort eigenvalues (and eigenvector columns) ascending: 3-element network
    def cswap(wA, colA, wB, colB):
        swap = wA > wB
        nwA = jnp.where(swap, wB, wA)
        nwB = jnp.where(swap, wA, wB)
        ncolA = [jnp.where(swap, b, a) for a, b in zip(colA, colB)]
        ncolB = [jnp.where(swap, a, b) for a, b in zip(colA, colB)]
        return nwA, ncolA, nwB, ncolB

    w0, c0, w1, c1 = cswap(w0, c0, w1, c1)
    w1, c1, w2, c2 = cswap(w1, c1, w2, c2)
    w0, c0, w1, c1 = cswap(w0, c0, w1, c1)

    # dirwt = 0 if w2 == 0 else 1 - w1 / w2
    w2_safe = jnp.where(w2 == 0.0, one, w2)
    dirwt = jnp.where(w2 == 0.0, zero, 1.0 - w1 * _recip(w2_safe))

    # w = (w + delta); w = w / w[2]
    wd2 = w2 + delta
    wd2_safe = jnp.where(wd2 == 0.0, one, wd2)
    inv_wd2 = _recip(wd2_safe)
    nw0 = (w0 + delta) * inv_wd2
    nw1 = (w1 + delta) * inv_wd2
    nw2 = (w2 + delta) * inv_wd2

    # B = (1-delta) * V diag(w) V^T + delta * I ;  small clusters: B = delta*I
    small_clust = n < 2.0
    B = [[None] * 3 for _ in range(3)]
    for i in range(3):
        for j in range(i, 3):
            bij = (1.0 - delta) * (nw0 * c0[i] * c0[j]
                                   + nw1 * c1[i] * c1[j]
                                   + nw2 * c2[i] * c2[j])
            eye = delta if i == j else 0.0
            bij = jnp.where(small_clust, eye * one, bij + eye)
            B[i][j] = bij
            B[j][i] = bij

    # principal direction v0 = v[:, 2], sign fixed by sc = <x0, ||xp0||>,
    # scaled by dirwt
    v0x, v0y, v0z = c2[0], c2[1], c2[2]
    x0 = dx * v0x + dy * v0y + dz * v0z                  # [P, 8, CL]
    xpx = dx - x0 * v0x
    xpy = dy - x0 * v0y
    xpz = dz - x0 * v0z
    np0 = jnp.sqrt(xpx * xpx + xpy * xpy + xpz * xpz)
    sc = jnp.sum(x0 * np0, axis=0)                       # [8, CL]
    flip = jnp.where(sc < 0.0, -one, one)
    v0x = jnp.where(small_clust, zero, dirwt * flip * v0x)
    v0y = jnp.where(small_clust, zero, dirwt * flip * v0y)
    v0z = jnp.where(small_clust, zero, dirwt * flip * v0z)

    # direct lane-dense row stores (no 16-way concat / relayout)
    rows = [cx, cy, cz,
            B[0][0], B[0][1], B[0][2],
            B[1][0], B[1][1], B[1][2],
            B[2][0], B[2][1], B[2][2],
            v0x, v0y, v0z, n]
    for k, v in enumerate(rows):
        out_ref[k, :, :] = v


def clust_geo_node_encoder(data, clusts, delta=0.0, max_points=64,
                           c_tile=1024, n_sweeps=4):
    """Pallas implementation of ClustGeoNodeEncoder.forward (default config)."""
    data = jnp.asarray(data, dtype=jnp.float32)
    voxels = data[:, :3]
    C = len(clusts)
    assert C >= 1, "need at least one cluster"

    unit = _SUB * _LANE                       # 1024 clusters per minimal tile

    cluster_idx = [np.asarray(c, dtype=np.int32).reshape(-1) for c in clusts]
    max_len = max(int(c.shape[0]) for c in cluster_idx)
    assert max_len >= 1, "empty cluster"
    # max_points is a stable lower bound for compile-shape reuse; large
    # clusters grow P instead of failing.
    P = _round_up(max(int(max_points), max_len, 1), 8)

    # cluster-axis tiling: tiles are multiples of 1024 clusters (8 sublanes x
    # 128 lanes once folded); keep >= 2 grid steps when possible so v7x can
    # shard tiles across its two TensorCores.
    c_req = max(unit, (int(c_tile) // unit) * unit)
    c_min = _round_up(C, unit)
    t = min(c_req, c_min)
    if c_min >= 2 * unit and t >= c_min:
        t = max(unit, ((c_min // 2) // unit) * unit)
    C_pad = _round_up(C, t)
    CL_total = C_pad // _SUB
    CL_tile = t // _SUB
    grid = (CL_total // CL_tile,)

    # host only builds small int32 tables; the float gather happens on device
    idx = np.zeros((C_pad, P), np.int32)
    lens = np.zeros((C_pad,), np.int32)
    for i, c in enumerate(cluster_idx):
        k = c.shape[0]
        idx[i, :k] = c
        lens[i] = k

    g = jnp.take(voxels, jnp.asarray(idx), axis=0)                # [C_pad,P,3]
    pts = jnp.transpose(g.reshape(_SUB, CL_total, P, 3), (3, 2, 0, 1))
    lens_d = jnp.asarray(lens).reshape(_SUB, CL_total)

    # size the VMEM limit against the double-buffered working set
    blk_bytes = 4 * (3 * P * t + t + N_FEATS * t)
    vmem_limit = int(min(max(4 * blk_bytes, 32 << 20), 64 << 20))

    kernel = functools.partial(_geo_kernel, delta=float(delta),
                               n_sweeps=int(n_sweeps))
    out = pl.pallas_call(
        kernel,
        out_shape=jax.ShapeDtypeStruct((N_FEATS, _SUB, CL_total), jnp.float32),
        grid=grid,
        in_specs=[
            pl.BlockSpec((_SUB, CL_tile), lambda j: (0, j)),
            pl.BlockSpec((3, P, _SUB, CL_tile), lambda j: (0, 0, 0, j)),
        ],
        out_specs=pl.BlockSpec((N_FEATS, _SUB, CL_tile), lambda j: (0, 0, j)),
        compiler_params=pltpu.CompilerParams(
            dimension_semantics=("parallel",),
            vmem_limit_bytes=vmem_limit),
    )(lens_d, pts)

    # unfold lane-dense [16, 8, CL_total] slab to the module's [C, 16] layout
    feats = jnp.transpose(out, (1, 2, 0)).reshape(C_pad, N_FEATS)[:C]
    return feats


def _reference(data, clusts, delta=0.0):
    """Pure-numpy float64 replica of the torch forward (default config)."""
    voxels = np.asarray(data[:, :3], dtype=np.float64)
    feats = []
    for c in clusts:
        x = voxels[np.asarray(c, dtype=np.int64)]
        size = np.array([len(c)], dtype=np.float64)
        if len(c) < 2:
            feats.append(np.concatenate((x.flatten(), (delta * np.eye(3)).flatten(),
                                         np.zeros(3), size)))
            continue
        center = x.mean(axis=0)
        x = x - center
        A = x.T @ x
        w, v = np.linalg.eigh(A)                 # ascending, like torch.eig + argsort
        dirwt = 0.0 if w[2] == 0 else 1.0 - w[1] / w[2]
        w = w + delta
        w = w / w[2]
        B = (1.0 - delta) * v @ np.diag(w) @ v.T + delta * np.eye(3)
        v0 = v[:, 2]
        x0 = x @ v0
        xp0 = x - np.outer(x0, v0)
        np0 = np.linalg.norm(xp0, axis=1)
        if np.dot(x0, np0) < 0:
            v0 = -v0
        v0 = dirwt * v0
        feats.append(np.concatenate((center, B.flatten(), v0, size)))
    return np.stack(feats, axis=0)


if __name__ == "__main__":
    key = jax.random.PRNGKey(0)
    kx, kv, ks = jax.random.split(key, 3)
    N = 32
    voxels = jax.random.normal(kx, (N, 3), dtype=jnp.float32) * 5.0
    batch_col = jnp.zeros((N, 1), dtype=jnp.float32)
    values = jax.random.uniform(kv, (N, 1), dtype=jnp.float32)
    sem = jax.random.randint(ks, (N, 1), 0, 5).astype(jnp.float32)
    data = jnp.concatenate([voxels, batch_col, values, sem], axis=1)   # [N, 6]

    # clusters of voxel indices (one singleton to exercise the len<2 branch)
    clusts = [np.arange(0, 12), np.arange(12, 25), np.arange(25, 31), np.array([31])]

    out = clust_geo_node_encoder(data, clusts, delta=0.0, max_points=16)
    out = jax.block_until_ready(out)

    ref = _reference(np.asarray(data), clusts, delta=0.0)
    assert out.shape == (len(clusts), N_FEATS)
    assert np.allclose(np.asarray(out), ref.astype(np.float32), rtol=3e-3, atol=3e-3), (
        "mismatch vs reference")
    print("KERNEL_OK")
</pallas_src>

<mosaic_0001>
module attributes {stable_mosaic.version = 11 : i64} {
  func.func @_geo_kernel(%arg0: i32, %arg1: memref<8x128xi32, #tpu.memory_space<vmem>>, %arg2: memref<3x16x8x128xf32, #tpu.memory_space<vmem>>, %arg3: memref<16x8x128xf32, #tpu.memory_space<vmem>>) attributes {dimension_semantics = [#tpu.dimension_semantics<parallel>], iteration_bounds = array<i64: 1>, scalar_prefetch = 0 : i64, scratch_operands = 0 : i64, tpu.core_type = #tpu.core_type<tc>, window_params = [{transform_indices = @transform_0, window_bounds = array<i64: 8, 128>}, {transform_indices = @transform_1, window_bounds = array<i64: 3, 16, 8, 128>}, {transform_indices = @transform_2, window_bounds = array<i64: 16, 8, 128>}]} {
    %c0 = arith.constant 0 : index
    %c0_0 = arith.constant 0 : index
    %0 = vector.load %arg1[%c0, %c0_0] : memref<8x128xi32, #tpu.memory_space<vmem>>, vector<8x128xi32>
    %1 = arith.sitofp %0 : vector<8x128xi32> to vector<8x128xf32>
    %2 = tpu.iota {dimensions = array<i32: 0>} : vector<16x8x128xi32>
    %3 = vector.shape_cast %0 : vector<8x128xi32> to vector<1x8x128xi32>
    %4 = vector.broadcast %3 : vector<1x8x128xi32> to vector<16x8x128xi32>
    %5 = arith.cmpi slt, %2, %4 : vector<16x8x128xi32>
    %6 = arith.extui %5 : vector<16x8x128xi1> to vector<16x8x128xi32>
    %7 = arith.sitofp %6 : vector<16x8x128xi32> to vector<16x8x128xf32>
    %c0_1 = arith.constant 0 : index
    %c0_2 = arith.constant 0 : index
    %c0_3 = arith.constant 0 : index
    %c0_4 = arith.constant 0 : index
    %8 = vector.load %arg2[%c0_1, %c0_2, %c0_3, %c0_4] : memref<3x16x8x128xf32, #tpu.memory_space<vmem>>, vector<1x16x8x128xf32>
    %9 = vector.shape_cast %8 : vector<1x16x8x128xf32> to vector<16x8x128xf32>
    %c1 = arith.constant 1 : index
    %c0_5 = arith.constant 0 : index
    %c0_6 = arith.constant 0 : index
    %c0_7 = arith.constant 0 : index
    %10 = vector.load %arg2[%c1, %c0_5, %c0_6, %c0_7] : memref<3x16x8x128xf32, #tpu.memory_space<vmem>>, vector<1x16x8x128xf32>
    %11 = vector.shape_cast %10 : vector<1x16x8x128xf32> to vector<16x8x128xf32>
    %c2 = arith.constant 2 : index
    %c0_8 = arith.constant 0 : index
    %c0_9 = arith.constant 0 : index
    %c0_10 = arith.constant 0 : index
    %12 = vector.load %arg2[%c2, %c0_8, %c0_9, %c0_10] : memref<3x16x8x128xf32, #tpu.memory_space<vmem>>, vector<1x16x8x128xf32>
    %13 = vector.shape_cast %12 : vector<1x16x8x128xf32> to vector<16x8x128xf32>
    %cst = arith.constant 1.000000e+00 : f32
    %14 = vector.broadcast %cst : f32 to vector<8x128xf32>
    %15 = arith.maximumf %1, %14 : vector<8x128xf32>
    %16 = tpu.reciprocal %15 {approx = true} : vector<8x128xf32> -> vector<8x128xf32>
    %17 = arith.mulf %15, %16 : vector<8x128xf32>
    %cst_11 = arith.constant 2.000000e+00 : f32
    %18 = vector.broadcast %cst_11 : f32 to vector<8x128xf32>
    %19 = arith.subf %18, %17 : vector<8x128xf32>
    %20 = arith.mulf %16, %19 : vector<8x128xf32>
    %21 = arith.mulf %9, %7 : vector<16x8x128xf32>
    %cst_12 = arith.constant dense<0.000000e+00> : vector<8x128xf32>
    %22 = vector.multi_reduction <add>, %21, %cst_12 [0] : vector<16x8x128xf32> to vector<8x128xf32>
    %23 = arith.mulf %22, %20 : vector<8x128xf32>
    %24 = arith.mulf %11, %7 : vector<16x8x128xf32>
    %cst_13 = arith.constant dense<0.000000e+00> : vector<8x128xf32>
    %25 = vector.multi_reduction <add>, %24, %cst_13 [0] : vector<16x8x128xf32> to vector<8x128xf32>
    %26 = arith.mulf %25, %20 : vector<8x128xf32>
    %27 = arith.mulf %13, %7 : vector<16x8x128xf32>
    %cst_14 = arith.constant dense<0.000000e+00> : vector<8x128xf32>
    %28 = vector.multi_reduction <add>, %27, %cst_14 [0] : vector<16x8x128xf32> to vector<8x128xf32>
    %29 = arith.mulf %28, %20 : vector<8x128xf32>
    %30 = vector.shape_cast %23 : vector<8x128xf32> to vector<1x8x128xf32>
    %31 = vector.broadcast %30 : vector<1x8x128xf32> to vector<16x8x128xf32>
    %32 = arith.subf %9, %31 : vector<16x8x128xf32>
    %33 = arith.mulf %32, %7 : vector<16x8x128xf32>
    %34 = vector.shape_cast %26 : vector<8x128xf32> to vector<1x8x128xf32>
    %35 = vector.broadcast %34 : vector<1x8x128xf32> to vector<16x8x128xf32>
    %36 = arith.subf %11, %35 : vector<16x8x128xf32>
    %37 = arith.mulf %36, %7 : vector<16x8x128xf32>
    %38 = vector.shape_cast %29 : vector<8x128xf32> to vector<1x8x128xf32>
    %39 = vector.broadcast %38 : vector<1x8x128xf32> to vector<16x8x128xf32>
    %40 = arith.subf %13, %39 : vector<16x8x128xf32>
    %41 = arith.mulf %40, %7 : vector<16x8x128xf32>
    %42 = arith.mulf %33, %33 : vector<16x8x128xf32>
    %cst_15 = arith.constant dense<0.000000e+00> : vector<8x128xf32>
    %43 = vector.multi_reduction <add>, %42, %cst_15 [0] : vector<16x8x128xf32> to vector<8x128xf32>
    %44 = arith.mulf %33, %37 : vector<16x8x128xf32>
    %cst_16 = arith.constant dense<0.000000e+00> : vector<8x128xf32>
    %45 = vector.multi_reduction <add>, %44, %cst_16 [0] : vector<16x8x128xf32> to vector<8x128xf32>
    %46 = arith.mulf %33, %41 : vector<16x8x128xf32>
    %cst_17 = arith.constant dense<0.000000e+00> : vector<8x128xf32>
    %47 = vector.multi_reduction <add>, %46, %cst_17 [0] : vector<16x8x128xf32> to vector<8x128xf32>
    %48 = arith.mulf %37, %37 : vector<16x8x128xf32>
    %cst_18 = arith.constant dense<0.000000e+00> : vector<8x128xf32>
    %49 = vector.multi_reduction <add>, %48, %cst_18 [0] : vector<16x8x128xf32> to vector<8x128xf32>
    %50 = arith.mulf %37, %41 : vector<16x8x128xf32>
    %cst_19 = arith.constant dense<0.000000e+00> : vector<8x128xf32>
    %51 = vector.multi_reduction <add>, %50, %cst_19 [0] : vector<16x8x128xf32> to vector<8x128xf32>
    %52 = arith.mulf %41, %41 : vector<16x8x128xf32>
    %cst_20 = arith.constant dense<0.000000e+00> : vector<8x128xf32>
    %53 = vector.multi_reduction <add>, %52, %cst_20 [0] : vector<16x8x128xf32> to vector<8x128xf32>
    %cst_21 = arith.constant 1.000000e+00 : f32
    %54 = vector.broadcast %cst_21 : f32 to vector<8x128xf32>
    %cst_22 = arith.constant 0.000000e+00 : f32
    %55 = vector.broadcast %cst_22 : f32 to vector<8x128xf32>
    %56 = math.absf %45 : vector<8x128xf32>
    %57 = math.absf %43 : vector<8x128xf32>
    %58 = math.absf %49 : vector<8x128xf32>
    %59 = arith.addf %57, %58 : vector<8x128xf32>
    %cst_23 = arith.constant 9.99999996E-13 : f32
    %60 = vector.broadcast %cst_23 : f32 to vector<8x128xf32>
    %61 = arith.mulf %60, %59 : vector<8x128xf32>
    %cst_24 = arith.constant 1.000000e-30 : f32
    %62 = vector.broadcast %cst_24 : f32 to vector<8x128xf32>
    %63 = arith.addf %62, %61 : vector<8x128xf32>
    %64 = arith.cmpf ole, %56, %63 : vector<8x128xf32>
    %65 = arith.select %64, %54, %45 : vector<8x128xi1>, vector<8x128xf32>
    %66 = arith.subf %49, %43 : vector<8x128xf32>
    %cst_25 = arith.constant 5.000000e-01 : f32
    %67 = vector.broadcast %cst_25 : f32 to vector<8x128xf32>
    %68 = arith.mulf %66, %67 : vector<8x128xf32>
    %69 = tpu.reciprocal %65 {approx = true} : vector<8x128xf32> -> vector<8x128xf32>
    %70 = arith.mulf %65, %69 : vector<8x128xf32>
    %cst_26 = arith.constant 2.000000e+00 : f32
    %71 = vector.broadcast %cst_26 : f32 to vector<8x128xf32>
    %72 = arith.subf %71, %70 : vector<8x128xf32>
    %73 = arith.mulf %69, %72 : vector<8x128xf32>
    %74 = arith.mulf %68, %73 : vector<8x128xf32>
    %cst_27 = arith.constant 0.000000e+00 : f32
    %75 = vector.broadcast %cst_27 : f32 to vector<8x128xf32>
    %76 = arith.cmpf oge, %74, %75 : vector<8x128xf32>
    %cst_28 = arith.constant 0.000000e+00 : f32
    %77 = vector.broadcast %cst_28 : f32 to vector<8x128xf32>
    %78 = arith.subf %77, %54 : vector<8x128xf32>
    %79 = arith.select %76, %54, %78 : vector<8x128xi1>, vector<8x128xf32>
    %80 = math.absf %74 : vector<8x128xf32>
    %81 = arith.mulf %74, %74 : vector<8x128xf32>
    %cst_29 = arith.constant 1.000000e+00 : f32
    %82 = vector.broadcast %cst_29 : f32 to vector<8x128xf32>
    %83 = arith.addf %82, %81 : vector<8x128xf32>
    %84 = math.sqrt %83 : vector<8x128xf32>
    %85 = arith.addf %80, %84 : vector<8x128xf32>
    %86 = tpu.reciprocal %85 {approx = true} : vector<8x128xf32> -> vector<8x128xf32>
    %87 = arith.mulf %85, %86 : vector<8x128xf32>
    %cst_30 = arith.constant 2.000000e+00 : f32
    %88 = vector.broadcast %cst_30 : f32 to vector<8x128xf32>
    %89 = arith.subf %88, %87 : vector<8x128xf32>
    %90 = arith.mulf %86, %89 : vector<8x128xf32>
    %91 = arith.mulf %79, %90 : vector<8x128xf32>
    %92 = arith.select %64, %55, %91 : vector<8x128xi1>, vector<8x128xf32>
    %93 = arith.mulf %92, %92 : vector<8x128xf32>
    %cst_31 = arith.constant 1.000000e+00 : f32
    %94 = vector.broadcast %cst_31 : f32 to vector<8x128xf32>
    %95 = arith.addf %94, %93 : vector<8x128xf32>
    %96 = math.rsqrt %95 : vector<8x128xf32>
    %97 = arith.mulf %92, %96 : vector<8x128xf32>
    %98 = arith.mulf %92, %45 : vector<8x128xf32>
    %99 = arith.subf %43, %98 : vector<8x128xf32>
    %100 = arith.mulf %92, %45 : vector<8x128xf32>
    %101 = arith.addf %49, %100 : vector<8x128xf32>
    %102 = arith.mulf %96, %47 : vector<8x128xf32>
    %103 = arith.mulf %97, %51 : vector<8x128xf32>
    %104 = arith.subf %102, %103 : vector<8x128xf32>
    %105 = arith.mulf %97, %47 : vector<8x128xf32>
    %106 = arith.mulf %96, %51 : vector<8x128xf32>
    %107 = arith.addf %105, %106 : vector<8x128xf32>
    %108 = arith.mulf %96, %54 : vector<8x128xf32>
    %109 = arith.mulf %97, %55 : vector<8x128xf32>
    %110 = arith.subf %108, %109 : vector<8x128xf32>
    %111 = arith.mulf %97, %54 : vector<8x128xf32>
    %112 = arith.mulf %96, %55 : vector<8x128xf32>
    %113 = arith.addf %111, %112 : vector<8x128xf32>
    %114 = arith.mulf %96, %55 : vector<8x128xf32>
    %115 = arith.mulf %97, %54 : vector<8x128xf32>
    %116 = arith.subf %114, %115 : vector<8x128xf32>
    %117 = arith.mulf %97, %55 : vector<8x128xf32>
    %118 = arith.mulf %96, %54 : vector<8x128xf32>
    %119 = arith.addf %117, %118 : vector<8x128xf32>
    %120 = arith.mulf %96, %55 : vector<8x128xf32>
    %121 = arith.mulf %97, %55 : vector<8x128xf32>
    %122 = arith.subf %120, %121 : vector<8x128xf32>
    %123 = arith.mulf %97, %55 : vector<8x128xf32>
    %124 = arith.mulf %96, %55 : vector<8x128xf32>
    %125 = arith.addf %123, %124 : vector<8x128xf32>
    %126 = math.absf %104 : vector<8x128xf32>
    %127 = math.absf %99 : vector<8x128xf32>
    %128 = math.absf %53 : vector<8x128xf32>
    %129 = arith.addf %127, %128 : vector<8x128xf32>
    %cst_32 = arith.constant 9.99999996E-13 : f32
    %130 = vector.broadcast %cst_32 : f32 to vector<8x128xf32>
    %131 = arith.mulf %130, %129 : vector<8x128xf32>
    %cst_33 = arith.constant 1.000000e-30 : f32
    %132 = vector.broadcast %cst_33 : f32 to vector<8x128xf32>
    %133 = arith.addf %132, %131 : vector<8x128xf32>
    %134 = arith.cmpf ole, %126, %133 : vector<8x128xf32>
    %135 = arith.select %134, %54, %104 : vector<8x128xi1>, vector<8x128xf32>
    %136 = arith.subf %53, %99 : vector<8x128xf32>
    %cst_34 = arith.constant 5.000000e-01 : f32
    %137 = vector.broadcast %cst_34 : f32 to vector<8x128xf32>
    %138 = arith.mulf %136, %137 : vector<8x128xf32>
    %139 = tpu.reciprocal %135 {approx = true} : vector<8x128xf32> -> vector<8x128xf32>
    %140 = arith.mulf %135, %139 : vector<8x128xf32>
    %cst_35 = arith.constant 2.000000e+00 : f32
    %141 = vector.broadcast %cst_35 : f32 to vector<8x128xf32>
    %142 = arith.subf %141, %140 : vector<8x128xf32>
    %143 = arith.mulf %139, %142 : vector<8x128xf32>
    %144 = arith.mulf %138, %143 : vector<8x128xf32>
    %cst_36 = arith.constant 0.000000e+00 : f32
    %145 = vector.broadcast %cst_36 : f32 to vector<8x128xf32>
    %146 = arith.cmpf oge, %144, %145 : vector<8x128xf32>
    %cst_37 = arith.constant 0.000000e+00 : f32
    %147 = vector.broadcast %cst_37 : f32 to vector<8x128xf32>
    %148 = arith.subf %147, %54 : vector<8x128xf32>
    %149 = arith.select %146, %54, %148 : vector<8x128xi1>, vector<8x128xf32>
    %150 = math.absf %144 : vector<8x128xf32>
    %151 = arith.mulf %144, %144 : vector<8x128xf32>
    %cst_38 = arith.constant 1.000000e+00 : f32
    %152 = vector.broadcast %cst_38 : f32 to vector<8x128xf32>
    %153 = arith.addf %152, %151 : vector<8x128xf32>
    %154 = math.sqrt %153 : vector<8x128xf32>
    %155 = arith.addf %150, %154 : vector<8x128xf32>
    %156 = tpu.reciprocal %155 {approx = true} : vector<8x128xf32> -> vector<8x128xf32>
    %157 = arith.mulf %155, %156 : vector<8x128xf32>
    %cst_39 = arith.constant 2.000000e+00 : f32
    %158 = vector.broadcast %cst_39 : f32 to vector<8x128xf32>
    %159 = arith.subf %158, %157 : vector<8x128xf32>
    %160 = arith.mulf %156, %159 : vector<8x128xf32>
    %161 = arith.mulf %149, %160 : vector<8x128xf32>
    %162 = arith.select %134, %55, %161 : vector<8x128xi1>, vector<8x128xf32>
    %163 = arith.mulf %162, %162 : vector<8x128xf32>
    %cst_40 = arith.constant 1.000000e+00 : f32
    %164 = vector.broadcast %cst_40 : f32 to vector<8x128xf32>
    %165 = arith.addf %164, %163 : vector<8x128xf32>
    %166 = math.rsqrt %165 : vector<8x128xf32>
    %167 = arith.mulf %162, %166 : vector<8x128xf32>
    %168 = arith.mulf %162, %104 : vector<8x128xf32>
    %169 = arith.subf %99, %168 : vector<8x128xf32>
    %170 = arith.mulf %162, %104 : vector<8x128xf32>
    %171 = arith.addf %53, %170 : vector<8x128xf32>
    %172 = arith.mulf %166, %55 : vector<8x128xf32>
    %173 = arith.mulf %167, %107 : vector<8x128xf32>
    %174 = arith.subf %172, %173 : vector<8x128xf32>
    %175 = arith.mulf %167, %55 : vector<8x128xf32>
    %176 = arith.mulf %166, %107 : vector<8x128xf32>
    %177 = arith.addf %175, %176 : vector<8x128xf32>
    %178 = arith.mulf %166, %110 : vector<8x128xf32>
    %179 = arith.mulf %167, %55 : vector<8x128xf32>
    %180 = arith.subf %178, %179 : vector<8x128xf32>
    %181 = arith.mulf %167, %110 : vector<8x128xf32>
    %182 = arith.mulf %166, %55 : vector<8x128xf32>
    %183 = arith.addf %181, %182 : vector<8x128xf32>
    %184 = arith.mulf %166, %116 : vector<8x128xf32>
    %185 = arith.mulf %167, %55 : vector<8x128xf32>
    %186 = arith.subf %184, %185 : vector<8x128xf32>
    %187 = arith.mulf %167, %116 : vector<8x128xf32>
    %188 = arith.mulf %166, %55 : vector<8x128xf32>
    %189 = arith.addf %187, %188 : vector<8x128xf32>
    %190 = arith.mulf %166, %122 : vector<8x128xf32>
    %191 = arith.mulf %167, %54 : vector<8x128xf32>
    %192 = arith.subf %190, %191 : vector<8x128xf32>
    %193 = arith.mulf %167, %122 : vector<8x128xf32>
    %194 = arith.mulf %166, %54 : vector<8x128xf32>
    %195 = arith.addf %193, %194 : vector<8x128xf32>
    %196 = math.absf %177 : vector<8x128xf32>
    %197 = math.absf %101 : vector<8x128xf32>
    %198 = math.absf %171 : vector<8x128xf32>
    %199 = arith.addf %197, %198 : vector<8x128xf32>
    %cst_41 = arith.constant 9.99999996E-13 : f32
    %200 = vector.broadcast %cst_41 : f32 to vector<8x128xf32>
    %201 = arith.mulf %200, %199 : vector<8x128xf32>
    %cst_42 = arith.constant 1.000000e-30 : f32
    %202 = vector.broadcast %cst_42 : f32 to vector<8x128xf32>
    %203 = arith.addf %202, %201 : vector<8x128xf32>
    %204 = arith.cmpf ole, %196, %203 : vector<8x128xf32>
    %205 = arith.select %204, %54, %177 : vector<8x128xi1>, vector<8x128xf32>
    %206 = arith.subf %171, %101 : vector<8x128xf32>
    %cst_43 = arith.constant 5.000000e-01 : f32
    %207 = vector.broadcast %cst_43 : f32 to vector<8x128xf32>
    %208 = arith.mulf %206, %207 : vector<8x128xf32>
    %209 = tpu.reciprocal %205 {approx = true} : vector<8x128xf32> -> vector<8x128xf32>
    %210 = arith.mulf %205, %209 : vector<8x128xf32>
    %cst_44 = arith.constant 2.000000e+00 : f32
    %211 = vector.broadcast %cst_44 : f32 to vector<8x128xf32>
    %212 = arith.subf %211, %210 : vector<8x128xf32>
    %213 = arith.mulf %209, %212 : vector<8x128xf32>
    %214 = arith.mulf %208, %213 : vector<8x128xf32>
    %cst_45 = arith.constant 0.000000e+00 : f32
    %215 = vector.broadcast %cst_45 : f32 to vector<8x128xf32>
    %216 = arith.cmpf oge, %214, %215 : vector<8x128xf32>
    %cst_46 = arith.constant 0.000000e+00 : f32
    %217 = vector.broadcast %cst_46 : f32 to vector<8x128xf32>
    %218 = arith.subf %217, %54 : vector<8x128xf32>
    %219 = arith.select %216, %54, %218 : vector<8x128xi1>, vector<8x128xf32>
    %220 = math.absf %214 : vector<8x128xf32>
    %221 = arith.mulf %214, %214 : vector<8x128xf32>
    %cst_47 = arith.constant 1.000000e+00 : f32
    %222 = vector.broadcast %cst_47 : f32 to vector<8x128xf32>
    %223 = arith.addf %222, %221 : vector<8x128xf32>
    %224 = math.sqrt %223 : vector<8x128xf32>
    %225 = arith.addf %220, %224 : vector<8x128xf32>
    %226 = tpu.reciprocal %225 {approx = true} : vector<8x128xf32> -> vector<8x128xf32>
    %227 = arith.mulf %225, %226 : vector<8x128xf32>
    %cst_48 = arith.constant 2.000000e+00 : f32
    %228 = vector.broadcast %cst_48 : f32 to vector<8x128xf32>
    %229 = arith.subf %228, %227 : vector<8x128xf32>
    %230 = arith.mulf %226, %229 : vector<8x128xf32>
    %231 = arith.mulf %219, %230 : vector<8x128xf32>
    %232 = arith.select %204, %55, %231 : vector<8x128xi1>, vector<8x128xf32>
    %233 = arith.mulf %232, %232 : vector<8x128xf32>
    %cst_49 = arith.constant 1.000000e+00 : f32
    %234 = vector.broadcast %cst_49 : f32 to vector<8x128xf32>
    %235 = arith.addf %234, %233 : vector<8x128xf32>
    %236 = math.rsqrt %235 : vector<8x128xf32>
    %237 = arith.mulf %232, %236 : vector<8x128xf32>
    %238 = arith.mulf %232, %177 : vector<8x128xf32>
    %239 = arith.subf %101, %238 : vector<8x128xf32>
    %240 = arith.mulf %232, %177 : vector<8x128xf32>
    %241 = arith.addf %171, %240 : vector<8x128xf32>
    %242 = arith.mulf %236, %174 : vector<8x128xf32>
    %243 = arith.mulf %237, %55 : vector<8x128xf32>
    %244 = arith.subf %242, %243 : vector<8x128xf32>
    %245 = arith.mulf %237, %174 : vector<8x128xf32>
    %246 = arith.mulf %236, %55 : vector<8x128xf32>
    %247 = arith.addf %245, %246 : vector<8x128xf32>
    %248 = arith.mulf %236, %113 : vector<8x128xf32>
    %249 = arith.mulf %237, %183 : vector<8x128xf32>
    %250 = arith.subf %248, %249 : vector<8x128xf32>
    %251 = arith.mulf %237, %113 : vector<8x128xf32>
    %252 = arith.mulf %236, %183 : vector<8x128xf32>
    %253 = arith.addf %251, %252 : vector<8x128xf32>
    %254 = arith.mulf %236, %119 : vector<8x128xf32>
    %255 = arith.mulf %237, %189 : vector<8x128xf32>
    %256 = arith.subf %254, %255 : vector<8x128xf32>
    %257 = arith.mulf %237, %119 : vector<8x128xf32>
    %258 = arith.mulf %236, %189 : vector<8x128xf32>
    %259 = arith.addf %257, %258 : vector<8x128xf32>
    %260 = arith.mulf %236, %125 : vector<8x128xf32>
    %261 = arith.mulf %237, %195 : vector<8x128xf32>
    %262 = arith.subf %260, %261 : vector<8x128xf32>
    %263 = arith.mulf %237, %125 : vector<8x128xf32>
    %264 = arith.mulf %236, %195 : vector<8x128xf32>
    %265 = arith.addf %263, %264 : vector<8x128xf32>
    %266 = math.absf %244 : vector<8x128xf32>
    %267 = math.absf %169 : vector<8x128xf32>
    %268 = math.absf %239 : vector<8x128xf32>
    %269 = arith.addf %267, %268 : vector<8x128xf32>
    %cst_50 = arith.constant 9.99999996E-13 : f32
    %270 = vector.broadcast %cst_50 : f32 to vector<8x128xf32>
    %271 = arith.mulf %270, %269 : vector<8x128xf32>
    %cst_51 = arith.constant 1.000000e-30 : f32
    %272 = vector.broadcast %cst_51 : f32 to vector<8x128xf32>
    %273 = arith.addf %272, %271 : vector<8x128xf32>
    %274 = arith.cmpf ole, %266, %273 : vector<8x128xf32>
    %275 = arith.select %274, %54, %244 : vector<8x128xi1>, vector<8x128xf32>
    %276 = arith.subf %239, %169 : vector<8x128xf32>
    %cst_52 = arith.constant 5.000000e-01 : f32
    %277 = vector.broadcast %cst_52 : f32 to vector<8x128xf32>
    %278 = arith.mulf %276, %277 : vector<8x128xf32>
    %279 = tpu.reciprocal %275 {approx = true} : vector<8x128xf32> -> vector<8x128xf32>
    %280 = arith.mulf %275, %279 : vector<8x128xf32>
    %cst_53 = arith.constant 2.000000e+00 : f32
    %281 = vector.broadcast %cst_53 : f32 to vector<8x128xf32>
    %282 = arith.subf %281, %280 : vector<8x128xf32>
    %283 = arith.mulf %279, %282 : vector<8x128xf32>
    %284 = arith.mulf %278, %283 : vector<8x128xf32>
    %cst_54 = arith.constant 0.000000e+00 : f32
    %285 = vector.broadcast %cst_54 : f32 to vector<8x128xf32>
    %286 = arith.cmpf oge, %284, %285 : vector<8x128xf32>
    %cst_55 = arith.constant 0.000000e+00 : f32
    %287 = vector.broadcast %cst_55 : f32 to vector<8x128xf32>
    %288 = arith.subf %287, %54 : vector<8x128xf32>
    %289 = arith.select %286, %54, %288 : vector<8x128xi1>, vector<8x128xf32>
    %290 = math.absf %284 : vector<8x128xf32>
    %291 = arith.mulf %284, %284 : vector<8x128xf32>
    %cst_56 = arith.constant 1.000000e+00 : f32
    %292 = vector.broadcast %cst_56 : f32 to vector<8x128xf32>
    %293 = arith.addf %292, %291 : vector<8x128xf32>
    %294 = math.sqrt %293 : vector<8x128xf32>
    %295 = arith.addf %290, %294 : vector<8x128xf32>
    %296 = tpu.reciprocal %295 {approx = true} : vector<8x128xf32> -> vector<8x128xf32>
    %297 = arith.mulf %295, %296 : vector<8x128xf32>
    %cst_57 = arith.constant 2.000000e+00 : f32
    %298 = vector.broadcast %cst_57 : f32 to vector<8x128xf32>
    %299 = arith.subf %298, %297 : vector<8x128xf32>
    %300 = arith.mulf %296, %299 : vector<8x128xf32>
    %301 = arith.mulf %289, %300 : vector<8x128xf32>
    %302 = arith.select %274, %55, %301 : vector<8x128xi1>, vector<8x128xf32>
    %303 = arith.mulf %302, %302 : vector<8x128xf32>
    %cst_58 = arith.constant 1.000000e+00 : f32
    %304 = vector.broadcast %cst_58 : f32 to vector<8x128xf32>
    %305 = arith.addf %304, %303 : vector<8x128xf32>
    %306 = math.rsqrt %305 : vector<8x128xf32>
    %307 = arith.mulf %302, %306 : vector<8x128xf32>
    %308 = arith.mulf %302, %244 : vector<8x128xf32>
    %309 = arith.subf %169, %308 : vector<8x128xf32>
    %310 = arith.mulf %302, %244 : vector<8x128xf32>
    %311 = arith.addf %239, %310 : vector<8x128xf32>
    %312 = arith.mulf %306, %247 : vector<8x128xf32>
    %313 = arith.mulf %307, %55 : vector<8x128xf32>
    %314 = arith.subf %312, %313 : vector<8x128xf32>
    %315 = arith.mulf %307, %247 : vector<8x128xf32>
    %316 = arith.mulf %306, %55 : vector<8x128xf32>
    %317 = arith.addf %315, %316 : vector<8x128xf32>
    %318 = arith.mulf %306, %180 : vector<8x128xf32>
    %319 = arith.mulf %307, %250 : vector<8x128xf32>
    %320 = arith.subf %318, %319 : vector<8x128xf32>
    %321 = arith.mulf %307, %180 : vector<8x128xf32>
    %322 = arith.mulf %306, %250 : vector<8x128xf32>
    %323 = arith.addf %321, %322 : vector<8x128xf32>
    %324 = arith.mulf %306, %186 : vector<8x128xf32>
    %325 = arith.mulf %307, %256 : vector<8x128xf32>
    %326 = arith.subf %324, %325 : vector<8x128xf32>
    %327 = arith.mulf %307, %186 : vector<8x128xf32>
    %328 = arith.mulf %306, %256 : vector<8x128xf32>
    %329 = arith.addf %327, %328 : vector<8x128xf32>
    %330 = arith.mulf %306, %192 : vector<8x128xf32>
    %331 = arith.mulf %307, %262 : vector<8x128xf32>
    %332 = arith.subf %330, %331 : vector<8x128xf32>
    %333 = arith.mulf %307, %192 : vector<8x128xf32>
    %334 = arith.mulf %306, %262 : vector<8x128xf32>
    %335 = arith.addf %333, %334 : vector<8x128xf32>
    %336 = math.absf %314 : vector<8x128xf32>
    %337 = math.absf %309 : vector<8x128xf32>
    %338 = math.absf %241 : vector<8x128xf32>
    %339 = arith.addf %337, %338 : vector<8x128xf32>
    %cst_59 = arith.constant 9.99999996E-13 : f32
    %340 = vector.broadcast %cst_59 : f32 to vector<8x128xf32>
    %341 = arith.mulf %340, %339 : vector<8x128xf32>
    %cst_60 = arith.constant 1.000000e-30 : f32
    %342 = vector.broadcast %cst_60 : f32 to vector<8x128xf32>
    %343 = arith.addf %342, %341 : vector<8x128xf32>
    %344 = arith.cmpf ole, %336, %343 : vector<8x128xf32>
    %345 = arith.select %344, %54, %314 : vector<8x128xi1>, vector<8x128xf32>
    %346 = arith.subf %241, %309 : vector<8x128xf32>
    %cst_61 = arith.constant 5.000000e-01 : f32
    %347 = vector.broadcast %cst_61 : f32 to vector<8x128xf32>
    %348 = arith.mulf %346, %347 : vector<8x128xf32>
    %349 = tpu.reciprocal %345 {approx = true} : vector<8x128xf32> -> vector<8x128xf32>
    %350 = arith.mulf %345, %349 : vector<8x128xf32>
    %cst_62 = arith.constant 2.000000e+00 : f32
    %351 = vector.broadcast %cst_62 : f32 to vector<8x128xf32>
    %352 = arith.subf %351, %350 : vector<8x128xf32>
    %353 = arith.mulf %349, %352 : vector<8x128xf32>
    %354 = arith.mulf %348, %353 : vector<8x128xf32>
    %cst_63 = arith.constant 0.000000e+00 : f32
    %355 = vector.broadcast %cst_63 : f32 to vector<8x128xf32>
    %356 = arith.cmpf oge, %354, %355 : vector<8x128xf32>
    %cst_64 = arith.constant 0.000000e+00 : f32
    %357 = vector.broadcast %cst_64 : f32 to vector<8x128xf32>
    %358 = arith.subf %357, %54 : vector<8x128xf32>
    %359 = arith.select %356, %54, %358 : vector<8x128xi1>, vector<8x128xf32>
    %360 = math.absf %354 : vector<8x128xf32>
    %361 = arith.mulf %354, %354 : vector<8x128xf32>
    %cst_65 = arith.constant 1.000000e+00 : f32
    %362 = vector.broadcast %cst_65 : f32 to vector<8x128xf32>
    %363 = arith.addf %362, %361 : vector<8x128xf32>
    %364 = math.sqrt %363 : vector<8x128xf32>
    %365 = arith.addf %360, %364 : vector<8x128xf32>
    %366 = tpu.reciprocal %365 {approx = true} : vector<8x128xf32> -> vector<8x128xf32>
    %367 = arith.mulf %365, %366 : vector<8x128xf32>
    %cst_66 = arith.constant 2.000000e+00 : f32
    %368 = vector.broadcast %cst_66 : f32 to vector<8x128xf32>
    %369 = arith.subf %368, %367 : vector<8x128xf32>
    %370 = arith.mulf %366, %369 : vector<8x128xf32>
    %371 = arith.mulf %359, %370 : vector<8x128xf32>
    %372 = arith.select %344, %55, %371 : vector<8x128xi1>, vector<8x128xf32>
    %373 = arith.mulf %372, %372 : vector<8x128xf32>
    %cst_67 = arith.constant 1.000000e+00 : f32
    %374 = vector.broadcast %cst_67 : f32 to vector<8x128xf32>
    %375 = arith.addf %374, %373 : vector<8x128xf32>
    %376 = math.rsqrt %375 : vector<8x128xf32>
    %377 = arith.mulf %372, %376 : vector<8x128xf32>
    %378 = arith.mulf %372, %314 : vector<8x128xf32>
    %379 = arith.subf %309, %378 : vector<8x128xf32>
    %380 = arith.mulf %372, %314 : vector<8x128xf32>
    %381 = arith.addf %241, %380 : vector<8x128xf32>
    %382 = arith.mulf %376, %55 : vector<8x128xf32>
    %383 = arith.mulf %377, %317 : vector<8x128xf32>
    %384 = arith.subf %382, %383 : vector<8x128xf32>
    %385 = arith.mulf %377, %55 : vector<8x128xf32>
    %386 = arith.mulf %376, %317 : vector<8x128xf32>
    %387 = arith.addf %385, %386 : vector<8x128xf32>
    %388 = arith.mulf %376, %320 : vector<8x128xf32>
    %389 = arith.mulf %377, %253 : vector<8x128xf32>
    %390 = arith.subf %388, %389 : vector<8x128xf32>
    %391 = arith.mulf %377, %320 : vector<8x128xf32>
    %392 = arith.mulf %376, %253 : vector<8x128xf32>
    %393 = arith.addf %391, %392 : vector<8x128xf32>
    %394 = arith.mulf %376, %326 : vector<8x128xf32>
    %395 = arith.mulf %377, %259 : vector<8x128xf32>
    %396 = arith.subf %394, %395 : vector<8x128xf32>
    %397 = arith.mulf %377, %326 : vector<8x128xf32>
    %398 = arith.mulf %376, %259 : vector<8x128xf32>
    %399 = arith.addf %397, %398 : vector<8x128xf32>
    %400 = arith.mulf %376, %332 : vector<8x128xf32>
    %401 = arith.mulf %377, %265 : vector<8x128xf32>
    %402 = arith.subf %400, %401 : vector<8x128xf32>
    %403 = arith.mulf %377, %332 : vector<8x128xf32>
    %404 = arith.mulf %376, %265 : vector<8x128xf32>
    %405 = arith.addf %403, %404 : vector<8x128xf32>
    %406 = math.absf %387 : vector<8x128xf32>
    %407 = math.absf %311 : vector<8x128xf32>
    %408 = math.absf %381 : vector<8x128xf32>
    %409 = arith.addf %407, %408 : vector<8x128xf32>
    %cst_68 = arith.constant 9.99999996E-13 : f32
    %410 = vector.broadcast %cst_68 : f32 to vector<8x128xf32>
    %411 = arith.mulf %410, %409 : vector<8x128xf32>
    %cst_69 = arith.constant 1.000000e-30 : f32
    %412 = vector.broadcast %cst_69 : f32 to vector<8x128xf32>
    %413 = arith.addf %412, %411 : vector<8x128xf32>
    %414 = arith.cmpf ole, %406, %413 : vector<8x128xf32>
    %415 = arith.select %414, %54, %387 : vector<8x128xi1>, vector<8x128xf32>
    %416 = arith.subf %381, %311 : vector<8x128xf32>
    %cst_70 = arith.constant 5.000000e-01 : f32
    %417 = vector.broadcast %cst_70 : f32 to vector<8x128xf32>
    %418 = arith.mulf %416, %417 : vector<8x128xf32>
    %419 = tpu.reciprocal %415 {approx = true} : vector<8x128xf32> -> vector<8x128xf32>
    %420 = arith.mulf %415, %419 : vector<8x128xf32>
    %cst_71 = arith.constant 2.000000e+00 : f32
    %421 = vector.broadcast %cst_71 : f32 to vector<8x128xf32>
    %422 = arith.subf %421, %420 : vector<8x128xf32>
    %423 = arith.mulf %419, %422 : vector<8x128xf32>
    %424 = arith.mulf %418, %423 : vector<8x128xf32>
    %cst_72 = arith.constant 0.000000e+00 : f32
    %425 = vector.broadcast %cst_72 : f32 to vector<8x128xf32>
    %426 = arith.cmpf oge, %424, %425 : vector<8x128xf32>
    %cst_73 = arith.constant 0.000000e+00 : f32
    %427 = vector.broadcast %cst_73 : f32 to vector<8x128xf32>
    %428 = arith.subf %427, %54 : vector<8x128xf32>
    %429 = arith.select %426, %54, %428 : vector<8x128xi1>, vector<8x128xf32>
    %430 = math.absf %424 : vector<8x128xf32>
    %431 = arith.mulf %424, %424 : vector<8x128xf32>
    %cst_74 = arith.constant 1.000000e+00 : f32
    %432 = vector.broadcast %cst_74 : f32 to vector<8x128xf32>
    %433 = arith.addf %432, %431 : vector<8x128xf32>
    %434 = math.sqrt %433 : vector<8x128xf32>
    %435 = arith.addf %430, %434 : vector<8x128xf32>
    %436 = tpu.reciprocal %435 {approx = true} : vector<8x128xf32> -> vector<8x128xf32>
    %437 = arith.mulf %435, %436 : vector<8x128xf32>
    %cst_75 = arith.constant 2.000000e+00 : f32
    %438 = vector.broadcast %cst_75 : f32 to vector<8x128xf32>
    %439 = arith.subf %438, %437 : vector<8x128xf32>
    %440 = arith.mulf %436, %439 : vector<8x128xf32>
    %441 = arith.mulf %429, %440 : vector<8x128xf32>
    %442 = arith.select %414, %55, %441 : vector<8x128xi1>, vector<8x128xf32>
    %443 = arith.mulf %442, %442 : vector<8x128xf32>
    %cst_76 = arith.constant 1.000000e+00 : f32
    %444 = vector.broadcast %cst_76 : f32 to vector<8x128xf32>
    %445 = arith.addf %444, %443 : vector<8x128xf32>
    %446 = math.rsqrt %445 : vector<8x128xf32>
    %447 = arith.mulf %442, %446 : vector<8x128xf32>
    %448 = arith.mulf %442, %387 : vector<8x128xf32>
    %449 = arith.subf %311, %448 : vector<8x128xf32>
    %450 = arith.mulf %442, %387 : vector<8x128xf32>
    %451 = arith.addf %381, %450 : vector<8x128xf32>
    %452 = arith.mulf %446, %384 : vector<8x128xf32>
    %453 = arith.mulf %447, %55 : vector<8x128xf32>
    %454 = arith.subf %452, %453 : vector<8x128xf32>
    %455 = arith.mulf %447, %384 : vector<8x128xf32>
    %456 = arith.mulf %446, %55 : vector<8x128xf32>
    %457 = arith.addf %455, %456 : vector<8x128xf32>
    %458 = arith.mulf %446, %323 : vector<8x128xf32>
    %459 = arith.mulf %447, %393 : vector<8x128xf32>
    %460 = arith.subf %458, %459 : vector<8x128xf32>
    %461 = arith.mulf %447, %323 : vector<8x128xf32>
    %462 = arith.mulf %446, %393 : vector<8x128xf32>
    %463 = arith.addf %461, %462 : vector<8x128xf32>
    %464 = arith.mulf %446, %329 : vector<8x128xf32>
    %465 = arith.mulf %447, %399 : vector<8x128xf32>
    %466 = arith.subf %464, %465 : vector<8x128xf32>
    %467 = arith.mulf %447, %329 : vector<8x128xf32>
    %468 = arith.mulf %446, %399 : vector<8x128xf32>
    %469 = arith.addf %467, %468 : vector<8x128xf32>
    %470 = arith.mulf %446, %335 : vector<8x128xf32>
    %471 = arith.mulf %447, %405 : vector<8x128xf32>
    %472 = arith.subf %470, %471 : vector<8x128xf32>
    %473 = arith.mulf %447, %335 : vector<8x128xf32>
    %474 = arith.mulf %446, %405 : vector<8x128xf32>
    %475 = arith.addf %473, %474 : vector<8x128xf32>
    %476 = math.absf %454 : vector<8x128xf32>
    %477 = math.absf %379 : vector<8x128xf32>
    %478 = math.absf %449 : vector<8x128xf32>
    %479 = arith.addf %477, %478 : vector<8x128xf32>
    %cst_77 = arith.constant 9.99999996E-13 : f32
    %480 = vector.broadcast %cst_77 : f32 to vector<8x128xf32>
    %481 = arith.mulf %480, %479 : vector<8x128xf32>
    %cst_78 = arith.constant 1.000000e-30 : f32
    %482 = vector.broadcast %cst_78 : f32 to vector<8x128xf32>
    %483 = arith.addf %482, %481 : vector<8x128xf32>
    %484 = arith.cmpf ole, %476, %483 : vector<8x128xf32>
    %485 = arith.select %484, %54, %454 : vector<8x128xi1>, vector<8x128xf32>
    %486 = arith.subf %449, %379 : vector<8x128xf32>
    %cst_79 = arith.constant 5.000000e-01 : f32
    %487 = vector.broadcast %cst_79 : f32 to vector<8x128xf32>
    %488 = arith.mulf %486, %487 : vector<8x128xf32>
    %489 = tpu.reciprocal %485 {approx = true} : vector<8x128xf32> -> vector<8x128xf32>
    %490 = arith.mulf %485, %489 : vector<8x128xf32>
    %cst_80 = arith.constant 2.000000e+00 : f32
    %491 = vector.broadcast %cst_80 : f32 to vector<8x128xf32>
    %492 = arith.subf %491, %490 : vector<8x128xf32>
    %493 = arith.mulf %489, %492 : vector<8x128xf32>
    %494 = arith.mulf %488, %493 : vector<8x128xf32>
    %cst_81 = arith.constant 0.000000e+00 : f32
    %495 = vector.broadcast %cst_81 : f32 to vector<8x128xf32>
    %496 = arith.cmpf oge, %494, %495 : vector<8x128xf32>
    %cst_82 = arith.constant 0.000000e+00 : f32
    %497 = vector.broadcast %cst_82 : f32 to vector<8x128xf32>
    %498 = arith.subf %497, %54 : vector<8x128xf32>
    %499 = arith.select %496, %54, %498 : vector<8x128xi1>, vector<8x128xf32>
    %500 = math.absf %494 : vector<8x128xf32>
    %501 = arith.mulf %494, %494 : vector<8x128xf32>
    %cst_83 = arith.constant 1.000000e+00 : f32
    %502 = vector.broadcast %cst_83 : f32 to vector<8x128xf32>
    %503 = arith.addf %502, %501 : vector<8x128xf32>
    %504 = math.sqrt %503 : vector<8x128xf32>
    %505 = arith.addf %500, %504 : vector<8x128xf32>
    %506 = tpu.reciprocal %505 {approx = true} : vector<8x128xf32> -> vector<8x128xf32>
    %507 = arith.mulf %505, %506 : vector<8x128xf32>
    %cst_84 = arith.constant 2.000000e+00 : f32
    %508 = vector.broadcast %cst_84 : f32 to vector<8x128xf32>
    %509 = arith.subf %508, %507 : vector<8x128xf32>
    %510 = arith.mulf %506, %509 : vector<8x128xf32>
    %511 = arith.mulf %499, %510 : vector<8x128xf32>
    %512 = arith.select %484, %55, %511 : vector<8x128xi1>, vector<8x128xf32>
    %513 = arith.mulf %512, %512 : vector<8x128xf32>
    %cst_85 = arith.constant 1.000000e+00 : f32
    %514 = vector.broadcast %cst_85 : f32 to vector<8x128xf32>
    %515 = arith.addf %514, %513 : vector<8x128xf32>
    %516 = math.rsqrt %515 : vector<8x128xf32>
    %517 = arith.mulf %512, %516 : vector<8x128xf32>
    %518 = arith.mulf %512, %454 : vector<8x128xf32>
    %519 = arith.subf %379, %518 : vector<8x128xf32>
    %520 = arith.mulf %512, %454 : vector<8x128xf32>
    %521 = arith.addf %449, %520 : vector<8x128xf32>
    %522 = arith.mulf %516, %457 : vector<8x128xf32>
    %523 = arith.mulf %517, %55 : vector<8x128xf32>
    %524 = arith.subf %522, %523 : vector<8x128xf32>
    %525 = arith.mulf %517, %457 : vector<8x128xf32>
    %526 = arith.mulf %516, %55 : vector<8x128xf32>
    %527 = arith.addf %525, %526 : vector<8x128xf32>
    %528 = arith.mulf %516, %390 : vector<8x128xf32>
    %529 = arith.mulf %517, %460 : vector<8x128xf32>
    %530 = arith.subf %528, %529 : vector<8x128xf32>
    %531 = arith.mulf %517, %390 : vector<8x128xf32>
    %532 = arith.mulf %516, %460 : vector<8x128xf32>
    %533 = arith.addf %531, %532 : vector<8x128xf32>
    %534 = arith.mulf %516, %396 : vector<8x128xf32>
    %535 = arith.mulf %517, %466 : vector<8x128xf32>
    %536 = arith.subf %534, %535 : vector<8x128xf32>
    %537 = arith.mulf %517, %396 : vector<8x128xf32>
    %538 = arith.mulf %516, %466 : vector<8x128xf32>
    %539 = arith.addf %537, %538 : vector<8x128xf32>
    %540 = arith.mulf %516, %402 : vector<8x128xf32>
    %541 = arith.mulf %517, %472 : vector<8x128xf32>
    %542 = arith.subf %540, %541 : vector<8x128xf32>
    %543 = arith.mulf %517, %402 : vector<8x128xf32>
    %544 = arith.mulf %516, %472 : vector<8x128xf32>
    %545 = arith.addf %543, %544 : vector<8x128xf32>
    %546 = math.absf %524 : vector<8x128xf32>
    %547 = math.absf %519 : vector<8x128xf32>
    %548 = math.absf %451 : vector<8x128xf32>
    %549 = arith.addf %547, %548 : vector<8x128xf32>
    %cst_86 = arith.constant 9.99999996E-13 : f32
    %550 = vector.broadcast %cst_86 : f32 to vector<8x128xf32>
    %551 = arith.mulf %550, %549 : vector<8x128xf32>
    %cst_87 = arith.constant 1.000000e-30 : f32
    %552 = vector.broadcast %cst_87 : f32 to vector<8x128xf32>
    %553 = arith.addf %552, %551 : vector<8x128xf32>
    %554 = arith.cmpf ole, %546, %553 : vector<8x128xf32>
    %555 = arith.select %554, %54, %524 : vector<8x128xi1>, vector<8x128xf32>
    %556 = arith.subf %451, %519 : vector<8x128xf32>
    %cst_88 = arith.constant 5.000000e-01 : f32
    %557 = vector.broadcast %cst_88 : f32 to vector<8x128xf32>
    %558 = arith.mulf %556, %557 : vector<8x128xf32>
    %559 = tpu.reciprocal %555 {approx = true} : vector<8x128xf32> -> vector<8x128xf32>
    %560 = arith.mulf %555, %559 : vector<8x128xf32>
    %cst_89 = arith.constant 2.000000e+00 : f32
    %561 = vector.broadcast %cst_89 : f32 to vector<8x128xf32>
    %562 = arith.subf %561, %560 : vector<8x128xf32>
    %563 = arith.mulf %559, %562 : vector<8x128xf32>
    %564 = arith.mulf %558, %563 : vector<8x128xf32>
    %cst_90 = arith.constant 0.000000e+00 : f32
    %565 = vector.broadcast %cst_90 : f32 to vector<8x128xf32>
    %566 = arith.cmpf oge, %564, %565 : vector<8x128xf32>
    %cst_91 = arith.constant 0.000000e+00 : f32
    %567 = vector.broadcast %cst_91 : f32 to vector<8x128xf32>
    %568 = arith.subf %567, %54 : vector<8x128xf32>
    %569 = arith.select %566, %54, %568 : vector<8x128xi1>, vector<8x128xf32>
    %570 = math.absf %564 : vector<8x128xf32>
    %571 = arith.mulf %564, %564 : vector<8x128xf32>
    %cst_92 = arith.constant 1.000000e+00 : f32
    %572 = vector.broadcast %cst_92 : f32 to vector<8x128xf32>
    %573 = arith.addf %572, %571 : vector<8x128xf32>
    %574 = math.sqrt %573 : vector<8x128xf32>
    %575 = arith.addf %570, %574 : vector<8x128xf32>
    %576 = tpu.reciprocal %575 {approx = true} : vector<8x128xf32> -> vector<8x128xf32>
    %577 = arith.mulf %575, %576 : vector<8x128xf32>
    %cst_93 = arith.constant 2.000000e+00 : f32
    %578 = vector.broadcast %cst_93 : f32 to vector<8x128xf32>
    %579 = arith.subf %578, %577 : vector<8x128xf32>
    %580 = arith.mulf %576, %579 : vector<8x128xf32>
    %581 = arith.mulf %569, %580 : vector<8x128xf32>
    %582 = arith.select %554, %55, %581 : vector<8x128xi1>, vector<8x128xf32>
    %583 = arith.mulf %582, %582 : vector<8x128xf32>
    %cst_94 = arith.constant 1.000000e+00 : f32
    %584 = vector.broadcast %cst_94 : f32 to vector<8x128xf32>
    %585 = arith.addf %584, %583 : vector<8x128xf32>
    %586 = math.rsqrt %585 : vector<8x128xf32>
    %587 = arith.mulf %582, %586 : vector<8x128xf32>
    %588 = arith.mulf %582, %524 : vector<8x128xf32>
    %589 = arith.subf %519, %588 : vector<8x128xf32>
    %590 = arith.mulf %582, %524 : vector<8x128xf32>
    %591 = arith.addf %451, %590 : vector<8x128xf32>
    %592 = arith.mulf %586, %55 : vector<8x128xf32>
    %593 = arith.mulf %587, %527 : vector<8x128xf32>
    %594 = arith.subf %592, %593 : vector<8x128xf32>
    %595 = arith.mulf %587, %55 : vector<8x128xf32>
    %596 = arith.mulf %586, %527 : vector<8x128xf32>
    %597 = arith.addf %595, %596 : vector<8x128xf32>
    %598 = arith.mulf %586, %530 : vector<8x128xf32>
    %599 = arith.mulf %587, %463 : vector<8x128xf32>
    %600 = arith.subf %598, %599 : vector<8x128xf32>
    %601 = arith.mulf %587, %530 : vector<8x128xf32>
    %602 = arith.mulf %586, %463 : vector<8x128xf32>
    %603 = arith.addf %601, %602 : vector<8x128xf32>
    %604 = arith.mulf %586, %536 : vector<8x128xf32>
    %605 = arith.mulf %587, %469 : vector<8x128xf32>
    %606 = arith.subf %604, %605 : vector<8x128xf32>
    %607 = arith.mulf %587, %536 : vector<8x128xf32>
    %608 = arith.mulf %586, %469 : vector<8x128xf32>
    %609 = arith.addf %607, %608 : vector<8x128xf32>
    %610 = arith.mulf %586, %542 : vector<8x128xf32>
    %611 = arith.mulf %587, %475 : vector<8x128xf32>
    %612 = arith.subf %610, %611 : vector<8x128xf32>
    %613 = arith.mulf %587, %542 : vector<8x128xf32>
    %614 = arith.mulf %586, %475 : vector<8x128xf32>
    %615 = arith.addf %613, %614 : vector<8x128xf32>
    %616 = math.absf %597 : vector<8x128xf32>
    %617 = math.absf %521 : vector<8x128xf32>
    %618 = math.absf %591 : vector<8x128xf32>
    %619 = arith.addf %617, %618 : vector<8x128xf32>
    %cst_95 = arith.constant 9.99999996E-13 : f32
    %620 = vector.broadcast %cst_95 : f32 to vector<8x128xf32>
    %621 = arith.mulf %620, %619 : vector<8x128xf32>
    %cst_96 = arith.constant 1.000000e-30 : f32
    %622 = vector.broadcast %cst_96 : f32 to vector<8x128xf32>
    %623 = arith.addf %622, %621 : vector<8x128xf32>
    %624 = arith.cmpf ole, %616, %623 : vector<8x128xf32>
    %625 = arith.select %624, %54, %597 : vector<8x128xi1>, vector<8x128xf32>
    %626 = arith.subf %591, %521 : vector<8x128xf32>
    %cst_97 = arith.constant 5.000000e-01 : f32
    %627 = vector.broadcast %cst_97 : f32 to vector<8x128xf32>
    %628 = arith.mulf %626, %627 : vector<8x128xf32>
    %629 = tpu.reciprocal %625 {approx = true} : vector<8x128xf32> -> vector<8x128xf32>
    %630 = arith.mulf %625, %629 : vector<8x128xf32>
    %cst_98 = arith.constant 2.000000e+00 : f32
    %631 = vector.broadcast %cst_98 : f32 to vector<8x128xf32>
    %632 = arith.subf %631, %630 : vector<8x128xf32>
    %633 = arith.mulf %629, %632 : vector<8x128xf32>
    %634 = arith.mulf %628, %633 : vector<8x128xf32>
    %cst_99 = arith.constant 0.000000e+00 : f32
    %635 = vector.broadcast %cst_99 : f32 to vector<8x128xf32>
    %636 = arith.cmpf oge, %634, %635 : vector<8x128xf32>
    %cst_100 = arith.constant 0.000000e+00 : f32
    %637 = vector.broadcast %cst_100 : f32 to vector<8x128xf32>
    %638 = arith.subf %637, %54 : vector<8x128xf32>
    %639 = arith.select %636, %54, %638 : vector<8x128xi1>, vector<8x128xf32>
    %640 = math.absf %634 : vector<8x128xf32>
    %641 = arith.mulf %634, %634 : vector<8x128xf32>
    %cst_101 = arith.constant 1.000000e+00 : f32
    %642 = vector.broadcast %cst_101 : f32 to vector<8x128xf32>
    %643 = arith.addf %642, %641 : vector<8x128xf32>
    %644 = math.sqrt %643 : vector<8x128xf32>
    %645 = arith.addf %640, %644 : vector<8x128xf32>
    %646 = tpu.reciprocal %645 {approx = true} : vector<8x128xf32> -> vector<8x128xf32>
    %647 = arith.mulf %645, %646 : vector<8x128xf32>
    %cst_102 = arith.constant 2.000000e+00 : f32
    %648 = vector.broadcast %cst_102 : f32 to vector<8x128xf32>
    %649 = arith.subf %648, %647 : vector<8x128xf32>
    %650 = arith.mulf %646, %649 : vector<8x128xf32>
    %651 = arith.mulf %639, %650 : vector<8x128xf32>
    %652 = arith.select %624, %55, %651 : vector<8x128xi1>, vector<8x128xf32>
    %653 = arith.mulf %652, %652 : vector<8x128xf32>
    %cst_103 = arith.constant 1.000000e+00 : f32
    %654 = vector.broadcast %cst_103 : f32 to vector<8x128xf32>
    %655 = arith.addf %654, %653 : vector<8x128xf32>
    %656 = math.rsqrt %655 : vector<8x128xf32>
    %657 = arith.mulf %652, %656 : vector<8x128xf32>
    %658 = arith.mulf %652, %597 : vector<8x128xf32>
    %659 = arith.subf %521, %658 : vector<8x128xf32>
    %660 = arith.mulf %652, %597 : vector<8x128xf32>
    %661 = arith.addf %591, %660 : vector<8x128xf32>
    %662 = arith.mulf %656, %594 : vector<8x128xf32>
    %663 = arith.mulf %657, %55 : vector<8x128xf32>
    %664 = arith.subf %662, %663 : vector<8x128xf32>
    %665 = arith.mulf %657, %594 : vector<8x128xf32>
    %666 = arith.mulf %656, %55 : vector<8x128xf32>
    %667 = arith.addf %665, %666 : vector<8x128xf32>
    %668 = arith.mulf %656, %533 : vector<8x128xf32>
    %669 = arith.mulf %657, %603 : vector<8x128xf32>
    %670 = arith.subf %668, %669 : vector<8x128xf32>
    %671 = arith.mulf %657, %533 : vector<8x128xf32>
    %672 = arith.mulf %656, %603 : vector<8x128xf32>
    %673 = arith.addf %671, %672 : vector<8x128xf32>
    %674 = arith.mulf %656, %539 : vector<8x128xf32>
    %675 = arith.mulf %657, %609 : vector<8x128xf32>
    %676 = arith.subf %674, %675 : vector<8x128xf32>
    %677 = arith.mulf %657, %539 : vector<8x128xf32>
    %678 = arith.mulf %656, %609 : vector<8x128xf32>
    %679 = arith.addf %677, %678 : vector<8x128xf32>
    %680 = arith.mulf %656, %545 : vector<8x128xf32>
    %681 = arith.mulf %657, %615 : vector<8x128xf32>
    %682 = arith.subf %680, %681 : vector<8x128xf32>
    %683 = arith.mulf %657, %545 : vector<8x128xf32>
    %684 = arith.mulf %656, %615 : vector<8x128xf32>
    %685 = arith.addf %683, %684 : vector<8x128xf32>
    %686 = math.absf %664 : vector<8x128xf32>
    %687 = math.absf %589 : vector<8x128xf32>
    %688 = math.absf %659 : vector<8x128xf32>
    %689 = arith.addf %687, %688 : vector<8x128xf32>
    %cst_104 = arith.constant 9.99999996E-13 : f32
    %690 = vector.broadcast %cst_104 : f32 to vector<8x128xf32>
    %691 = arith.mulf %690, %689 : vector<8x128xf32>
    %cst_105 = arith.constant 1.000000e-30 : f32
    %692 = vector.broadcast %cst_105 : f32 to vector<8x128xf32>
    %693 = arith.addf %692, %691 : vector<8x128xf32>
    %694 = arith.cmpf ole, %686, %693 : vector<8x128xf32>
    %695 = arith.select %694, %54, %664 : vector<8x128xi1>, vector<8x128xf32>
    %696 = arith.subf %659, %589 : vector<8x128xf32>
    %cst_106 = arith.constant 5.000000e-01 : f32
    %697 = vector.broadcast %cst_106 : f32 to vector<8x128xf32>
    %698 = arith.mulf %696, %697 : vector<8x128xf32>
    %699 = tpu.reciprocal %695 {approx = true} : vector<8x128xf32> -> vector<8x128xf32>
    %700 = arith.mulf %695, %699 : vector<8x128xf32>
    %cst_107 = arith.constant 2.000000e+00 : f32
    %701 = vector.broadcast %cst_107 : f32 to vector<8x128xf32>
    %702 = arith.subf %701, %700 : vector<8x128xf32>
    %703 = arith.mulf %699, %702 : vector<8x128xf32>
    %704 = arith.mulf %698, %703 : vector<8x128xf32>
    %cst_108 = arith.constant 0.000000e+00 : f32
    %705 = vector.broadcast %cst_108 : f32 to vector<8x128xf32>
    %706 = arith.cmpf oge, %704, %705 : vector<8x128xf32>
    %cst_109 = arith.constant 0.000000e+00 : f32
    %707 = vector.broadcast %cst_109 : f32 to vector<8x128xf32>
    %708 = arith.subf %707, %54 : vector<8x128xf32>
    %709 = arith.select %706, %54, %708 : vector<8x128xi1>, vector<8x128xf32>
    %710 = math.absf %704 : vector<8x128xf32>
    %711 = arith.mulf %704, %704 : vector<8x128xf32>
    %cst_110 = arith.constant 1.000000e+00 : f32
    %712 = vector.broadcast %cst_110 : f32 to vector<8x128xf32>
    %713 = arith.addf %712, %711 : vector<8x128xf32>
    %714 = math.sqrt %713 : vector<8x128xf32>
    %715 = arith.addf %710, %714 : vector<8x128xf32>
    %716 = tpu.reciprocal %715 {approx = true} : vector<8x128xf32> -> vector<8x128xf32>
    %717 = arith.mulf %715, %716 : vector<8x128xf32>
    %cst_111 = arith.constant 2.000000e+00 : f32
    %718 = vector.broadcast %cst_111 : f32 to vector<8x128xf32>
    %719 = arith.subf %718, %717 : vector<8x128xf32>
    %720 = arith.mulf %716, %719 : vector<8x128xf32>
    %721 = arith.mulf %709, %720 : vector<8x128xf32>
    %722 = arith.select %694, %55, %721 : vector<8x128xi1>, vector<8x128xf32>
    %723 = arith.mulf %722, %722 : vector<8x128xf32>
    %cst_112 = arith.constant 1.000000e+00 : f32
    %724 = vector.broadcast %cst_112 : f32 to vector<8x128xf32>
    %725 = arith.addf %724, %723 : vector<8x128xf32>
    %726 = math.rsqrt %725 : vector<8x128xf32>
    %727 = arith.mulf %722, %726 : vector<8x128xf32>
    %728 = arith.mulf %722, %664 : vector<8x128xf32>
    %729 = arith.subf %589, %728 : vector<8x128xf32>
    %730 = arith.mulf %722, %664 : vector<8x128xf32>
    %731 = arith.addf %659, %730 : vector<8x128xf32>
    %732 = arith.mulf %726, %667 : vector<8x128xf32>
    %733 = arith.mulf %727, %55 : vector<8x128xf32>
    %734 = arith.subf %732, %733 : vector<8x128xf32>
    %735 = arith.mulf %727, %667 : vector<8x128xf32>
    %736 = arith.mulf %726, %55 : vector<8x128xf32>
    %737 = arith.addf %735, %736 : vector<8x128xf32>
    %738 = arith.mulf %726, %600 : vector<8x128xf32>
    %739 = arith.mulf %727, %670 : vector<8x128xf32>
    %740 = arith.subf %738, %739 : vector<8x128xf32>
    %741 = arith.mulf %727, %600 : vector<8x128xf32>
    %742 = arith.mulf %726, %670 : vector<8x128xf32>
    %743 = arith.addf %741, %742 : vector<8x128xf32>
    %744 = arith.mulf %726, %606 : vector<8x128xf32>
    %745 = arith.mulf %727, %676 : vector<8x128xf32>
    %746 = arith.subf %744, %745 : vector<8x128xf32>
    %747 = arith.mulf %727, %606 : vector<8x128xf32>
    %748 = arith.mulf %726, %676 : vector<8x128xf32>
    %749 = arith.addf %747, %748 : vector<8x128xf32>
    %750 = arith.mulf %726, %612 : vector<8x128xf32>
    %751 = arith.mulf %727, %682 : vector<8x128xf32>
    %752 = arith.subf %750, %751 : vector<8x128xf32>
    %753 = arith.mulf %727, %612 : vector<8x128xf32>
    %754 = arith.mulf %726, %682 : vector<8x128xf32>
    %755 = arith.addf %753, %754 : vector<8x128xf32>
    %756 = math.absf %734 : vector<8x128xf32>
    %757 = math.absf %729 : vector<8x128xf32>
    %758 = math.absf %661 : vector<8x128xf32>
    %759 = arith.addf %757, %758 : vector<8x128xf32>
    %cst_113 = arith.constant 9.99999996E-13 : f32
    %760 = vector.broadcast %cst_113 : f32 to vector<8x128xf32>
    %761 = arith.mulf %760, %759 : vector<8x128xf32>
    %cst_114 = arith.constant 1.000000e-30 : f32
    %762 = vector.broadcast %cst_114 : f32 to vector<8x128xf32>
    %763 = arith.addf %762, %761 : vector<8x128xf32>
    %764 = arith.cmpf ole, %756, %763 : vector<8x128xf32>
    %765 = arith.select %764, %54, %734 : vector<8x128xi1>, vector<8x128xf32>
    %766 = arith.subf %661, %729 : vector<8x128xf32>
    %cst_115 = arith.constant 5.000000e-01 : f32
    %767 = vector.broadcast %cst_115 : f32 to vector<8x128xf32>
    %768 = arith.mulf %766, %767 : vector<8x128xf32>
    %769 = tpu.reciprocal %765 {approx = true} : vector<8x128xf32> -> vector<8x128xf32>
    %770 = arith.mulf %765, %769 : vector<8x128xf32>
    %cst_116 = arith.constant 2.000000e+00 : f32
    %771 = vector.broadcast %cst_116 : f32 to vector<8x128xf32>
    %772 = arith.subf %771, %770 : vector<8x128xf32>
    %773 = arith.mulf %769, %772 : vector<8x128xf32>
    %774 = arith.mulf %768, %773 : vector<8x128xf32>
    %cst_117 = arith.constant 0.000000e+00 : f32
    %775 = vector.broadcast %cst_117 : f32 to vector<8x128xf32>
    %776 = arith.cmpf oge, %774, %775 : vector<8x128xf32>
    %cst_118 = arith.constant 0.000000e+00 : f32
    %777 = vector.broadcast %cst_118 : f32 to vector<8x128xf32>
    %778 = arith.subf %777, %54 : vector<8x128xf32>
    %779 = arith.select %776, %54, %778 : vector<8x128xi1>, vector<8x128xf32>
    %780 = math.absf %774 : vector<8x128xf32>
    %781 = arith.mulf %774, %774 : vector<8x128xf32>
    %cst_119 = arith.constant 1.000000e+00 : f32
    %782 = vector.broadcast %cst_119 : f32 to vector<8x128xf32>
    %783 = arith.addf %782, %781 : vector<8x128xf32>
    %784 = math.sqrt %783 : vector<8x128xf32>
    %785 = arith.addf %780, %784 : vector<8x128xf32>
    %786 = tpu.reciprocal %785 {approx = true} : vector<8x128xf32> -> vector<8x128xf32>
    %787 = arith.mulf %785, %786 : vector<8x128xf32>
    %cst_120 = arith.constant 2.000000e+00 : f32
    %788 = vector.broadcast %cst_120 : f32 to vector<8x128xf32>
    %789 = arith.subf %788, %787 : vector<8x128xf32>
    %790 = arith.mulf %786, %789 : vector<8x128xf32>
    %791 = arith.mulf %779, %790 : vector<8x128xf32>
    %792 = arith.select %764, %55, %791 : vector<8x128xi1>, vector<8x128xf32>
    %793 = arith.mulf %792, %792 : vector<8x128xf32>
    %cst_121 = arith.constant 1.000000e+00 : f32
    %794 = vector.broadcast %cst_121 : f32 to vector<8x128xf32>
    %795 = arith.addf %794, %793 : vector<8x128xf32>
    %796 = math.rsqrt %795 : vector<8x128xf32>
    %797 = arith.mulf %792, %796 : vector<8x128xf32>
    %798 = arith.mulf %792, %734 : vector<8x128xf32>
    %799 = arith.subf %729, %798 : vector<8x128xf32>
    %800 = arith.mulf %792, %734 : vector<8x128xf32>
    %801 = arith.addf %661, %800 : vector<8x128xf32>
    %802 = arith.mulf %797, %55 : vector<8x128xf32>
    %803 = arith.mulf %796, %737 : vector<8x128xf32>
    %804 = arith.addf %802, %803 : vector<8x128xf32>
    %805 = arith.mulf %796, %740 : vector<8x128xf32>
    %806 = arith.mulf %797, %673 : vector<8x128xf32>
    %807 = arith.subf %805, %806 : vector<8x128xf32>
    %808 = arith.mulf %797, %740 : vector<8x128xf32>
    %809 = arith.mulf %796, %673 : vector<8x128xf32>
    %810 = arith.addf %808, %809 : vector<8x128xf32>
    %811 = arith.mulf %796, %746 : vector<8x128xf32>
    %812 = arith.mulf %797, %679 : vector<8x128xf32>
    %813 = arith.subf %811, %812 : vector<8x128xf32>
    %814 = arith.mulf %797, %746 : vector<8x128xf32>
    %815 = arith.mulf %796, %679 : vector<8x128xf32>
    %816 = arith.addf %814, %815 : vector<8x128xf32>
    %817 = arith.mulf %796, %752 : vector<8x128xf32>
    %818 = arith.mulf %797, %685 : vector<8x128xf32>
    %819 = arith.subf %817, %818 : vector<8x128xf32>
    %820 = arith.mulf %797, %752 : vector<8x128xf32>
    %821 = arith.mulf %796, %685 : vector<8x128xf32>
    %822 = arith.addf %820, %821 : vector<8x128xf32>
    %823 = math.absf %804 : vector<8x128xf32>
    %824 = math.absf %731 : vector<8x128xf32>
    %825 = math.absf %801 : vector<8x128xf32>
    %826 = arith.addf %824, %825 : vector<8x128xf32>
    %cst_122 = arith.constant 9.99999996E-13 : f32
    %827 = vector.broadcast %cst_122 : f32 to vector<8x128xf32>
    %828 = arith.mulf %827, %826 : vector<8x128xf32>
    %cst_123 = arith.constant 1.000000e-30 : f32
    %829 = vector.broadcast %cst_123 : f32 to vector<8x128xf32>
    %830 = arith.addf %829, %828 : vector<8x128xf32>
    %831 = arith.cmpf ole, %823, %830 : vector<8x128xf32>
    %832 = arith.select %831, %54, %804 : vector<8x128xi1>, vector<8x128xf32>
    %833 = arith.subf %801, %731 : vector<8x128xf32>
    %cst_124 = arith.constant 5.000000e-01 : f32
    %834 = vector.broadcast %cst_124 : f32 to vector<8x128xf32>
    %835 = arith.mulf %833, %834 : vector<8x128xf32>
    %836 = tpu.reciprocal %832 {approx = true} : vector<8x128xf32> -> vector<8x128xf32>
    %837 = arith.mulf %832, %836 : vector<8x128xf32>
    %cst_125 = arith.constant 2.000000e+00 : f32
    %838 = vector.broadcast %cst_125 : f32 to vector<8x128xf32>
    %839 = arith.subf %838, %837 : vector<8x128xf32>
    %840 = arith.mulf %836, %839 : vector<8x128xf32>
    %841 = arith.mulf %835, %840 : vector<8x128xf32>
    %cst_126 = arith.constant 0.000000e+00 : f32
    %842 = vector.broadcast %cst_126 : f32 to vector<8x128xf32>
    %843 = arith.cmpf oge, %841, %842 : vector<8x128xf32>
    %cst_127 = arith.constant 0.000000e+00 : f32
    %844 = vector.broadcast %cst_127 : f32 to vector<8x128xf32>
    %845 = arith.subf %844, %54 : vector<8x128xf32>
    %846 = arith.select %843, %54, %845 : vector<8x128xi1>, vector<8x128xf32>
    %847 = math.absf %841 : vector<8x128xf32>
    %848 = arith.mulf %841, %841 : vector<8x128xf32>
    %cst_128 = arith.constant 1.000000e+00 : f32
    %849 = vector.broadcast %cst_128 : f32 to vector<8x128xf32>
    %850 = arith.addf %849, %848 : vector<8x128xf32>
    %851 = math.sqrt %850 : vector<8x128xf32>
    %852 = arith.addf %847, %851 : vector<8x128xf32>
    %853 = tpu.reciprocal %852 {approx = true} : vector<8x128xf32> -> vector<8x128xf32>
    %854 = arith.mulf %852, %853 : vector<8x128xf32>
    %cst_129 = arith.constant 2.000000e+00 : f32
    %855 = vector.broadcast %cst_129 : f32 to vector<8x128xf32>
    %856 = arith.subf %855, %854 : vector<8x128xf32>
    %857 = arith.mulf %853, %856 : vector<8x128xf32>
    %858 = arith.mulf %846, %857 : vector<8x128xf32>
    %859 = arith.select %831, %55, %858 : vector<8x128xi1>, vector<8x128xf32>
    %860 = arith.mulf %859, %859 : vector<8x128xf32>
    %cst_130 = arith.constant 1.000000e+00 : f32
    %861 = vector.broadcast %cst_130 : f32 to vector<8x128xf32>
    %862 = arith.addf %861, %860 : vector<8x128xf32>
    %863 = math.rsqrt %862 : vector<8x128xf32>
    %864 = arith.mulf %859, %863 : vector<8x128xf32>
    %865 = arith.mulf %859, %804 : vector<8x128xf32>
    %866 = arith.subf %731, %865 : vector<8x128xf32>
    %867 = arith.mulf %859, %804 : vector<8x128xf32>
    %868 = arith.addf %801, %867 : vector<8x128xf32>
    %869 = arith.mulf %863, %743 : vector<8x128xf32>
    %870 = arith.mulf %864, %810 : vector<8x128xf32>
    %871 = arith.subf %869, %870 : vector<8x128xf32>
    %872 = arith.mulf %864, %743 : vector<8x128xf32>
    %873 = arith.mulf %863, %810 : vector<8x128xf32>
    %874 = arith.addf %872, %873 : vector<8x128xf32>
    %875 = arith.mulf %863, %749 : vector<8x128xf32>
    %876 = arith.mulf %864, %816 : vector<8x128xf32>
    %877 = arith.subf %875, %876 : vector<8x128xf32>
    %878 = arith.mulf %864, %749 : vector<8x128xf32>
    %879 = arith.mulf %863, %816 : vector<8x128xf32>
    %880 = arith.addf %878, %879 : vector<8x128xf32>
    %881 = arith.mulf %863, %755 : vector<8x128xf32>
    %882 = arith.mulf %864, %822 : vector<8x128xf32>
    %883 = arith.subf %881, %882 : vector<8x128xf32>
    %884 = arith.mulf %864, %755 : vector<8x128xf32>
    %885 = arith.mulf %863, %822 : vector<8x128xf32>
    %886 = arith.addf %884, %885 : vector<8x128xf32>
    %887 = arith.cmpf ogt, %799, %866 : vector<8x128xf32>
    %888 = arith.select %887, %866, %799 : vector<8x128xi1>, vector<8x128xf32>
    %889 = arith.select %887, %799, %866 : vector<8x128xi1>, vector<8x128xf32>
    %890 = arith.select %887, %871, %807 : vector<8x128xi1>, vector<8x128xf32>
    %891 = arith.select %887, %877, %813 : vector<8x128xi1>, vector<8x128xf32>
    %892 = arith.select %887, %883, %819 : vector<8x128xi1>, vector<8x128xf32>
    %893 = arith.select %887, %807, %871 : vector<8x128xi1>, vector<8x128xf32>
    %894 = arith.select %887, %813, %877 : vector<8x128xi1>, vector<8x128xf32>
    %895 = arith.select %887, %819, %883 : vector<8x128xi1>, vector<8x128xf32>
    %896 = arith.cmpf ogt, %889, %868 : vector<8x128xf32>
    %897 = arith.select %896, %868, %889 : vector<8x128xi1>, vector<8x128xf32>
    %898 = arith.select %896, %889, %868 : vector<8x128xi1>, vector<8x128xf32>
    %899 = arith.select %896, %874, %893 : vector<8x128xi1>, vector<8x128xf32>
    %900 = arith.select %896, %880, %894 : vector<8x128xi1>, vector<8x128xf32>
    %901 = arith.select %896, %886, %895 : vector<8x128xi1>, vector<8x128xf32>
    %902 = arith.select %896, %893, %874 : vector<8x128xi1>, vector<8x128xf32>
    %903 = arith.select %896, %894, %880 : vector<8x128xi1>, vector<8x128xf32>
    %904 = arith.select %896, %895, %886 : vector<8x128xi1>, vector<8x128xf32>
    %905 = arith.cmpf ogt, %888, %897 : vector<8x128xf32>
    %906 = arith.select %905, %897, %888 : vector<8x128xi1>, vector<8x128xf32>
    %907 = arith.select %905, %888, %897 : vector<8x128xi1>, vector<8x128xf32>
    %908 = arith.select %905, %899, %890 : vector<8x128xi1>, vector<8x128xf32>
    %909 = arith.select %905, %900, %891 : vector<8x128xi1>, vector<8x128xf32>
    %910 = arith.select %905, %901, %892 : vector<8x128xi1>, vector<8x128xf32>
    %911 = arith.select %905, %890, %899 : vector<8x128xi1>, vector<8x128xf32>
    %912 = arith.select %905, %891, %900 : vector<8x128xi1>, vector<8x128xf32>
    %913 = arith.select %905, %892, %901 : vector<8x128xi1>, vector<8x128xf32>
    %cst_131 = arith.constant 0.000000e+00 : f32
    %914 = vector.broadcast %cst_131 : f32 to vector<8x128xf32>
    %915 = arith.cmpf oeq, %898, %914 : vector<8x128xf32>
    %916 = arith.select %915, %54, %898 : vector<8x128xi1>, vector<8x128xf32>
    %cst_132 = arith.constant 0.000000e+00 : f32
    %917 = vector.broadcast %cst_132 : f32 to vector<8x128xf32>
    %918 = arith.cmpf oeq, %898, %917 : vector<8x128xf32>
    %919 = tpu.reciprocal %916 {approx = true} : vector<8x128xf32> -> vector<8x128xf32>
    %920 = arith.mulf %916, %919 : vector<8x128xf32>
    %cst_133 = arith.constant 2.000000e+00 : f32
    %921 = vector.broadcast %cst_133 : f32 to vector<8x128xf32>
    %922 = arith.subf %921, %920 : vector<8x128xf32>
    %923 = arith.mulf %919, %922 : vector<8x128xf32>
    %924 = arith.mulf %907, %923 : vector<8x128xf32>
    %cst_134 = arith.constant 1.000000e+00 : f32
    %925 = vector.broadcast %cst_134 : f32 to vector<8x128xf32>
    %926 = arith.subf %925, %924 : vector<8x128xf32>
    %927 = arith.select %918, %55, %926 : vector<8x128xi1>, vector<8x128xf32>
    %cst_135 = arith.constant 0.000000e+00 : f32
    %928 = vector.broadcast %cst_135 : f32 to vector<8x128xf32>
    %929 = arith.addf %898, %928 : vector<8x128xf32>
    %cst_136 = arith.constant 0.000000e+00 : f32
    %930 = vector.broadcast %cst_136 : f32 to vector<8x128xf32>
    %931 = arith.cmpf oeq, %929, %930 : vector<8x128xf32>
    %932 = arith.select %931, %54, %929 : vector<8x128xi1>, vector<8x128xf32>
    %933 = tpu.reciprocal %932 {approx = true} : vector<8x128xf32> -> vector<8x128xf32>
    %934 = arith.mulf %932, %933 : vector<8x128xf32>
    %cst_137 = arith.constant 2.000000e+00 : f32
    %935 = vector.broadcast %cst_137 : f32 to vector<8x128xf32>
    %936 = arith.subf %935, %934 : vector<8x128xf32>
    %937 = arith.mulf %933, %936 : vector<8x128xf32>
    %cst_138 = arith.constant 0.000000e+00 : f32
    %938 = vector.broadcast %cst_138 : f32 to vector<8x128xf32>
    %939 = arith.addf %906, %938 : vector<8x128xf32>
    %940 = arith.mulf %939, %937 : vector<8x128xf32>
    %cst_139 = arith.constant 0.000000e+00 : f32
    %941 = vector.broadcast %cst_139 : f32 to vector<8x128xf32>
    %942 = arith.addf %907, %941 : vector<8x128xf32>
    %943 = arith.mulf %942, %937 : vector<8x128xf32>
    %cst_140 = arith.constant 0.000000e+00 : f32
    %944 = vector.broadcast %cst_140 : f32 to vector<8x128xf32>
    %945 = arith.addf %898, %944 : vector<8x128xf32>
    %946 = arith.mulf %945, %937 : vector<8x128xf32>
    %cst_141 = arith.constant 2.000000e+00 : f32
    %947 = vector.broadcast %cst_141 : f32 to vector<8x128xf32>
    %948 = arith.cmpf olt, %1, %947 : vector<8x128xf32>
    %949 = arith.mulf %940, %908 : vector<8x128xf32>
    %950 = arith.mulf %949, %908 : vector<8x128xf32>
    %951 = arith.mulf %943, %911 : vector<8x128xf32>
    %952 = arith.mulf %951, %911 : vector<8x128xf32>
    %953 = arith.addf %950, %952 : vector<8x128xf32>
    %954 = arith.mulf %946, %902 : vector<8x128xf32>
    %955 = arith.mulf %954, %902 : vector<8x128xf32>
    %956 = arith.addf %953, %955 : vector<8x128xf32>
    %cst_142 = arith.constant 1.000000e+00 : f32
    %957 = vector.broadcast %cst_142 : f32 to vector<8x128xf32>
    %958 = arith.mulf %957, %956 : vector<8x128xf32>
    %cst_143 = arith.constant 0.000000e+00 : f32
    %959 = vector.broadcast %cst_143 : f32 to vector<8x128xf32>
    %960 = arith.mulf %959, %54 : vector<8x128xf32>
    %cst_144 = arith.constant 0.000000e+00 : f32
    %961 = vector.broadcast %cst_144 : f32 to vector<8x128xf32>
    %962 = arith.addf %958, %961 : vector<8x128xf32>
    %963 = arith.select %948, %960, %962 : vector<8x128xi1>, vector<8x128xf32>
    %964 = arith.mulf %940, %908 : vector<8x128xf32>
    %965 = arith.mulf %964, %909 : vector<8x128xf32>
    %966 = arith.mulf %943, %911 : vector<8x128xf32>
    %967 = arith.mulf %966, %912 : vector<8x128xf32>
    %968 = arith.addf %965, %967 : vector<8x128xf32>
    %969 = arith.mulf %946, %902 : vector<8x128xf32>
    %970 = arith.mulf %969, %903 : vector<8x128xf32>
    %971 = arith.addf %968, %970 : vector<8x128xf32>
    %cst_145 = arith.constant 1.000000e+00 : f32
    %972 = vector.broadcast %cst_145 : f32 to vector<8x128xf32>
    %973 = arith.mulf %972, %971 : vector<8x128xf32>
    %cst_146 = arith.constant 0.000000e+00 : f32
    %974 = vector.broadcast %cst_146 : f32 to vector<8x128xf32>
    %975 = arith.mulf %974, %54 : vector<8x128xf32>
    %cst_147 = arith.constant 0.000000e+00 : f32
    %976 = vector.broadcast %cst_147 : f32 to vector<8x128xf32>
    %977 = arith.addf %973, %976 : vector<8x128xf32>
    %978 = arith.select %948, %975, %977 : vector<8x128xi1>, vector<8x128xf32>
    %979 = arith.mulf %940, %908 : vector<8x128xf32>
    %980 = arith.mulf %979, %910 : vector<8x128xf32>
    %981 = arith.mulf %943, %911 : vector<8x128xf32>
    %982 = arith.mulf %981, %913 : vector<8x128xf32>
    %983 = arith.addf %980, %982 : vector<8x128xf32>
    %984 = arith.mulf %946, %902 : vector<8x128xf32>
    %985 = arith.mulf %984, %904 : vector<8x128xf32>
    %986 = arith.addf %983, %985 : vector<8x128xf32>
    %cst_148 = arith.constant 1.000000e+00 : f32
    %987 = vector.broadcast %cst_148 : f32 to vector<8x128xf32>
    %988 = arith.mulf %987, %986 : vector<8x128xf32>
    %cst_149 = arith.constant 0.000000e+00 : f32
    %989 = vector.broadcast %cst_149 : f32 to vector<8x128xf32>
    %990 = arith.mulf %989, %54 : vector<8x128xf32>
    %cst_150 = arith.constant 0.000000e+00 : f32
    %991 = vector.broadcast %cst_150 : f32 to vector<8x128xf32>
    %992 = arith.addf %988, %991 : vector<8x128xf32>
    %993 = arith.select %948, %990, %992 : vector<8x128xi1>, vector<8x128xf32>
    %994 = arith.mulf %940, %909 : vector<8x128xf32>
    %995 = arith.mulf %994, %909 : vector<8x128xf32>
    %996 = arith.mulf %943, %912 : vector<8x128xf32>
    %997 = arith.mulf %996, %912 : vector<8x128xf32>
    %998 = arith.addf %995, %997 : vector<8x128xf32>
    %999 = arith.mulf %946, %903 : vector<8x128xf32>
    %1000 = arith.mulf %999, %903 : vector<8x128xf32>
    %1001 = arith.addf %998, %1000 : vector<8x128xf32>
    %cst_151 = arith.constant 1.000000e+00 : f32
    %1002 = vector.broadcast %cst_151 : f32 to vector<8x128xf32>
    %1003 = arith.mulf %1002, %1001 : vector<8x128xf32>
    %cst_152 = arith.constant 0.000000e+00 : f32
    %1004 = vector.broadcast %cst_152 : f32 to vector<8x128xf32>
    %1005 = arith.mulf %1004, %54 : vector<8x128xf32>
    %cst_153 = arith.constant 0.000000e+00 : f32
    %1006 = vector.broadcast %cst_153 : f32 to vector<8x128xf32>
    %1007 = arith.addf %1003, %1006 : vector<8x128xf32>
    %1008 = arith.select %948, %1005, %1007 : vector<8x128xi1>, vector<8x128xf32>
    %1009 = arith.mulf %940, %909 : vector<8x128xf32>
    %1010 = arith.mulf %1009, %910 : vector<8x128xf32>
    %1011 = arith.mulf %943, %912 : vector<8x128xf32>
    %1012 = arith.mulf %1011, %913 : vector<8x128xf32>
    %1013 = arith.addf %1010, %1012 : vector<8x128xf32>
    %1014 = arith.mulf %946, %903 : vector<8x128xf32>
    %1015 = arith.mulf %1014, %904 : vector<8x128xf32>
    %1016 = arith.addf %1013, %1015 : vector<8x128xf32>
    %cst_154 = arith.constant 1.000000e+00 : f32
    %1017 = vector.broadcast %cst_154 : f32 to vector<8x128xf32>
    %1018 = arith.mulf %1017, %1016 : vector<8x128xf32>
    %cst_155 = arith.constant 0.000000e+00 : f32
    %1019 = vector.broadcast %cst_155 : f32 to vector<8x128xf32>
    %1020 = arith.mulf %1019, %54 : vector<8x128xf32>
    %cst_156 = arith.constant 0.000000e+00 : f32
    %1021 = vector.broadcast %cst_156 : f32 to vector<8x128xf32>
    %1022 = arith.addf %1018, %1021 : vector<8x128xf32>
    %1023 = arith.select %948, %1020, %1022 : vector<8x128xi1>, vector<8x128xf32>
    %1024 = arith.mulf %940, %910 : vector<8x128xf32>
    %1025 = arith.mulf %1024, %910 : vector<8x128xf32>
    %1026 = arith.mulf %943, %913 : vector<8x128xf32>
    %1027 = arith.mulf %1026, %913 : vector<8x128xf32>
    %1028 = arith.addf %1025, %1027 : vector<8x128xf32>
    %1029 = arith.mulf %946, %904 : vector<8x128xf32>
    %1030 = arith.mulf %1029, %904 : vector<8x128xf32>
    %1031 = arith.addf %1028, %1030 : vector<8x128xf32>
    %cst_157 = arith.constant 1.000000e+00 : f32
    %1032 = vector.broadcast %cst_157 : f32 to vector<8x128xf32>
    %1033 = arith.mulf %1032, %1031 : vector<8x128xf32>
    %cst_158 = arith.constant 0.000000e+00 : f32
    %1034 = vector.broadcast %cst_158 : f32 to vector<8x128xf32>
    %1035 = arith.mulf %1034, %54 : vector<8x128xf32>
    %cst_159 = arith.constant 0.000000e+00 : f32
    %1036 = vector.broadcast %cst_159 : f32 to vector<8x128xf32>
    %1037 = arith.addf %1033, %1036 : vector<8x128xf32>
    %1038 = arith.select %948, %1035, %1037 : vector<8x128xi1>, vector<8x128xf32>
    %1039 = vector.shape_cast %902 : vector<8x128xf32> to vector<1x8x128xf32>
    %1040 = vector.broadcast %1039 : vector<1x8x128xf32> to vector<16x8x128xf32>
    %1041 = arith.mulf %33, %1040 : vector<16x8x128xf32>
    %1042 = vector.shape_cast %903 : vector<8x128xf32> to vector<1x8x128xf32>
    %1043 = vector.broadcast %1042 : vector<1x8x128xf32> to vector<16x8x128xf32>
    %1044 = arith.mulf %37, %1043 : vector<16x8x128xf32>
    %1045 = arith.addf %1041, %1044 : vector<16x8x128xf32>
    %1046 = vector.shape_cast %904 : vector<8x128xf32> to vector<1x8x128xf32>
    %1047 = vector.broadcast %1046 : vector<1x8x128xf32> to vector<16x8x128xf32>
    %1048 = arith.mulf %41, %1047 : vector<16x8x128xf32>
    %1049 = arith.addf %1045, %1048 : vector<16x8x128xf32>
    %1050 = vector.shape_cast %902 : vector<8x128xf32> to vector<1x8x128xf32>
    %1051 = vector.broadcast %1050 : vector<1x8x128xf32> to vector<16x8x128xf32>
    %1052 = arith.mulf %1049, %1051 : vector<16x8x128xf32>
    %1053 = arith.subf %33, %1052 : vector<16x8x128xf32>
    %1054 = vector.shape_cast %903 : vector<8x128xf32> to vector<1x8x128xf32>
    %1055 = vector.broadcast %1054 : vector<1x8x128xf32> to vector<16x8x128xf32>
    %1056 = arith.mulf %1049, %1055 : vector<16x8x128xf32>
    %1057 = arith.subf %37, %1056 : vector<16x8x128xf32>
    %1058 = vector.shape_cast %904 : vector<8x128xf32> to vector<1x8x128xf32>
    %1059 = vector.broadcast %1058 : vector<1x8x128xf32> to vector<16x8x128xf32>
    %1060 = arith.mulf %1049, %1059 : vector<16x8x128xf32>
    %1061 = arith.subf %41, %1060 : vector<16x8x128xf32>
    %1062 = arith.mulf %1053, %1053 : vector<16x8x128xf32>
    %1063 = arith.mulf %1057, %1057 : vector<16x8x128xf32>
    %1064 = arith.addf %1062, %1063 : vector<16x8x128xf32>
    %1065 = arith.mulf %1061, %1061 : vector<16x8x128xf32>
    %1066 = arith.addf %1064, %1065 : vector<16x8x128xf32>
    %1067 = math.sqrt %1066 : vector<16x8x128xf32>
    %1068 = arith.mulf %1049, %1067 : vector<16x8x128xf32>
    %cst_160 = arith.constant dense<0.000000e+00> : vector<8x128xf32>
    %1069 = vector.multi_reduction <add>, %1068, %cst_160 [0] : vector<16x8x128xf32> to vector<8x128xf32>
    %cst_161 = arith.constant 0.000000e+00 : f32
    %1070 = vector.broadcast %cst_161 : f32 to vector<8x128xf32>
    %1071 = arith.cmpf olt, %1069, %1070 : vector<8x128xf32>
    %cst_162 = arith.constant 0.000000e+00 : f32
    %1072 = vector.broadcast %cst_162 : f32 to vector<8x128xf32>
    %1073 = arith.subf %1072, %54 : vector<8x128xf32>
    %1074 = arith.select %1071, %1073, %54 : vector<8x128xi1>, vector<8x128xf32>
    %1075 = arith.mulf %927, %1074 : vector<8x128xf32>
    %1076 = arith.mulf %1075, %902 : vector<8x128xf32>
    %1077 = arith.select %948, %55, %1076 : vector<8x128xi1>, vector<8x128xf32>
    %1078 = arith.mulf %927, %1074 : vector<8x128xf32>
    %1079 = arith.mulf %1078, %903 : vector<8x128xf32>
    %1080 = arith.select %948, %55, %1079 : vector<8x128xi1>, vector<8x128xf32>
    %1081 = arith.mulf %927, %1074 : vector<8x128xf32>
    %1082 = arith.mulf %1081, %904 : vector<8x128xf32>
    %1083 = arith.select %948, %55, %1082 : vector<8x128xi1>, vector<8x128xf32>
    %c0_163 = arith.constant 0 : index
    %c0_164 = arith.constant 0 : index
    %c0_165 = arith.constant 0 : index
    %1084 = vector.load %arg3[%c0_163, %c0_164, %c0_165] : memref<16x8x128xf32, #tpu.memory_space<vmem>>, vector<1x8x128xf32>
    %1085 = vector.shape_cast %1084 : vector<1x8x128xf32> to vector<8x128xf32>
    %1086 = vector.shape_cast %23 : vector<8x128xf32> to vector<1x8x128xf32>
    tpu.vector_store %arg3[%c0_163, %c0_164, %c0_165], %1086 {strides = array<i32>} : memref<16x8x128xf32, #tpu.memory_space<vmem>>, vector<1x8x128xf32>,
    %c1_166 = arith.constant 1 : index
    %c0_167 = arith.constant 0 : index
    %c0_168 = arith.constant 0 : index
    %1087 = vector.load %arg3[%c1_166, %c0_167, %c0_168] : memref<16x8x128xf32, #tpu.memory_space<vmem>>, vector<1x8x128xf32>
    %1088 = vector.shape_cast %1087 : vector<1x8x128xf32> to vector<8x128xf32>
    %1089 = vector.shape_cast %26 : vector<8x128xf32> to vector<1x8x128xf32>
    tpu.vector_store %arg3[%c1_166, %c0_167, %c0_168], %1089 {strides = array<i32>} : memref<16x8x128xf32, #tpu.memory_space<vmem>>, vector<1x8x128xf32>,
    %c2_169 = arith.constant 2 : index
    %c0_170 = arith.constant 0 : index
    %c0_171 = arith.constant 0 : index
    %1090 = vector.load %arg3[%c2_169, %c0_170, %c0_171] : memref<16x8x128xf32, #tpu.memory_space<vmem>>, vector<1x8x128xf32>
    %1091 = vector.shape_cast %1090 : vector<1x8x128xf32> to vector<8x128xf32>
    %1092 = vector.shape_cast %29 : vector<8x128xf32> to vector<1x8x128xf32>
    tpu.vector_store %arg3[%c2_169, %c0_170, %c0_171], %1092 {strides = array<i32>} : memref<16x8x128xf32, #tpu.memory_space<vmem>>, vector<1x8x128xf32>,
    %c3 = arith.constant 3 : index
    %c0_172 = arith.constant 0 : index
    %c0_173 = arith.constant 0 : index
    %1093 = vector.load %arg3[%c3, %c0_172, %c0_173] : memref<16x8x128xf32, #tpu.memory_space<vmem>>, vector<1x8x128xf32>
    %1094 = vector.shape_cast %1093 : vector<1x8x128xf32> to vector<8x128xf32>
    %1095 = vector.shape_cast %963 : vector<8x128xf32> to vector<1x8x128xf32>
    tpu.vector_store %arg3[%c3, %c0_172, %c0_173], %1095 {strides = array<i32>} : memref<16x8x128xf32, #tpu.memory_space<vmem>>, vector<1x8x128xf32>,
    %c4 = arith.constant 4 : index
    %c0_174 = arith.constant 0 : index
    %c0_175 = arith.constant 0 : index
    %1096 = vector.load %arg3[%c4, %c0_174, %c0_175] : memref<16x8x128xf32, #tpu.memory_space<vmem>>, vector<1x8x128xf32>
    %1097 = vector.shape_cast %1096 : vector<1x8x128xf32> to vector<8x128xf32>
    %1098 = vector.shape_cast %978 : vector<8x128xf32> to vector<1x8x128xf32>
    tpu.vector_store %arg3[%c4, %c0_174, %c0_175], %1098 {strides = array<i32>} : memref<16x8x128xf32, #tpu.memory_space<vmem>>, vector<1x8x128xf32>,
    %c5 = arith.constant 5 : index
    %c0_176 = arith.constant 0 : index
    %c0_177 = arith.constant 0 : index
    %1099 = vector.load %arg3[%c5, %c0_176, %c0_177] : memref<16x8x128xf32, #tpu.memory_space<vmem>>, vector<1x8x128xf32>
    %1100 = vector.shape_cast %1099 : vector<1x8x128xf32> to vector<8x128xf32>
    %1101 = vector.shape_cast %993 : vector<8x128xf32> to vector<1x8x128xf32>
    tpu.vector_store %arg3[%c5, %c0_176, %c0_177], %1101 {strides = array<i32>} : memref<16x8x128xf32, #tpu.memory_space<vmem>>, vector<1x8x128xf32>,
    %c6 = arith.constant 6 : index
    %c0_178 = arith.constant 0 : index
    %c0_179 = arith.constant 0 : index
    %1102 = vector.load %arg3[%c6, %c0_178, %c0_179] : memref<16x8x128xf32, #tpu.memory_space<vmem>>, vector<1x8x128xf32>
    %1103 = vector.shape_cast %1102 : vector<1x8x128xf32> to vector<8x128xf32>
    %1104 = vector.shape_cast %978 : vector<8x128xf32> to vector<1x8x128xf32>
    tpu.vector_store %arg3[%c6, %c0_178, %c0_179], %1104 {strides = array<i32>} : memref<16x8x128xf32, #tpu.memory_space<vmem>>, vector<1x8x128xf32>,
    %c7 = arith.constant 7 : index
    %c0_180 = arith.constant 0 : index
    %c0_181 = arith.constant 0 : index
    %1105 = vector.load %arg3[%c7, %c0_180, %c0_181] : memref<16x8x128xf32, #tpu.memory_space<vmem>>, vector<1x8x128xf32>
    %1106 = vector.shape_cast %1105 : vector<1x8x128xf32> to vector<8x128xf32>
    %1107 = vector.shape_cast %1008 : vector<8x128xf32> to vector<1x8x128xf32>
    tpu.vector_store %arg3[%c7, %c0_180, %c0_181], %1107 {strides = array<i32>} : memref<16x8x128xf32, #tpu.memory_space<vmem>>, vector<1x8x128xf32>,
    %c8 = arith.constant 8 : index
    %c0_182 = arith.constant 0 : index
    %c0_183 = arith.constant 0 : index
    %1108 = vector.load %arg3[%c8, %c0_182, %c0_183] : memref<16x8x128xf32, #tpu.memory_space<vmem>>, vector<1x8x128xf32>
    %1109 = vector.shape_cast %1108 : vector<1x8x128xf32> to vector<8x128xf32>
    %1110 = vector.shape_cast %1023 : vector<8x128xf32> to vector<1x8x128xf32>
    tpu.vector_store %arg3[%c8, %c0_182, %c0_183], %1110 {strides = array<i32>} : memref<16x8x128xf32, #tpu.memory_space<vmem>>, vector<1x8x128xf32>,
    %c9 = arith.constant 9 : index
    %c0_184 = arith.constant 0 : index
    %c0_185 = arith.constant 0 : index
    %1111 = vector.load %arg3[%c9, %c0_184, %c0_185] : memref<16x8x128xf32, #tpu.memory_space<vmem>>, vector<1x8x128xf32>
    %1112 = vector.shape_cast %1111 : vector<1x8x128xf32> to vector<8x128xf32>
    %1113 = vector.shape_cast %993 : vector<8x128xf32> to vector<1x8x128xf32>
    tpu.vector_store %arg3[%c9, %c0_184, %c0_185], %1113 {strides = array<i32>} : memref<16x8x128xf32, #tpu.memory_space<vmem>>, vector<1x8x128xf32>,
    %c10 = arith.constant 10 : index
    %c0_186 = arith.constant 0 : index
    %c0_187 = arith.constant 0 : index
    %1114 = vector.load %arg3[%c10, %c0_186, %c0_187] : memref<16x8x128xf32, #tpu.memory_space<vmem>>, vector<1x8x128xf32>
    %1115 = vector.shape_cast %1114 : vector<1x8x128xf32> to vector<8x128xf32>
    %1116 = vector.shape_cast %1023 : vector<8x128xf32> to vector<1x8x128xf32>
    tpu.vector_store %arg3[%c10, %c0_186, %c0_187], %1116 {strides = array<i32>} : memref<16x8x128xf32, #tpu.memory_space<vmem>>, vector<1x8x128xf32>,
    %c11 = arith.constant 11 : index
    %c0_188 = arith.constant 0 : index
    %c0_189 = arith.constant 0 : index
    %1117 = vector.load %arg3[%c11, %c0_188, %c0_189] : memref<16x8x128xf32, #tpu.memory_space<vmem>>, vector<1x8x128xf32>
    %1118 = vector.shape_cast %1117 : vector<1x8x128xf32> to vector<8x128xf32>
    %1119 = vector.shape_cast %1038 : vector<8x128xf32> to vector<1x8x128xf32>
    tpu.vector_store %arg3[%c11, %c0_188, %c0_189], %1119 {strides = array<i32>} : memref<16x8x128xf32, #tpu.memory_space<vmem>>, vector<1x8x128xf32>,
    %c12 = arith.constant 12 : index
    %c0_190 = arith.constant 0 : index
    %c0_191 = arith.constant 0 : index
    %1120 = vector.load %arg3[%c12, %c0_190, %c0_191] : memref<16x8x128xf32, #tpu.memory_space<vmem>>, vector<1x8x128xf32>
    %1121 = vector.shape_cast %1120 : vector<1x8x128xf32> to vector<8x128xf32>
    %1122 = vector.shape_cast %1077 : vector<8x128xf32> to vector<1x8x128xf32>
    tpu.vector_store %arg3[%c12, %c0_190, %c0_191], %1122 {strides = array<i32>} : memref<16x8x128xf32, #tpu.memory_space<vmem>>, vector<1x8x128xf32>,
    %c13 = arith.constant 13 : index
    %c0_192 = arith.constant 0 : index
    %c0_193 = arith.constant 0 : index
    %1123 = vector.load %arg3[%c13, %c0_192, %c0_193] : memref<16x8x128xf32, #tpu.memory_space<vmem>>, vector<1x8x128xf32>
    %1124 = vector.shape_cast %1123 : vector<1x8x128xf32> to vector<8x128xf32>
    %1125 = vector.shape_cast %1080 : vector<8x128xf32> to vector<1x8x128xf32>
    tpu.vector_store %arg3[%c13, %c0_192, %c0_193], %1125 {strides = array<i32>} : memref<16x8x128xf32, #tpu.memory_space<vmem>>, vector<1x8x128xf32>,
    %c14 = arith.constant 14 : index
    %c0_194 = arith.constant 0 : index
    %c0_195 = arith.constant 0 : index
    %1126 = vector.load %arg3[%c14, %c0_194, %c0_195] : memref<16x8x128xf32, #tpu.memory_space<vmem>>, vector<1x8x128xf32>
    %1127 = vector.shape_cast %1126 : vector<1x8x128xf32> to vector<8x128xf32>
    %1128 = vector.shape_cast %1083 : vector<8x128xf32> to vector<1x8x128xf32>
    tpu.vector_store %arg3[%c14, %c0_194, %c0_195], %1128 {strides = array<i32>} : memref<16x8x128xf32, #tpu.memory_space<vmem>>, vector<1x8x128xf32>,
    %c15 = arith.constant 15 : index
    %c0_196 = arith.constant 0 : index
    %c0_197 = arith.constant 0 : index
    %1129 = vector.load %arg3[%c15, %c0_196, %c0_197] : memref<16x8x128xf32, #tpu.memory_space<vmem>>, vector<1x8x128xf32>
    %1130 = vector.shape_cast %1129 : vector<1x8x128xf32> to vector<8x128xf32>
    %1131 = vector.shape_cast %1 : vector<8x128xf32> to vector<1x8x128xf32>
    tpu.vector_store %arg3[%c15, %c0_196, %c0_197], %1131 {strides = array<i32>} : memref<16x8x128xf32, #tpu.memory_space<vmem>>, vector<1x8x128xf32>,
    return
  }
  func.func @transform_0(%arg0: i32) -> (i32, i32) {
    %c0_i32 = arith.constant 0 : i32
    %c0_i32_0 = arith.constant 0 : i32
    return %c0_i32, %arg0 : i32, i32
  }
  func.func @transform_1(%arg0: i32) -> (i32, i32, i32, i32) {
    %c0_i32 = arith.constant 0 : i32
    %c0_i32_0 = arith.constant 0 : i32
    %c0_i32_1 = arith.constant 0 : i32
    %c0_i32_2 = arith.constant 0 : i32
    return %c0_i32, %c0_i32_0, %c0_i32_1, %arg0 : i32, i32, i32, i32
  }
  func.func @transform_2(%arg0: i32) -> (i32, i32, i32) {
    %c0_i32 = arith.constant 0 : i32
    %c0_i32_0 = arith.constant 0 : i32
    %c0_i32_1 = arith.constant 0 : i32
    return %c0_i32, %c0_i32_0, %arg0 : i32, i32, i32
  }
}

</mosaic_0001>

<bundles_post_ra>
// kernel: tpu_custom_call.1
= control target key start
LH: loop header
LB: loop body
LE: loop exit
PB: predicated region body
PF: predicated region fallthrough
CT: control target
= control target key end

     0   :  { %7 = vsyncpa [#allocation3], 0  ;;  %s3938_s0 = inlined_call_operand.hbm [shape: s32[8,128], index: 0, kind: input, shape index: {}]   ;;  %s3939_s1 = inlined_call_operand.hbm [shape: f32[3,16,8,128], index: 1, kind: input, shape index: {}]   ;;  %s3940_s2 = inlined_call_operand.hbm [shape: f32[16,8,128], index: 2, kind: output, shape index: {}]  }
   0x1   :  { %8 = vsyncpa [#allocation6], 0 }
   0x2   :  { %9 = vsyncpa [#allocation4], 0  ;;  %s2062_s9 = smov [#allocation2]   ;;  %s2063_s11 = smov [#allocation5]  }
   0x3   :  { %s16_s10 = sshll.u32 %s2062_s9, 4  ;;  %s25_s12 = sshll.u32 %s2063_s11, 4  ;;  %s17_s10 = int_to_ptr.vmem [resolvable:$true] %s16_s10  ;;  %s2085_s12 = int_to_ptr.vmem [resolvable:$true] %s25_s12 }
   0x4   :  { %s1990_s15 = scalar_lea.hbm %s3938_s0, 128 }
   0x5   :  { %p1991_p0 = scmp.ne.s32.totalorder %s3938_s0, %s1990_s15  ;;  %p1994_p1 = scmp.lt.u32.totalorder %s1990_s15, %s3938_s0 }
   0x7   :  { %p1996_p2 = pnand %p1994_p1, %p1991_p0 }
   0x9   :  { %1999 = shalt.err (!%p1996_p2)
}
   0xa   :  { %s2000_s20 = scalar_lea.vmem %s17_s10, 128  ;;  %p2005_p4 = scmp.lt.s32.totalorder %s17_s10, %s17_s10 }
   0xb   :  { %p2001_p3 = scmp.ne.s32.totalorder %s17_s10, %s2000_s20  ;;  %p2006_p5 = scmp.lt.s32.totalorder %s2000_s20, %s2000_s20 }
   0xd   :  { %p2007_p6 = por %p2006_p5, %p2005_p4 }
   0xf   :  { %p2008_p7 = pnand %p2007_p6, %p2001_p3 }
  0x11   :  { %2011 = shalt.err (!%p2008_p7)
}
  0x12   :  { %19 = dma.hbm_to_vmem [thread:$0]  %s3938_s0, 128, %s17_s10, [#allocation3]  }
  0x13   :  { %s2012_s25 = scalar_lea.hbm %s3939_s1, 6144 }
  0x14   :  { %p2013_p8 = scmp.ne.s32.totalorder %s3939_s1, %s2012_s25  ;;  %p2016_p9 = scmp.lt.u32.totalorder %s2012_s25, %s3939_s1 }
  0x16   :  { %p2018_p10 = pnand %p2016_p9, %p2013_p8 }
  0x18   :  { %2021 = shalt.err (!%p2018_p10)
}
  0x19   :  { %s2022_s30 = scalar_lea.vmem %s2085_s12, 6144  ;;  %p2027_p12 = scmp.lt.s32.totalorder %s2085_s12, %s2085_s12 }
  0x1a   :  { %p2023_p11 = scmp.ne.s32.totalorder %s2085_s12, %s2022_s30  ;;  %p2028_p13 = scmp.lt.s32.totalorder %s2022_s30, %s2022_s30 }
  0x1c   :  { %p2029_p0 = por %p2028_p13, %p2027_p12 }
  0x1e   :  { %p2030_p1 = pnand %p2029_p0, %p2023_p11 }
  0x20   :  { %2033 = shalt.err (!%p2030_p1)
}
  0x21   :  { %s2064_s0 = smov 128   ;;  %s2065_s3 = smov 8  }
  0x22   :  { %31 = dma.hbm_to_vmem [thread:$0]  %s3939_s1, 6144, %s2085_s12, [#allocation6], %s2064_s0, %s2064_s0, %s2065_s3  }
  0x23   :  { %2056 = dma.done.wait [#allocation3], 128  }
  0x24   :  { %2057 = vsyncadd [#allocation3], 4294967168 }
  0x25   :  { %2058 = dma.done.wait [#allocation6], 6144  }
  0x26   :  { %2059 = vsyncadd [#allocation6], 4294961152  ;;  %v2119_v0 = vld [vmem:[#allocation2] sm:$0xff]  ;;  %v3947_v2 = vmov 0.0   ;;  %v2131_v5 = vld [vmem:[#allocation5] sm:$0xff]  ;;  %s2069_s1 = smov [#allocation7]  }
  0x27   :  { %v39_v1 = vcvt.s32.f32 %v2119_v0  ;;  %vm40_vm0 = vcmp.gt.s32.totalorder %v2119_v0, 0  ;;  %vm41_vm1 = vcmp.gt.s32.totalorder %v2119_v0, 1  ;;  %vm42_vm2 = vcmp.gt.s32.totalorder %v2119_v0, 2  ;;  %v2133_v6 = vld [vmem:[#allocation5 + $0x8] sm:$0xff]  ;;  %v2139_v8 = vld [vmem:[#allocation5 + $0x10] sm:$0xff]  ;;  %v2149_v12 = vld [vmem:[#allocation5 + $0x18] sm:$0xff] }
  0x28   :  { %v2126_v3 = vsel %vm40_vm0, 1.0, %v3947_v2  ;;  %v2129_v4 = vsel %vm41_vm1, 1.0, %v3947_v2  ;;  %vm43_vm3 = vcmp.gt.s32.totalorder %v2119_v0, 3  ;;  %v2137_v7 = vsel %vm42_vm2, 1.0, %v3947_v2  ;;  %v2152_v13 = vld [vmem:[#allocation5 + $0x80] sm:$0xff]  ;;  %v2154_v14 = vld [vmem:[#allocation5 + $0x88] sm:$0xff] }
  0x29   :  { %1814 = vst [vmem:[#allocation7 + $0x78] sm:$0xff] %v39_v1  ;;  %vm44_vm4 = vcmp.gt.s32.totalorder %v2119_v0, 4  ;;  %v143_v9 = vmul.f32 %v2126_v3, %v2131_v5  ;;  %v144_v10 = vmul.f32 %v2129_v4, %v2133_v6  ;;  %v2147_v11 = vsel %vm43_vm3, 1.0, %v3947_v2  ;;  %v2161_v17 = vld [vmem:[#allocation5 + $0x20] sm:$0xff]  ;;  %v2164_v18 = vld [vmem:[#allocation5 + $0x90] sm:$0xff]  ;;  %v2171_v22 = vld [vmem:[#allocation5 + $0x28] sm:$0xff] }
  0x2a   :  { %vm45_vm5 = vcmp.gt.s32.totalorder %v2119_v0, 5  ;;  %v145_v15 = vmul.f32 %v2137_v7, %v2139_v8  ;;  %v2159_v16 = vsel %vm44_vm4, 1.0, %v3947_v2  ;;  %vm46_vm6 = vcmp.gt.s32.totalorder %v2119_v0, 6  ;;  %v2180_v26 = vld [vmem:[#allocation5 + $0x98] sm:$0xff]  ;;  %v2188_v30 = vld [vmem:[#allocation5 + $0x30] sm:$0xff]  ;;  %v2193_v32 = vld [vmem:[#allocation5 + $0xa0] sm:$0xff] }
  0x2b   :  { %v146_v19 = vmul.f32 %v2147_v11, %v2149_v12  ;;  %v159_v20 = vadd.f32 %v144_v10, %v143_v9  ;;  %v2169_v21 = vsel %vm45_vm5, 1.0, %v3947_v2  ;;  %v2173_v23 = vmax.f32 %v39_v1, 1.0  ;;  %v2195_v33 = vld [vmem:[#allocation5 + $0x100] sm:$0xff]  ;;  %v2197_v34 = vld [vmem:[#allocation5 + $0x108] sm:$0xff]  ;;  %v2204_v38 = vld [vmem:[#allocation5 + $0x38] sm:$0xff]  ;;  %s1820_s6 = sshll.u32 %s2069_s1, 4  ;;  %s1821_s6 = int_to_ptr.vmem [resolvable:$true] %s1820_s6 }
  0x2c   :  { %v175_v24 = vmul.f32 %v2126_v3, %v2152_v13  ;;  %v176_v25 = vmul.f32 %v2129_v4, %v2154_v14  ;;  %vm47_vm7 = vcmp.gt.s32.totalorder %v2119_v0, 7  ;;  %v147_v27 = vmul.f32 %v2159_v16, %v2161_v17  ;;  %4046 = vst [vmem:[#allocation11_spill] sm:$0xff] %v2195_v33  ;;  %4047 = vst [vmem:[#allocation12_spill] sm:$0xff] %v2197_v34  ;;  %v2215_v42 = vld [vmem:[#allocation5 + $0xa8] sm:$0xff]  ;;  %v2217_v43 = vld [vmem:[#allocation5 + $0x110] sm:$0xff]  ;;  %s2034_s7 = scalar_lea.vmem %s1821_s6, 2048  ;;  %p2039_p3 = scmp.lt.s32.totalorder %s1821_s6, %s1821_s6 }
  0x2d   :  { %v160_v28 = vadd.f32 %v159_v20, %v145_v15  ;;  %vm48_vm8 = vcmp.gt.s32.totalorder %v2119_v0, 8  ;;  %v2186_v29 = vsel %vm46_vm6, 1.0, %v3947_v2  ;;  %v177_v31 = vmul.f32 %v2137_v7, %v2164_v18  ;;  %4048 = vst [vmem:[#allocation13_spill] sm:$0xff] %v2215_v42  ;;  %4049 = vst [vmem:[#allocation14_spill] sm:$0xff] %v2217_v43  ;;  %v2221_v46 = vld [vmem:[#allocation5 + $0x40] sm:$0xff]  ;;  %v2230_v51 = vld [vmem:[#allocation5 + $0xb0] sm:$0xff]  ;;  %p2035_p2 = scmp.ne.s32.totalorder %s1821_s6, %s2034_s7  ;;  %p2040_p4 = scmp.lt.s32.totalorder %s2034_s7, %s2034_s7 }
  0x2e   :  { %vm49_vm9 = vcmp.gt.s32.totalorder %v2119_v0, 9  ;;  %v148_v35 = vmul.f32 %v2169_v21, %v2171_v22  ;;  %v2202_v37 = vsel %vm47_vm7, 1.0, %v3947_v2  ;;  %1857 = vrcp.f32 %v2173_v23  ;;  %4050 = vst [vmem:[#allocation15_spill] sm:$0xff] %v2230_v51  ;;  %v2232_v52 = vld [vmem:[#allocation5 + $0x118] sm:$0xff]  ;;  %v2241_v56 = vld [vmem:[#allocation5 + $0x48] sm:$0xff]  ;;  %v2255_v62 = vld [vmem:[#allocation5 + $0x120] sm:$0xff] }
  0x2f   :  { %v161_v36 = vadd.f32 %v160_v28, %v146_v19  ;;  %v178_v39 = vmul.f32 %v2147_v11, %v2180_v26  ;;  %v191_v40 = vadd.f32 %v176_v25, %v175_v24  ;;  %vm50_vm10 = vcmp.gt.s32.totalorder %v2119_v0, 10  ;;  %4051 = vst [vmem:[#allocation16_spill] sm:$0xff] %v2232_v52  ;;  %v2253_v61 = vld [vmem:[#allocation5 + $0xb8] sm:$0xff]  ;;  %4053 = vst [vmem:[#allocation18_spill] sm:$0xff] %v2255_v62  ;;  %v2259_v9 = vld [vmem:[#allocation5 + $0x50] sm:$0xff]  ;;  %p2041_p5 = por %p2040_p4, %p2039_p3 }
  0x30   :  { %v2213_v41 = vsel %vm48_vm8, 1.0, %v3947_v2  ;;  %v149_v44 = vmul.f32 %v2186_v29, %v2188_v30  ;;  %v179_v47 = vmul.f32 %v2159_v16, %v2193_v32  ;;  %v207_v49 = vmul.f32 %v2126_v3, %v2195_v33  ;;  %4052 = vst [vmem:[#allocation17_spill] sm:$0xff] %v2253_v61  ;;  %v2271_v25 = vld [vmem:[#allocation5 + $0xc0] sm:$0xff] }
  0x31   :  { %v162_v45 = vadd.f32 %v161_v36, %v147_v27  ;;  %v192_v48 = vadd.f32 %v191_v40, %v177_v31  ;;  %v208_v50 = vmul.f32 %v2129_v4, %v2197_v34  ;;  %vm51_vm11 = vcmp.gt.s32.totalorder %v2119_v0, 11  ;;  %4054 = vst [vmem:[#allocation19_spill] sm:$0xff] %v2271_v25  ;;  %v2273_v27 = vld [vmem:[#allocation5 + $0x128] sm:$0xff]  ;;  %v2326_v34 = vld [vmem:[#allocation5 + $0x140] sm:$0xff]  ;;  %p2042_p6 = pnand %p2041_p5, %p2035_p2 }
  0x32   :  { %v150_v53 = vmul.f32 %v2202_v37, %v2204_v38  ;;  %v2239_v55 = vsel %vm49_vm9, 1.0, %v3947_v2  ;;  %v180_v57 = vmul.f32 %v2169_v21, %v2215_v42  ;;  %v209_v59 = vmul.f32 %v2137_v7, %v2217_v43  ;;  %4055 = vst [vmem:[#allocation20_spill] sm:$0xff] %v2273_v27  ;;  %v2324_v43 = vld [vmem:[#allocation5 + $0xd8] sm:$0xff]  ;;  %4061 = vst [vmem:[#allocation26_spill] sm:$0xff] %v2326_v34 }
  0x33   :  { %v163_v54 = vadd.f32 %v162_v45, %v148_v35  ;;  %v193_v58 = vadd.f32 %v192_v48, %v178_v39  ;;  %vm52_vm12 = vcmp.gt.s32.totalorder %v2119_v0, 12  ;;  %v2251_v60 = vsel %vm50_vm10, 1.0, %v3947_v2  ;;  %v2277_v35 = vld [vmem:[#allocation5 + $0x58] sm:$0xff]  ;;  %v2291_v48 = vld [vmem:[#allocation5 + $0x130] sm:$0xff]  ;;  %4060 = vst [vmem:[#allocation25_spill] sm:$0xff] %v2324_v43 }
  0x34   :  { %v151_v63 = vmul.f32 %v2213_v41, %v2221_v46  ;;  %v181_v10 = vmul.f32 %v2186_v29, %v2230_v51  ;;  %v210_v19 = vmul.f32 %v2147_v11, %v2232_v52  ;;  %v223_v20 = vadd.f32 %v208_v50, %v207_v49  ;;  %4057 = vst [vmem:[#allocation22_spill] sm:$0xff] %v2291_v48 }
  0x35   :  { %v164_v1 = vadd.f32 %v163_v54, %v149_v44  ;;  %v194_v15 = vadd.f32 %v193_v58, %v179_v47  ;;  %vm53_vm13 = vcmp.gt.s32.totalorder %v2119_v0, 13  ;;  %v2269_v24 = vsel %vm51_vm11, 1.0, %v3947_v2  ;;  %v2289_v47 = vld [vmem:[#allocation5 + $0xc8] sm:$0xff]  ;;  %v2295_v54 = vld [vmem:[#allocation5 + $0x60] sm:$0xff] }
  0x36   :  { %v152_v28 = vmul.f32 %v2239_v55, %v2241_v56  ;;  %v182_v36 = vmul.f32 %v2202_v37, %v2253_v61  ;;  %v211_v40 = vmul.f32 %v2159_v16, %v2255_v62  ;;  %v224_v44 = vadd.f32 %v223_v20, %v209_v59  ;;  %4056 = vst [vmem:[#allocation21_spill] sm:$0xff] %v2289_v47  ;;  %v2307_v20 = vld [vmem:[#allocation5 + $0xd0] sm:$0xff]  ;;  %v2348_v61 = vld [vmem:[#allocation5 + $0x78] sm:$0xff] }
  0x37   :  { %v165_v31 = vadd.f32 %v164_v1, %v150_v53  ;;  %v195_v39 = vadd.f32 %v194_v15, %v180_v57  ;;  %vm54_vm14 = vcmp.gt.s32.totalorder %v2119_v0, 14  ;;  %v2287_v45 = vsel %vm52_vm12, 1.0, %v3947_v2  ;;  %4058 = vst [vmem:[#allocation23_spill] sm:$0xff] %v2307_v20 }
  0x38   :  { %v153_v49 = vmul.f32 %v2251_v60, %v2259_v9  ;;  %v1858_v53 = vpop.eup %1857  ;;  %v183_v57 = vmul.f32 %v2213_v41, %v2271_v25  ;;  %v212_v59 = vmul.f32 %v2169_v21, %v2273_v27  ;;  %v225_v1 = vadd.f32 %v224_v44, %v210_v19  ;;  %v2344_v25 = vld [vmem:[#allocation5 + $0x148] sm:$0xff] }
  0x39   :  { %v166_v50 = vadd.f32 %v165_v31, %v151_v63  ;;  %v196_v58 = vadd.f32 %v195_v39, %v181_v10  ;;  %vm55_vm15 = vcmp.gt.s32.totalorder %v2119_v0, 15  ;;  %v2305_v15 = vsel %vm53_vm13, 1.0, %v3947_v2  ;;  %v2309_v63 = vld [vmem:[#allocation5 + $0x138] sm:$0xff]  ;;  %v2313_v10 = vld [vmem:[#allocation5 + $0x68] sm:$0xff]  ;;  %4064 = vst [vmem:[#allocation28_spill] sm:$0xff] %v2344_v25 }
  0x3a   :  { %4059 = vst [vmem:[#allocation24_spill] sm:$0xff] %v2309_v63  ;;  %v154_v31 = vmul.f32 %v2269_v24, %v2277_v35  ;;  %v184_v19 = vmul.f32 %v2239_v55, %v2289_v47  ;;  %v213_v44 = vmul.f32 %v2186_v29, %v2291_v48  ;;  %v226_v27 = vadd.f32 %v225_v1, %v211_v40 }
  0x3b   :  { %v167_v62 = vadd.f32 %v166_v50, %v152_v28  ;;  %v197_v39 = vadd.f32 %v196_v58, %v182_v36  ;;  %v2322_v52 = vsel %vm54_vm14, 1.0, %v3947_v2  ;;  %v140_v28 = vmul.f32 %v1858_v53, %v2173_v23  ;;  %v2331_v36 = vld [vmem:[#allocation5 + $0x70] sm:$0xff]  ;;  %v2342_v23 = vld [vmem:[#allocation5 + $0xe0] sm:$0xff] }
  0x3c   :  { %v155_v50 = vmul.f32 %v2287_v45, %v2295_v54  ;;  %v185_v40 = vmul.f32 %v2251_v60, %v2307_v20  ;;  %v214_v1 = vmul.f32 %v2202_v37, %v2309_v63  ;;  %v227_v2 = vadd.f32 %v226_v27, %v212_v59  ;;  %4063 = vst [vmem:[#allocation27_spill] sm:$0xff] %v2342_v23  ;;  %v2356_v59 = vld [vmem:[#allocation5 + $0x150] sm:$0xff] }
  0x3d   :  { %v168_v33 = vadd.f32 %v167_v62, %v153_v49  ;;  %v198_v58 = vadd.f32 %v197_v39, %v183_v57  ;;  %v4062_v48 = vmov 0.0   ;;  %v156_v62 = vmul.f32 %v2305_v15, %v2313_v10  ;;  %4065 = vst [vmem:[#allocation29_spill] sm:$0xff] %v2356_v59 }
  0x3e   :  { %v2340_v47 = vsel %vm55_vm15, 1.0, %v4062_v48  ;;  %v186_v57 = vmul.f32 %v2269_v24, %v2324_v43  ;;  %v215_v27 = vmul.f32 %v2213_v41, %v2326_v34  ;;  %v228_v0 = vadd.f32 %v227_v2, %v213_v44  ;;  %v2354_v48 = vld [vmem:[#allocation5 + $0xe8] sm:$0xff]  ;;  %v2364_v43 = vld [vmem:[#allocation5 + $0xf0] sm:$0xff]  ;;  %v2366_v2 = vld [vmem:[#allocation5 + $0x158] sm:$0xff] }
  0x3f   :  { %v169_v49 = vadd.f32 %v168_v33, %v154_v31  ;;  %v199_v39 = vadd.f32 %v198_v58, %v184_v19  ;;  %v141_v63 = vsub.f32 2.0, %v140_v28  ;;  %v157_v20 = vmul.f32 %v2322_v52, %v2331_v36 }
  0x40   :  { %v187_v33 = vmul.f32 %v2287_v45, %v2342_v23  ;;  %v216_v19 = vmul.f32 %v2239_v55, %v2344_v25  ;;  %v229_v58 = vadd.f32 %v228_v0, %v214_v1  ;;  %v158_v44 = vmul.f32 %v2340_v47, %v2348_v61  ;;  %v2376_v25 = vld [vmem:[#allocation5 + $0x160] sm:$0xff]  ;;  %v2378_v23 = vld [vmem:[#allocation5 + $0x168] sm:$0xff] }
  0x41   :  { %v170_v51 = vadd.f32 %v169_v49, %v155_v50  ;;  %v200_v31 = vadd.f32 %v199_v39, %v185_v40  ;;  %v188_v34 = vmul.f32 %v2305_v15, %v2354_v48  ;;  %v217_v49 = vmul.f32 %v2251_v60, %v2356_v59  ;;  %v2374_v39 = vld [vmem:[#allocation5 + $0xf8] sm:$0xff] }
  0x42   :  { %v230_v40 = vadd.f32 %v229_v58, %v215_v27  ;;  %v142_v1 = vmul.f32 %v1858_v53, %v141_v63  ;;  %v189_v42 = vmul.f32 %v2322_v52, %v2364_v43  ;;  %v2386_v59 = vld [vmem:[#allocation5 + $0x178] sm:$0xff]  ;;  %v190_v58 = vmul.f32 %v2340_v47, %v2374_v39 }
  0x43   :  { %v171_v28 = vadd.f32 %v170_v51, %v156_v62  ;;  %v201_v50 = vadd.f32 %v200_v31, %v186_v57  ;;  %v218_v62 = vmul.f32 %v2269_v24, %v2366_v2  ;;  %v2384_v31 = vld [vmem:[#allocation5 + $0x170] sm:$0xff]  ;;  %4067 = vst [vmem:[#allocation31_spill] sm:$0xff] %v2386_v59 }
  0x44   :  { %v231_v57 = vadd.f32 %v230_v40, %v216_v19  ;;  %4066 = vst [vmem:[#allocation30_spill] sm:$0xff] %v2384_v31  ;;  %v221_v19 = vmul.f32 %v2322_v52, %v2384_v31  ;;  %v222_v40 = vmul.f32 %v2340_v47, %v2386_v59 }
  0x45   :  { %v172_v0 = vadd.f32 %v171_v28, %v157_v20  ;;  %v202_v51 = vadd.f32 %v201_v50, %v187_v33  ;;  %v219_v20 = vmul.f32 %v2287_v45, %v2376_v25  ;;  %v220_v33 = vmul.f32 %v2305_v15, %v2378_v23 }
  0x46   :  { %v232_v63 = vadd.f32 %v231_v57, %v217_v49 }
  0x47   :  { %v173_v27 = vadd.f32 %v172_v0, %v158_v44  ;;  %v203_v53 = vadd.f32 %v202_v51, %v188_v34 }
  0x48   :  { %v233_v44 = vadd.f32 %v232_v63, %v218_v62 }
  0x49   :  { %v174_v28 = vmul.f32 %v173_v27, %v142_v1  ;;  %v204_v50 = vadd.f32 %v203_v53, %v189_v42 }
  0x4a   :  { %v234_v27 = vadd.f32 %v233_v44, %v219_v20 }
  0x4b   :  { %v239_v0 = vsub.f32 %v2131_v5, %v174_v28  ;;  %v240_v34 = vsub.f32 %v2133_v6, %v174_v28  ;;  %v241_v51 = vsub.f32 %v2139_v8, %v174_v28  ;;  %v242_v49 = vsub.f32 %v2149_v12, %v174_v28  ;;  %1784 = vst [vmem:[#allocation7] sm:$0xff] %v174_v28 }
  0x4c   :  { %v205_v57 = vadd.f32 %v204_v50, %v190_v58  ;;  %v243_v42 = vsub.f32 %v2161_v17, %v174_v28  ;;  %v244_v53 = vsub.f32 %v2171_v22, %v174_v28  ;;  %v245_v31 = vsub.f32 %v2188_v30, %v174_v28 }
  0x4d   :  { %v246_v59 = vsub.f32 %v2204_v38, %v174_v28  ;;  %v247_v62 = vsub.f32 %v2221_v46, %v174_v28  ;;  %v248_v5 = vsub.f32 %v2241_v56, %v174_v28  ;;  %v235_v63 = vadd.f32 %v234_v27, %v220_v33 }
  0x4e   :  { %v206_v6 = vmul.f32 %v205_v57, %v142_v1  ;;  %v249_v8 = vsub.f32 %v2259_v9, %v174_v28  ;;  %v250_v12 = vsub.f32 %v2277_v35, %v174_v28  ;;  %v251_v58 = vsub.f32 %v2295_v54, %v174_v28 }
  0x4f   :  { %v252_v17 = vsub.f32 %v2313_v10, %v174_v28  ;;  %v253_v22 = vsub.f32 %v2331_v36, %v174_v28  ;;  %v254_v30 = vsub.f32 %v2348_v61, %v174_v28  ;;  %v236_v20 = vadd.f32 %v235_v63, %v221_v19 }
  0x50   :  { %v2415_v38 = vmul.f32 %v2126_v3, %v239_v0  ;;  %v2418_v46 = vmul.f32 %v2129_v4, %v240_v34  ;;  %v2421_v56 = vmul.f32 %v2137_v7, %v241_v51  ;;  %1786 = vst [vmem:[#allocation7 + $0x8] sm:$0xff] %v206_v6  ;;  %v2424_v9 = vmul.f32 %v2147_v11, %v242_v49 }
  0x51   :  { %v2427_v35 = vmul.f32 %v2159_v16, %v243_v42  ;;  %v2430_v54 = vmul.f32 %v2169_v21, %v244_v53  ;;  %v2433_v61 = vmul.f32 %v2186_v29, %v245_v31  ;;  %v237_v10 = vadd.f32 %v236_v20, %v222_v40  ;;  %v4076_v42 = vld [vmem:[#allocation13_spill] sm:$0xff] }
  0x52   :  { %4068 = vst [vmem:[#allocation32_spill] sm:$0xff] %v2415_v38  ;;  %4069 = vst [vmem:[#allocation33_spill] sm:$0xff] %v2418_v46  ;;  %v2436_v36 = vmul.f32 %v2202_v37, %v246_v59  ;;  %v2439_v28 = vmul.f32 %v2213_v41, %v247_v62  ;;  %v2442_v33 = vmul.f32 %v2239_v55, %v248_v5  ;;  %v4078_v5 = vld [vmem:[#allocation17_spill] sm:$0xff] }
  0x53   :  { %v2445_v50 = vmul.f32 %v2251_v60, %v249_v8  ;;  %v2448_v19 = vmul.f32 %v2269_v24, %v250_v12  ;;  %v2451_v44 = vmul.f32 %v2287_v45, %v251_v58  ;;  %v2454_v31 = vmul.f32 %v2305_v15, %v252_v17  ;;  %v4079_v8 = vld [vmem:[#allocation19_spill] sm:$0xff]  ;;  %v4080_v58 = vld [vmem:[#allocation21_spill] sm:$0xff] }
  0x54   :  { %v2456_v59 = vmul.f32 %v237_v10, %v142_v1  ;;  %v2459_v40 = vmul.f32 %v2322_v52, %v253_v22  ;;  %v2462_v0 = vmul.f32 %v2340_v47, %v254_v30  ;;  %v271_v34 = vsub.f32 %v2152_v13, %v206_v6  ;;  %v4077_v1 = vld [vmem:[#allocation15_spill] sm:$0xff]  ;;  %v4082_v22 = vld [vmem:[#allocation25_spill] sm:$0xff] }
  0x55   :  { %4070 = vst [vmem:[#allocation34_spill] sm:$0xff] %v2445_v50  ;;  %4071 = vst [vmem:[#allocation35_spill] sm:$0xff] %v2448_v19  ;;  %v272_v51 = vsub.f32 %v2154_v14, %v206_v6  ;;  %v273_v49 = vsub.f32 %v2164_v18, %v206_v6  ;;  %v274_v57 = vsub.f32 %v2180_v26, %v206_v6  ;;  %v4081_v17 = vld [vmem:[#allocation23_spill] sm:$0xff] }
  0x56   :  { %4072 = vst [vmem:[#allocation36_spill] sm:$0xff] %v2451_v44  ;;  %4073 = vst [vmem:[#allocation37_spill] sm:$0xff] %v2454_v31  ;;  %v275_v27 = vsub.f32 %v2193_v32, %v206_v6  ;;  %v276_v53 = vsub.f32 %v4076_v42, %v206_v6  ;;  %v277_v62 = vsub.f32 %v4077_v1, %v206_v6  ;;  %v4083_v30 = vld [vmem:[#allocation27_spill] sm:$0xff] }
  0x57   :  { %4074 = vst [vmem:[#allocation38_spill] sm:$0xff] %v2459_v40  ;;  %4075 = vst [vmem:[#allocation39_spill] sm:$0xff] %v2462_v0  ;;  %v278_v63 = vsub.f32 %v4078_v5, %v206_v6  ;;  %v279_v12 = vsub.f32 %v4079_v8, %v206_v6  ;;  %v280_v13 = vsub.f32 %v4080_v58, %v206_v6 }
  0x58   :  { %1788 = vst [vmem:[#allocation7 + $0x10] sm:$0xff] %v2456_v59  ;;  %v281_v14 = vsub.f32 %v4081_v17, %v206_v6  ;;  %v282_v18 = vsub.f32 %v4082_v22, %v206_v6  ;;  %v283_v26 = vsub.f32 %v4083_v30, %v206_v6  ;;  %v284_v32 = vsub.f32 %v2354_v48, %v206_v6 }
  0x59   :  { %v285_v20 = vsub.f32 %v2364_v43, %v206_v6  ;;  %v286_v10 = vsub.f32 %v2374_v39, %v206_v6  ;;  %v2482_v42 = vmul.f32 %v2126_v3, %v271_v34  ;;  %v2485_v1 = vmul.f32 %v2129_v4, %v272_v51 }
  0x5a   :  { %v2488_v5 = vmul.f32 %v2137_v7, %v273_v49  ;;  %v2491_v8 = vmul.f32 %v2147_v11, %v274_v57  ;;  %v2494_v58 = vmul.f32 %v2159_v16, %v275_v27  ;;  %v2497_v48 = vmul.f32 %v2169_v21, %v276_v53 }
  0x5b   :  { %4084 = vst [vmem:[#allocation13_spill] sm:$0xff] %v2482_v42  ;;  %4085 = vst [vmem:[#allocation15_spill] sm:$0xff] %v2485_v1  ;;  %v2500_v43 = vmul.f32 %v2186_v29, %v277_v62  ;;  %v2503_v39 = vmul.f32 %v2202_v37, %v278_v63  ;;  %v2506_v6 = vmul.f32 %v2213_v41, %v279_v12  ;;  %v4100_v63 = vld [vmem:[#allocation11_spill] sm:$0xff] }
  0x5c   :  { %4086 = vst [vmem:[#allocation17_spill] sm:$0xff] %v2488_v5  ;;  %4087 = vst [vmem:[#allocation19_spill] sm:$0xff] %v2491_v8  ;;  %v2509_v34 = vmul.f32 %v2239_v55, %v280_v13  ;;  %v2512_v51 = vmul.f32 %v2251_v60, %v281_v14  ;;  %v2515_v49 = vmul.f32 %v2269_v24, %v282_v18  ;;  %v4101_v13 = vld [vmem:[#allocation12_spill] sm:$0xff]  ;;  %v4102_v14 = vld [vmem:[#allocation14_spill] sm:$0xff] }
  0x5d   :  { %4088 = vst [vmem:[#allocation21_spill] sm:$0xff] %v2494_v58  ;;  %4089 = vst [vmem:[#allocation23_spill] sm:$0xff] %v2497_v48  ;;  %v2518_v57 = vmul.f32 %v2287_v45, %v283_v26  ;;  %v2521_v27 = vmul.f32 %v2305_v15, %v284_v32  ;;  %v2524_v53 = vmul.f32 %v2322_v52, %v285_v20  ;;  %v4103_v18 = vld [vmem:[#allocation16_spill] sm:$0xff]  ;;  %v4104_v26 = vld [vmem:[#allocation18_spill] sm:$0xff] }
  0x5e   :  { %4090 = vst [vmem:[#allocation25_spill] sm:$0xff] %v2500_v43  ;;  %4091 = vst [vmem:[#allocation27_spill] sm:$0xff] %v2503_v39  ;;  %v2527_v62 = vmul.f32 %v2340_v47, %v286_v10  ;;  %v303_v12 = vsub.f32 %v4100_v63, %v2456_v59  ;;  %v304_v17 = vsub.f32 %v4101_v13, %v2456_v59  ;;  %v4105_v20 = vld [vmem:[#allocation20_spill] sm:$0xff]  ;;  %v4106_v10 = vld [vmem:[#allocation22_spill] sm:$0xff] }
  0x5f   :  { %4092 = vst [vmem:[#allocation40_spill] sm:$0xff] %v2506_v6  ;;  %4093 = vst [vmem:[#allocation41_spill] sm:$0xff] %v2509_v34  ;;  %v305_v22 = vsub.f32 %v4102_v14, %v2456_v59  ;;  %v306_v30 = vsub.f32 %v4103_v18, %v2456_v59  ;;  %v307_v32 = vsub.f32 %v4104_v26, %v2456_v59  ;;  %v4107_v63 = vld [vmem:[#allocation24_spill] sm:$0xff]  ;;  %v4108_v13 = vld [vmem:[#allocation26_spill] sm:$0xff] }
  0x60   :  { %4094 = vst [vmem:[#allocation42_spill] sm:$0xff] %v2512_v51  ;;  %4095 = vst [vmem:[#allocation43_spill] sm:$0xff] %v2515_v49  ;;  %v310_v0 = vsub.f32 %v4107_v63, %v2456_v59  ;;  %v4109_v14 = vld [vmem:[#allocation28_spill] sm:$0xff]  ;;  %v4110_v18 = vld [vmem:[#allocation29_spill] sm:$0xff]  ;;  %v314_v26 = vsub.f32 %v2366_v2, %v2456_v59 }
  0x61   :  { %4096 = vst [vmem:[#allocation44_spill] sm:$0xff] %v2518_v57  ;;  %4097 = vst [vmem:[#allocation45_spill] sm:$0xff] %v2521_v27  ;;  %v311_v27 = vsub.f32 %v4108_v13, %v2456_v59  ;;  %v312_v40 = vsub.f32 %v4109_v14, %v2456_v59  ;;  %v313_v57 = vsub.f32 %v4110_v18, %v2456_v59  ;;  %v4111_v63 = vld [vmem:[#allocation30_spill] sm:$0xff]  ;;  %v4112_v13 = vld [vmem:[#allocation31_spill] sm:$0xff] }
  0x62   :  { %4098 = vst [vmem:[#allocation46_spill] sm:$0xff] %v2524_v53  ;;  %4099 = vst [vmem:[#allocation47_spill] sm:$0xff] %v2527_v62  ;;  %v308_v53 = vsub.f32 %v4105_v20, %v2456_v59  ;;  %v309_v62 = vsub.f32 %v4106_v10, %v2456_v59  ;;  %v315_v20 = vsub.f32 %v2376_v25, %v2456_v59 }
  0x63   :  { %v316_v10 = vsub.f32 %v2378_v23, %v2456_v59  ;;  %v317_v31 = vsub.f32 %v4111_v63, %v2456_v59  ;;  %v318_v49 = vsub.f32 %v4112_v13, %v2456_v59  ;;  %v2562_v14 = vmul.f32 %v2126_v3, %v303_v12 }
  0x64   :  { %v2565_v18 = vmul.f32 %v2129_v4, %v304_v17  ;;  %v2568_v2 = vmul.f32 %v2137_v7, %v305_v22  ;;  %v2571_v25 = vmul.f32 %v2147_v11, %v306_v30  ;;  %v2574_v23 = vmul.f32 %v2159_v16, %v307_v32 }
  0x65   :  { %4113 = vst [vmem:[#allocation11_spill] sm:$0xff] %v2562_v14  ;;  %v2577_v63 = vmul.f32 %v2169_v21, %v308_v53  ;;  %v2580_v59 = vmul.f32 %v2186_v29, %v309_v62  ;;  %v2583_v3 = vmul.f32 %v2202_v37, %v310_v0  ;;  %v2586_v4 = vmul.f32 %v2213_v41, %v311_v27 }
  0x66   :  { %4114 = vst [vmem:[#allocation12_spill] sm:$0xff] %v2565_v18  ;;  %4115 = vst [vmem:[#allocation14_spill] sm:$0xff] %v2568_v2  ;;  %v2589_v7 = vmul.f32 %v2239_v55, %v312_v40  ;;  %v2592_v11 = vmul.f32 %v2251_v60, %v313_v57  ;;  %v2595_v16 = vmul.f32 %v2269_v24, %v314_v26 }
  0x67   :  { %4116 = vst [vmem:[#allocation16_spill] sm:$0xff] %v2571_v25  ;;  %4117 = vst [vmem:[#allocation18_spill] sm:$0xff] %v2574_v23  ;;  %v2598_v21 = vmul.f32 %v2287_v45, %v315_v20  ;;  %v2601_v29 = vmul.f32 %v2305_v15, %v316_v10  ;;  %v2604_v37 = vmul.f32 %v2322_v52, %v317_v31 }
  0x68   :  { %4118 = vst [vmem:[#allocation20_spill] sm:$0xff] %v2577_v63  ;;  %4119 = vst [vmem:[#allocation22_spill] sm:$0xff] %v2580_v59  ;;  %v2607_v41 = vmul.f32 %v2340_v47, %v318_v49  ;;  %v335_v55 = vmul.f32 %v2415_v38, %v2415_v38  ;;  %v336_v60 = vmul.f32 %v2418_v46, %v2418_v46 }
  0x69   :  { %4120 = vst [vmem:[#allocation24_spill] sm:$0xff] %v2583_v3  ;;  %4121 = vst [vmem:[#allocation26_spill] sm:$0xff] %v2586_v4  ;;  %v337_v24 = vmul.f32 %v2421_v56, %v2421_v56  ;;  %v338_v45 = vmul.f32 %v2424_v9, %v2424_v9  ;;  %v366_v52 = vmul.f32 %v2482_v42, %v2415_v38 }
  0x6a   :  { %4122 = vst [vmem:[#allocation28_spill] sm:$0xff] %v2589_v7  ;;  %4123 = vst [vmem:[#allocation29_spill] sm:$0xff] %v2592_v11  ;;  %v351_v15 = vadd.f32 %v336_v60, %v335_v55  ;;  %v367_v47 = vmul.f32 %v2485_v1, %v2418_v46  ;;  %v339_v31 = vmul.f32 %v2427_v35, %v2427_v35 }
  0x6b   :  { %4124 = vst [vmem:[#allocation30_spill] sm:$0xff] %v2595_v16  ;;  %4125 = vst [vmem:[#allocation31_spill] sm:$0xff] %v2598_v21  ;;  %v368_v0 = vmul.f32 %v2488_v5, %v2421_v56  ;;  %v340_v49 = vmul.f32 %v2430_v54, %v2430_v54  ;;  %v369_v27 = vmul.f32 %v2491_v8, %v2424_v9 }
  0x6c   :  { %4126 = vst [vmem:[#allocation48_spill] sm:$0xff] %v2601_v29  ;;  %4127 = vst [vmem:[#allocation49_spill] sm:$0xff] %v2604_v37  ;;  %v352_v40 = vadd.f32 %v351_v15, %v337_v24  ;;  %v382_v53 = vadd.f32 %v367_v47, %v366_v52  ;;  %v341_v62 = vmul.f32 %v2433_v61, %v2433_v61 }
  0x6d   :  { %4128 = vst [vmem:[#allocation50_spill] sm:$0xff] %v2607_v41  ;;  %v370_v17 = vmul.f32 %v2494_v58, %v2427_v35  ;;  %v342_v30 = vmul.f32 %v2436_v36, %v2436_v36  ;;  %v371_v26 = vmul.f32 %v2497_v48, %v2430_v54  ;;  %v343_v10 = vmul.f32 %v2439_v28, %v2439_v28 }
  0x6e   :  { %v353_v57 = vadd.f32 %v352_v40, %v338_v45  ;;  %v383_v22 = vadd.f32 %v382_v53, %v368_v0  ;;  %v372_v55 = vmul.f32 %v2500_v43, %v2433_v61  ;;  %v344_v24 = vmul.f32 %v2442_v33, %v2442_v33 }
  0x6f   :  { %v373_v15 = vmul.f32 %v2503_v39, %v2436_v36  ;;  %v428_v47 = vmul.f32 %v2482_v42, %v2482_v42  ;;  %v374_v0 = vmul.f32 %v2506_v6, %v2439_v28 }
  0x70   :  { %v354_v12 = vadd.f32 %v353_v57, %v339_v31  ;;  %v384_v20 = vadd.f32 %v383_v22, %v369_v27  ;;  %v429_v31 = vmul.f32 %v2485_v1, %v2485_v1  ;;  %v430_v57 = vmul.f32 %v2488_v5, %v2488_v5 }
  0x71   :  { %v345_v27 = vmul.f32 %v2445_v50, %v2445_v50  ;;  %v375_v22 = vmul.f32 %v2509_v34, %v2442_v33 }
  0x72   :  { %v355_v32 = vadd.f32 %v354_v12, %v340_v49  ;;  %v385_v60 = vadd.f32 %v384_v20, %v370_v17  ;;  %v431_v12 = vmul.f32 %v2491_v8, %v2491_v8  ;;  %v444_v17 = vadd.f32 %v429_v31, %v428_v47 }
  0x73   :  { %v346_v20 = vmul.f32 %v2448_v19, %v2448_v19  ;;  %v435_v31 = vmul.f32 %v2503_v39, %v2503_v39 }
  0x74   :  { %v356_v13 = vadd.f32 %v355_v32, %v341_v62  ;;  %v386_v52 = vadd.f32 %v385_v60, %v371_v26  ;;  %v432_v32 = vmul.f32 %v2494_v58, %v2494_v58  ;;  %v445_v26 = vadd.f32 %v444_v17, %v430_v57 }
  0x75   :  { %v376_v60 = vmul.f32 %v2512_v51, %v2445_v50 }
  0x76   :  { %v357_v45 = vadd.f32 %v356_v13, %v342_v30  ;;  %v387_v49 = vadd.f32 %v386_v52, %v372_v55  ;;  %v433_v13 = vmul.f32 %v2497_v48, %v2497_v48  ;;  %v446_v55 = vadd.f32 %v445_v26, %v431_v12 }
  0x77   :  { %v347_v52 = vmul.f32 %v2451_v44, %v2451_v44 }
  0x78   :  { %v358_v40 = vadd.f32 %v357_v45, %v343_v10  ;;  %v388_v62 = vadd.f32 %v387_v49, %v373_v15  ;;  %v434_v45 = vmul.f32 %v2500_v43, %v2500_v43  ;;  %v447_v15 = vadd.f32 %v446_v55, %v432_v32  ;;  %v4131_v32 = vld [vmem:[#allocation44_spill] sm:$0xff]  ;;  %v4132_v55 = vld [vmem:[#allocation38_spill] sm:$0xff] }
  0x79   :  { %v378_v26 = vmul.f32 %v4131_v32, %v2451_v44 }
  0x7a   :  { %v359_v53 = vadd.f32 %v358_v40, %v344_v24  ;;  %v389_v30 = vadd.f32 %v388_v62, %v374_v0  ;;  %v448_v40 = vadd.f32 %v447_v15, %v433_v13  ;;  %v4129_v0 = vld [vmem:[#allocation43_spill] sm:$0xff]  ;;  %v4130_v62 = vld [vmem:[#allocation37_spill] sm:$0xff] }
  0x7b   :  { %v377_v49 = vmul.f32 %v4129_v0, %v2448_v19  ;;  %v348_v12 = vmul.f32 %v4130_v62, %v4130_v62 }
  0x7c   :  { %v360_v10 = vadd.f32 %v359_v53, %v345_v27  ;;  %v390_v24 = vadd.f32 %v389_v30, %v375_v22  ;;  %v436_v27 = vmul.f32 %v2506_v6, %v2506_v6  ;;  %v449_v53 = vadd.f32 %v448_v40, %v434_v45 }
  0x7d   :  { %v437_v22 = vmul.f32 %v2509_v34, %v2509_v34  ;;  %v439_v45 = vmul.f32 %v4129_v0, %v4129_v0  ;;  %v440_v40 = vmul.f32 %v4131_v32, %v4131_v32 }
  0x7e   :  { %v361_v47 = vadd.f32 %v360_v10, %v346_v20  ;;  %v391_v57 = vadd.f32 %v390_v24, %v376_v60  ;;  %v450_v30 = vadd.f32 %v449_v53, %v435_v31  ;;  %v438_v10 = vmul.f32 %v2512_v51, %v2512_v51 }
  0x7f   :  { %v349_v60 = vmul.f32 %v4132_v55, %v4132_v55 }
  0x80   :  { %v362_v17 = vadd.f32 %v361_v47, %v347_v52  ;;  %v392_v20 = vadd.f32 %v391_v57, %v377_v49  ;;  %v451_v13 = vadd.f32 %v450_v30, %v436_v27  ;;  %v4133_v52 = vld [vmem:[#allocation45_spill] sm:$0xff]  ;;  %v4134_v57 = vld [vmem:[#allocation39_spill] sm:$0xff] }
  0x81   :  { %v379_v47 = vmul.f32 %v4133_v52, %v4130_v62  ;;  %v350_v53 = vmul.f32 %v4134_v57, %v4134_v57  ;;  %v441_v30 = vmul.f32 %v4133_v52, %v4133_v52  ;;  %v4136_v62 = vld [vmem:[#allocation47_spill] sm:$0xff] }
  0x82   :  { %v363_v24 = vadd.f32 %v362_v17, %v348_v12  ;;  %v452_v15 = vadd.f32 %v451_v13, %v437_v22  ;;  %v393_v31 = vadd.f32 %v392_v20, %v378_v26  ;;  %v4135_v17 = vld [vmem:[#allocation46_spill] sm:$0xff] }
  0x83   :  { %v380_v41 = vmul.f32 %v4135_v17, %v4132_v55  ;;  %v442_v13 = vmul.f32 %v4135_v17, %v4135_v17 }
  0x84   :  { %v453_v49 = vadd.f32 %v452_v15, %v438_v10  ;;  %v364_v27 = vadd.f32 %v363_v24, %v349_v60  ;;  %v394_v22 = vadd.f32 %v393_v31, %v379_v47  ;;  %v443_v10 = vmul.f32 %v4136_v62, %v4136_v62 }
  0x85   :  { %v381_v60 = vmul.f32 %v4136_v62, %v4134_v57 }
  0x86   :  { %v454_v12 = vadd.f32 %v453_v49, %v439_v45  ;;  %v2701_v20 = vadd.f32 %v364_v27, %v350_v53  ;;  %v395_v24 = vadd.f32 %v394_v22, %v380_v41  ;;  %v491_v22 = vmul.f32 %v2565_v18, %v2565_v18 }
  0x88   :  { %v455_v26 = vadd.f32 %v454_v12, %v440_v40  ;;  %v522_v49 = vand.u32 2147483647, %v2701_v20  ;;  %v2710_v47 = vadd.f32 %v395_v24, %v381_v60  ;;  %v493_v60 = vmul.f32 %v2571_v25, %v2571_v25 }
  0x8a   :  { %v456_v15 = vadd.f32 %v455_v26, %v441_v30  ;;  %v521_v53 = vand.u32 2147483647, %v2710_v47 }
  0x8c   :  { %v457_v52 = vadd.f32 %v456_v15, %v442_v13  ;;  %v492_v13 = vmul.f32 %v2568_v2, %v2568_v2 }
  0x8e   :  { %v2707_v45 = vadd.f32 %v457_v52, %v443_v10  ;;  %v490_v52 = vmul.f32 %v2562_v14, %v2562_v14 }
  0x90   :  { %4137 = vst [vmem:[#allocation51_spill] sm:$0xff] %v2707_v45  ;;  %v523_v31 = vand.u32 2147483647, %v2707_v45  ;;  %v506_v26 = vadd.f32 %v491_v22, %v490_v52  ;;  %v529_v10 = vsub.f32 %v2707_v45, %v2701_v20  ;;  %v494_v22 = vmul.f32 %v2574_v23, %v2574_v23 }
  0x92   :  { %v524_v40 = vadd.f32 %v523_v31, %v522_v49  ;;  %v507_v24 = vadd.f32 %v506_v26, %v492_v13  ;;  %v397_v49 = vmul.f32 %v2562_v14, %v2415_v38  ;;  %v398_v31 = vmul.f32 %v2565_v18, %v2418_v46 }
  0x93   :  { %v399_v13 = vmul.f32 %v2568_v2, %v2421_v56 }
  0x94   :  { %v525_v27 = vmul.f32 1e-12, %v524_v40  ;;  %v508_v45 = vadd.f32 %v507_v24, %v493_v60  ;;  %v413_v26 = vadd.f32 %v398_v31, %v397_v49 }
  0x96   :  { %v526_v12 = vadd.f32 1e-30, %v525_v27  ;;  %v460_v27 = vmul.f32 %v2565_v18, %v2485_v1  ;;  %v495_v18 = vmul.f32 %v2577_v63, %v2577_v63 }
  0x98   :  { %vm2714_vm0 = vcmp.le.f32.partialorder %v521_v53, %v526_v12  ;;  %v459_v53 = vmul.f32 %v2562_v14, %v2482_v42  ;;  %v530_v12 = vmul.f32 0.5, %v529_v10  ;;  %v509_v10 = vadd.f32 %v508_v45, %v494_v22 }
  0x99   :  { %v528_v41 = vsel %vm2714_vm0, 1.0, %v2710_v47  ;;  %v414_v14 = vadd.f32 %v413_v26, %v399_v13 }
  0x9a   :  { %1859 = vrcp.f32 %v528_v41  ;;  %v475_v46 = vadd.f32 %v460_v27, %v459_v53  ;;  %v510_v31 = vadd.f32 %v509_v10, %v495_v18  ;;  %v401_v53 = vmul.f32 %v2574_v23, %v2427_v35 }
  0x9b   :  { %v463_v27 = vmul.f32 %v2574_v23, %v2494_v58  ;;  %v464_v18 = vmul.f32 %v2577_v63, %v2497_v48  ;;  %v403_v10 = vmul.f32 %v2580_v59, %v2433_v61  ;;  %v4147_v23 = vld [vmem:[#allocation51_spill] sm:$0xff] }
  0xa4   :  { %v1860_v15 = vpop.eup %1859 }
  0xa5   :  { %v532_v40 = vmul.f32 %v1860_v15, %v528_v41  ;;  %v461_v41 = vmul.f32 %v2568_v2, %v2488_v5 }
  0xa7   :  { %v533_v52 = vsub.f32 2.0, %v532_v40  ;;  %v400_v40 = vmul.f32 %v2571_v25, %v2424_v9  ;;  %v476_v24 = vadd.f32 %v475_v46, %v461_v41  ;;  %v402_v46 = vmul.f32 %v2577_v63, %v2430_v54 }
  0xa9   :  { %v534_v38 = vmul.f32 %v1860_v15, %v533_v52  ;;  %v462_v15 = vmul.f32 %v2571_v25, %v2491_v8  ;;  %v415_v45 = vadd.f32 %v414_v14, %v400_v40  ;;  %v497_v52 = vmul.f32 %v2583_v3, %v2583_v3 }
  0xaa   :  { %v498_v14 = vmul.f32 %v2586_v4, %v2586_v4 }
  0xab   :  { %v2745_v62 = vmul.f32 %v534_v38, %v530_v12  ;;  %v496_v38 = vmul.f32 %v2580_v59, %v2580_v59  ;;  %v477_v12 = vadd.f32 %v476_v24, %v462_v15  ;;  %v416_v13 = vadd.f32 %v415_v45, %v401_v53 }
  0xad   :  { %v539_v60 = vmul.f32 %v2745_v62, %v2745_v62  ;;  %v511_v22 = vadd.f32 %v510_v31, %v496_v38  ;;  %v478_v26 = vadd.f32 %v477_v12, %v463_v27  ;;  %v417_v40 = vadd.f32 %v416_v13, %v402_v46 }
  0xae   :  { %v499_v38 = vmul.f32 %v2589_v7, %v2589_v7  ;;  %v538_v45 = vand.u32 2147483647, %v2745_v62  ;;  %v404_v12 = vmul.f32 %v2583_v3, %v2436_v36  ;;  %v466_v46 = vmul.f32 %v2583_v3, %v2503_v39 }
  0xaf   :  { %v540_v49 = vadd.f32 1.0, %v539_v60  ;;  %v512_v41 = vadd.f32 %v511_v22, %v497_v52  ;;  %v465_v60 = vmul.f32 %v2580_v59, %v2500_v43  ;;  %v479_v24 = vadd.f32 %v478_v26, %v464_v18 }
  0xb0   :  { %v418_v52 = vadd.f32 %v417_v40, %v403_v10  ;;  %v500_v26 = vmul.f32 %v2592_v11, %v2592_v11  ;;  %vm536_vm3 = vcmp.ge.f32.partialorder %v2745_v62, 0.0 }
  0xb1   :  { %1861 = vrsqrt.f32 %v540_v49  ;;  %vm543_vm1 = vcmp.eq.f32.partialorder %v540_v49, inf  ;;  %v546_v31 = vand.u32 2147483648, %v540_v49  ;;  %v513_v53 = vadd.f32 %v512_v41, %v498_v14 }
  0xb2   :  { %vm545_vm2 = vcmp.eq.f32.partialorder %v540_v49, 0.0  ;;  %v480_v13 = vadd.f32 %v479_v24, %v465_v60  ;;  %v405_v14 = vmul.f32 %v2586_v4, %v2439_v28  ;;  %v419_v41 = vadd.f32 %v418_v52, %v404_v12 }
  0xb3   :  { %v514_v59 = vadd.f32 %v513_v53, %v499_v38  ;;  %v406_v60 = vmul.f32 %v2589_v7, %v2442_v33  ;;  %v468_v38 = vmul.f32 %v2589_v7, %v2509_v34  ;;  %v502_v53 = vmul.f32 %v2598_v21, %v2598_v21 }
  0xb4   :  { %v481_v10 = vadd.f32 %v480_v13, %v466_v46  ;;  %v420_v24 = vadd.f32 %v419_v41, %v405_v14  ;;  %v469_v52 = vmul.f32 %v2592_v11, %v2512_v51  ;;  %v503_v46 = vmul.f32 %v2601_v29, %v2601_v29 }
  0xb5   :  { %v515_v40 = vadd.f32 %v514_v59, %v500_v26  ;;  %v470_v41 = vmul.f32 %v2595_v16, %v4129_v0 }
  0xb6   :  { %v421_v12 = vadd.f32 %v420_v24, %v406_v60  ;;  %v3988_v60 = vmov -1.0  }
  0xb7   :  { %v537_v24 = vsel %vm536_vm3, 1.0, %v3988_v60 }
  0xbb   :  { %v1862_v15 = vpop.eup %1861 }
  0xbc   :  { %v542_v27 = vmul.f32 %v1862_v15, %v540_v49  ;;  %v467_v15 = vmul.f32 %v2586_v4, %v2506_v6 }
  0xbe   :  { %v544_v22 = vsel %vm543_vm1, %v540_v49, %v542_v27  ;;  %v501_v49 = vmul.f32 %v2595_v16, %v2595_v16  ;;  %v407_v27 = vmul.f32 %v2592_v11, %v2445_v50 }
  0xbf   :  { %v547_v18 = vsel %vm545_vm2, %v546_v31, %v544_v22  ;;  %v482_v31 = vadd.f32 %v481_v10, %v467_v15 }
  0xc0   :  { %v548_v63 = vadd.f32 %v547_v18, %v538_v45  ;;  %v516_v45 = vadd.f32 %v515_v40, %v501_v49  ;;  %v408_v18 = vmul.f32 %v2595_v16, %v2448_v19  ;;  %v422_v26 = vadd.f32 %v421_v12, %v407_v27  ;;  %v4140_v27 = vld [vmem:[#allocation50_spill] sm:$0xff] }
  0xc1   :  { %v483_v59 = vadd.f32 %v482_v31, %v468_v38  ;;  %v504_v49 = vmul.f32 %v2604_v37, %v2604_v37  ;;  %v409_v38 = vmul.f32 %v2598_v21, %v2451_v44  ;;  %v505_v12 = vmul.f32 %v4140_v27, %v4140_v27 }
  0xc2   :  { %1863 = vrcp.f32 %v548_v63  ;;  %v517_v13 = vadd.f32 %v516_v45, %v502_v53  ;;  %v423_v31 = vadd.f32 %v422_v26, %v408_v18 }
  0xc3   :  { %v484_v15 = vadd.f32 %v483_v59, %v469_v52  ;;  %v4141_v59 = vld [vmem:[#allocation37_spill] sm:$0xff] }
  0xc4   :  { %v518_v40 = vadd.f32 %v517_v13, %v503_v46  ;;  %v410_v46 = vmul.f32 %v2601_v29, %v4141_v59  ;;  %v424_v13 = vadd.f32 %v423_v31, %v409_v38 }
  0xc5   :  { %v485_v62 = vadd.f32 %v484_v15, %v470_v41 }
  0xc6   :  { %v519_v52 = vadd.f32 %v518_v40, %v504_v49  ;;  %v411_v40 = vmul.f32 %v2604_v37, %v4132_v55  ;;  %v425_v30 = vadd.f32 %v424_v13, %v410_v46 }
  0xc8   :  { %v2823_v15 = vadd.f32 %v519_v52, %v505_v12 }
  0xca   :  { %v578_v31 = vand.u32 2147483647, %v2823_v15 }
  0xcc   :  { %v1864_v22 = vpop.eup %1863 }
  0xcd   :  { %v550_v14 = vmul.f32 %v1864_v22, %v548_v63  ;;  %v471_v63 = vmul.f32 %v2598_v21, %v4131_v32 }
  0xcf   :  { %v551_v10 = vsub.f32 2.0, %v550_v14  ;;  %v486_v41 = vadd.f32 %v485_v62, %v471_v63  ;;  %v4143_v63 = vld [vmem:[#allocation47_spill] sm:$0xff] }
  0xd1   :  { %v552_v53 = vmul.f32 %v1864_v22, %v551_v10  ;;  %v4142_v22 = vld [vmem:[#allocation45_spill] sm:$0xff] }
  0xd2   :  { %v472_v26 = vmul.f32 %v2601_v29, %v4142_v22 }
  0xd3   :  { %v553_v45 = vmul.f32 %v552_v53, %v537_v24  ;;  %v426_v53 = vadd.f32 %v425_v30, %v411_v40 }
  0xd4   :  { %v487_v24 = vadd.f32 %v486_v41, %v472_v26 }
  0xd5   :  { %v554_v14 = vsel %vm2714_vm0, 0.0, %v553_v45 }
  0xd6   :  { %v555_v60 = vmul.f32 %v554_v14, %v554_v14  ;;  %v2819_v18 = vmul.f32 %v554_v14, %v2710_v47  ;;  %v473_v47 = vmul.f32 %v2604_v37, %v4135_v17 }
  0xd8   :  { %v556_v10 = vadd.f32 1.0, %v555_v60  ;;  %v2827_v49 = vsub.f32 %v2701_v20, %v2819_v18  ;;  %v412_v60 = vmul.f32 %v4140_v27, %v4134_v57  ;;  %v474_v20 = vmul.f32 %v4140_v27, %v4143_v63 }
  0xd9   :  { %v488_v62 = vadd.f32 %v487_v24, %v473_v47 }
  0xda   :  { %1865 = vrsqrt.f32 %v556_v10  ;;  %v577_v38 = vand.u32 2147483647, %v2827_v49  ;;  %v427_v12 = vadd.f32 %v426_v53, %v412_v60  ;;  %v584_v53 = vsub.f32 %v2823_v15, %v2827_v49 }
  0xdb   :  { %v489_v52 = vadd.f32 %v488_v62, %v474_v20 }
  0xdc   :  { %v579_v45 = vadd.f32 %v578_v31, %v577_v38 }
  0xde   :  { %v580_v13 = vmul.f32 1e-12, %v579_v45 }
  0xe0   :  { %v581_v40 = vadd.f32 1e-30, %v580_v13 }
  0xe4   :  { %v1866_v46 = vpop.eup %1865 }
  0xe5   :  { %v558_v10 = vmul.f32 %v1866_v46, %v554_v14  ;;  %v562_v37 = vmul.f32 %v1866_v46, %v427_v12  ;;  %v566_v26 = vmul.f32 %v1866_v46, %v489_v52  ;;  %v570_v41 = vmul.f32 0.0, %v1866_v46 }
  0xe7   :  { %v563_v29 = vmul.f32 %v558_v10, %v489_v52  ;;  %v565_v21 = vmul.f32 %v558_v10, %v427_v12  ;;  %v568_v16 = vmul.f32 0.0, %v558_v10  ;;  %v2839_v11 = vadd.f32 %v570_v41, %v558_v10 }
  0xe8   :  { %v572_v7 = vsub.f32 %v570_v41, %v558_v10 }
  0xe9   :  { %v564_v30 = vsub.f32 %v562_v37, %v563_v29  ;;  %v567_v4 = vadd.f32 %v566_v26, %v565_v21  ;;  %v569_v27 = vsub.f32 %v1866_v46, %v568_v16  ;;  %v2841_v47 = vadd.f32 %v1866_v46, %v568_v16 }
  0xea   :  { %v574_v24 = vsub.f32 %v570_v41, %v568_v16  ;;  %v2843_v38 = vadd.f32 %v570_v41, %v568_v16  ;;  %v585_v37 = vmul.f32 0.5, %v584_v53 }
  0xeb   :  { %v576_v31 = vand.u32 2147483647, %v564_v30 }
  0xed   :  { %vm2845_vm4 = vcmp.le.f32.partialorder %v576_v31, %v581_v40 }
  0xee   :  { %v583_v60 = vsel %vm2845_vm4, 1.0, %v564_v30 }
  0xef   :  { %1867 = vrcp.f32 %v583_v60 }
  0xf9   :  { %v1868_v29 = vpop.eup %1867 }
  0xfa   :  { %v587_v21 = vmul.f32 %v1868_v29, %v583_v60 }
  0xfc   :  { %v588_v20 = vsub.f32 2.0, %v587_v21  ;;  %v4146_v21 = vmov -1.0  }
  0xfe   :  { %v589_v62 = vmul.f32 %v1868_v29, %v588_v20 }
 0x100   :  { %v590_v45 = vmul.f32 %v589_v62, %v585_v37 }
 0x102   :  { %v594_v16 = vmul.f32 %v590_v45, %v590_v45  ;;  %v593_v13 = vand.u32 2147483647, %v590_v45  ;;  %vm591_vm7 = vcmp.ge.f32.partialorder %v590_v45, 0.0 }
 0x103   :  { %v592_v29 = vsel %vm591_vm7, 1.0, %v4146_v21 }
 0x104   :  { %v595_v12 = vadd.f32 1.0, %v594_v16 }
 0x106   :  { %1869 = vrsqrt.f32 %v595_v12  ;;  %vm598_vm5 = vcmp.eq.f32.partialorder %v595_v12, inf  ;;  %v601_v46 = vand.u32 2147483648, %v595_v12  ;;  %vm600_vm6 = vcmp.eq.f32.partialorder %v595_v12, 0.0 }
 0x110   :  { %v1870_v52 = vpop.eup %1869 }
 0x111   :  { %v597_v10 = vmul.f32 %v1870_v52, %v595_v12  ;;  %v2858_v52 = vadd.f32 %v2819_v18, %v4147_v23 }
 0x113   :  { %v599_v26 = vsel %vm598_vm5, %v595_v12, %v597_v10  ;;  %v636_v45 = vand.u32 2147483647, %v2858_v52 }
 0x114   :  { %v602_v41 = vsel %vm600_vm6, %v601_v46, %v599_v26 }
 0x115   :  { %v603_v40 = vadd.f32 %v602_v41, %v593_v13 }
 0x117   :  { %1871 = vrcp.f32 %v603_v40 }
 0x121   :  { %v1872_v31 = vpop.eup %1871 }
 0x122   :  { %v605_v60 = vmul.f32 %v1872_v31, %v603_v40 }
 0x124   :  { %v606_v53 = vsub.f32 2.0, %v605_v60 }
 0x126   :  { %v607_v37 = vmul.f32 %v1872_v31, %v606_v53 }
 0x128   :  { %v608_v20 = vmul.f32 %v607_v37, %v592_v29 }
 0x12a   :  { %v609_v62 = vsel %vm2845_vm4, 0.0, %v608_v20 }
 0x12b   :  { %v610_v16 = vmul.f32 %v609_v62, %v609_v62  ;;  %v614_v3 = vmul.f32 %v609_v62, %v564_v30 }
 0x12d   :  { %v611_v12 = vadd.f32 1.0, %v610_v16  ;;  %v2861_v46 = vadd.f32 %v614_v3, %v2823_v15 }
 0x12f   :  { %1873 = vrsqrt.f32 %v611_v12  ;;  %v637_v13 = vand.u32 2147483647, %v2861_v46 }
 0x131   :  { %v638_v10 = vadd.f32 %v637_v13, %v636_v45 }
 0x133   :  { %v639_v41 = vmul.f32 1e-12, %v638_v10 }
 0x135   :  { %v640_v16 = vadd.f32 1e-30, %v639_v41 }
 0x139   :  { %v1874_v26 = vpop.eup %1873 }
 0x13a   :  { %v613_v14 = vmul.f32 %v1874_v26, %v609_v62  ;;  %v617_v40 = vmul.f32 0.0, %v1874_v26  ;;  %v621_v31 = vmul.f32 %v1874_v26, %v567_v4  ;;  %v623_v30 = vmul.f32 %v1874_v26, %v569_v27 }
 0x13b   :  { %v627_v60 = vmul.f32 %v1874_v26, %v572_v7  ;;  %v631_v53 = vmul.f32 %v1874_v26, %v574_v24 }
 0x13c   :  { %v618_v23 = vmul.f32 %v613_v14, %v567_v4  ;;  %v620_v18 = vmul.f32 0.0, %v613_v14  ;;  %v625_v29 = vmul.f32 %v613_v14, %v569_v27  ;;  %v629_v37 = vmul.f32 %v613_v14, %v572_v7 }
 0x13d   :  { %v2865_v15 = vsub.f32 %v631_v53, %v613_v14  ;;  %v633_v20 = vmul.f32 %v613_v14, %v574_v24  ;;  %v643_v27 = vsub.f32 %v2861_v46, %v2858_v52 }
 0x13e   :  { %v619_v12 = vsub.f32 %v617_v40, %v618_v23  ;;  %v622_v25 = vadd.f32 %v621_v31, %v620_v18  ;;  %v2867_v2 = vsub.f32 %v623_v30, %v620_v18  ;;  %v626_v45 = vadd.f32 %v625_v29, %v617_v40 }
 0x13f   :  { %v2869_v13 = vsub.f32 %v627_v60, %v620_v18  ;;  %v630_v62 = vadd.f32 %v629_v37, %v617_v40  ;;  %v2871_v10 = vadd.f32 %v1874_v26, %v633_v20  ;;  %v644_v14 = vmul.f32 0.5, %v643_v27 }
 0x140   :  { %v635_v63 = vand.u32 2147483647, %v622_v25 }
 0x142   :  { %vm2873_vm8 = vcmp.le.f32.partialorder %v635_v63, %v640_v16 }
 0x143   :  { %v642_v7 = vsel %vm2873_vm8, 1.0, %v622_v25 }
 0x144   :  { %1875 = vrcp.f32 %v642_v7 }
 0x14e   :  { %v1876_v24 = vpop.eup %1875 }
 0x14f   :  { %v646_v41 = vmul.f32 %v1876_v24, %v642_v7 }
 0x151   :  { %v647_v31 = vsub.f32 2.0, %v646_v41 }
 0x153   :  { %v648_v30 = vmul.f32 %v1876_v24, %v647_v31  ;;  %v2883_v31 = vsub.f32 %v2827_v49, %v614_v3 }
 0x155   :  { %v649_v40 = vmul.f32 %v648_v30, %v644_v14 }
 0x157   :  { %v653_v26 = vmul.f32 %v649_v40, %v649_v40  ;;  %v652_v23 = vand.u32 2147483647, %v649_v40  ;;  %vm650_vm11 = vcmp.ge.f32.partialorder %v649_v40, 0.0  ;;  %v701_v40 = vand.u32 2147483647, %v2883_v31 }
 0x158   :  { %v651_v24 = vsel %vm650_vm11, 1.0, %v4146_v21 }
 0x159   :  { %v654_v60 = vadd.f32 1.0, %v653_v26 }
 0x15b   :  { %1877 = vrsqrt.f32 %v654_v60  ;;  %vm657_vm9 = vcmp.eq.f32.partialorder %v654_v60, inf  ;;  %v660_v53 = vand.u32 2147483648, %v654_v60  ;;  %vm659_vm10 = vcmp.eq.f32.partialorder %v654_v60, 0.0 }
 0x165   :  { %v1878_v63 = vpop.eup %1877 }
 0x166   :  { %v656_v18 = vmul.f32 %v1878_v63, %v654_v60 }
 0x168   :  { %v658_v29 = vsel %vm657_vm9, %v654_v60, %v656_v18 }
 0x169   :  { %v661_v37 = vsel %vm659_vm10, %v660_v53, %v658_v29 }
 0x16a   :  { %v662_v20 = vadd.f32 %v661_v37, %v652_v23 }
 0x16c   :  { %1879 = vrcp.f32 %v662_v20 }
 0x176   :  { %v1880_v16 = vpop.eup %1879 }
 0x177   :  { %v664_v7 = vmul.f32 %v1880_v16, %v662_v20 }
 0x179   :  { %v665_v27 = vsub.f32 2.0, %v664_v7 }
 0x17b   :  { %v666_v41 = vmul.f32 %v1880_v16, %v665_v27 }
 0x17d   :  { %v667_v14 = vmul.f32 %v666_v41, %v651_v24 }
 0x17f   :  { %v668_v30 = vsel %vm2873_vm8, 0.0, %v667_v14 }
 0x180   :  { %v669_v26 = vmul.f32 %v668_v30, %v668_v30  ;;  %v2887_v63 = vmul.f32 %v668_v30, %v622_v25 }
 0x182   :  { %v670_v60 = vadd.f32 1.0, %v669_v26  ;;  %v2891_v53 = vsub.f32 %v2858_v52, %v2887_v63 }
 0x184   :  { %1881 = vrsqrt.f32 %v670_v60  ;;  %v702_v23 = vand.u32 2147483647, %v2891_v53 }
 0x186   :  { %v703_v18 = vadd.f32 %v702_v23, %v701_v40 }
 0x188   :  { %v704_v29 = vmul.f32 1e-12, %v703_v18 }
 0x18a   :  { %v705_v49 = vadd.f32 1e-30, %v704_v29 }
 0x18e   :  { %v1882_v3 = vpop.eup %1881 }
 0x18f   :  { %v672_v37 = vmul.f32 %v1882_v3, %v668_v30  ;;  %v676_v4 = vmul.f32 %v1882_v3, %v619_v12  ;;  %v680_v20 = vmul.f32 0.0, %v1882_v3  ;;  %v682_v25 = vmul.f32 %v1882_v3, %v2839_v11 }
 0x190   :  { %v686_v16 = vmul.f32 %v1882_v3, %v626_v45  ;;  %v688_v7 = vmul.f32 %v1882_v3, %v2841_v47  ;;  %v692_v27 = vmul.f32 %v1882_v3, %v630_v62  ;;  %v694_v52 = vmul.f32 %v1882_v3, %v2843_v38 }
 0x191   :  { %v677_v24 = vmul.f32 0.0, %v672_v37  ;;  %v679_v41 = vmul.f32 %v672_v37, %v619_v12  ;;  %v683_v14 = vmul.f32 %v672_v37, %v626_v45  ;;  %v685_v26 = vmul.f32 %v672_v37, %v2839_v11 }
 0x192   :  { %v689_v60 = vmul.f32 %v672_v37, %v630_v62  ;;  %v691_v40 = vmul.f32 %v672_v37, %v2841_v47  ;;  %v695_v30 = vmul.f32 %v672_v37, %v2871_v10  ;;  %v697_v23 = vmul.f32 %v672_v37, %v2843_v38 }
 0x193   :  { %v678_v18 = vsub.f32 %v676_v4, %v677_v24  ;;  %v681_v29 = vadd.f32 %v680_v20, %v679_v41  ;;  %v684_v17 = vsub.f32 %v682_v25, %v683_v14  ;;  %v2902_v22 = vadd.f32 %v686_v16, %v685_v26 }
 0x194   :  { %v690_v32 = vsub.f32 %v688_v7, %v689_v60  ;;  %v2904_v0 = vadd.f32 %v692_v27, %v691_v40  ;;  %v2906_v51 = vsub.f32 %v694_v52, %v695_v30  ;;  %v698_v12 = vmul.f32 %v1882_v3, %v2871_v10 }
 0x195   :  { %v700_v11 = vand.u32 2147483647, %v678_v18  ;;  %v708_v62 = vsub.f32 %v2891_v53, %v2883_v31 }
 0x196   :  { %v2909_v45 = vadd.f32 %v698_v12, %v697_v23 }
 0x197   :  { %vm2911_vm12 = vcmp.le.f32.partialorder %v700_v11, %v705_v49  ;;  %v709_v20 = vmul.f32 0.5, %v708_v62 }
 0x198   :  { %v707_v38 = vsel %vm2911_vm12, 1.0, %v678_v18 }
 0x199   :  { %1883 = vrcp.f32 %v707_v38 }
 0x1a3   :  { %v1884_v37 = vpop.eup %1883 }
 0x1a4   :  { %v711_v4 = vmul.f32 %v1884_v37, %v707_v38  ;;  %v2922_v38 = vadd.f32 %v2887_v63, %v2861_v46 }
 0x1a6   :  { %v712_v25 = vsub.f32 2.0, %v711_v4 }
 0x1a8   :  { %v713_v16 = vmul.f32 %v1884_v37, %v712_v25 }
 0x1aa   :  { %v714_v10 = vmul.f32 %v713_v16, %v709_v20  ;;  %v767_v16 = vand.u32 2147483647, %v2922_v38 }
 0x1ac   :  { %v718_v3 = vmul.f32 %v714_v10, %v714_v10  ;;  %v717_v52 = vand.u32 2147483647, %v714_v10  ;;  %vm715_vm15 = vcmp.ge.f32.partialorder %v714_v10, 0.0 }
 0x1ad   :  { %v716_v23 = vsel %vm715_vm15, 1.0, %v4146_v21 }
 0x1ae   :  { %v719_v7 = vadd.f32 1.0, %v718_v3 }
 0x1b0   :  { %1885 = vrsqrt.f32 %v719_v7  ;;  %vm722_vm13 = vcmp.eq.f32.partialorder %v719_v7, inf  ;;  %v725_v27 = vand.u32 2147483648, %v719_v7  ;;  %vm724_vm14 = vcmp.eq.f32.partialorder %v719_v7, 0.0 }
 0x1ba   :  { %v1886_v49 = vpop.eup %1885 }
 0x1bb   :  { %v721_v24 = vmul.f32 %v1886_v49, %v719_v7 }
 0x1bd   :  { %v723_v41 = vsel %vm722_vm13, %v719_v7, %v721_v24 }
 0x1be   :  { %v726_v14 = vsel %vm724_vm14, %v725_v27, %v723_v41 }
 0x1bf   :  { %v727_v26 = vadd.f32 %v726_v14, %v717_v52 }
 0x1c1   :  { %1887 = vrcp.f32 %v727_v26 }
 0x1cb   :  { %v1888_v60 = vpop.eup %1887 }
 0x1cc   :  { %v729_v40 = vmul.f32 %v1888_v60, %v727_v26 }
 0x1ce   :  { %v730_v30 = vsub.f32 2.0, %v729_v40 }
 0x1d0   :  { %v731_v12 = vmul.f32 %v1888_v60, %v730_v30 }
 0x1d2   :  { %v732_v11 = vmul.f32 %v731_v12, %v716_v23 }
 0x1d4   :  { %v733_v62 = vsel %vm2911_vm12, 0.0, %v732_v11 }
 0x1d5   :  { %v734_v37 = vmul.f32 %v733_v62, %v733_v62  ;;  %v2926_v4 = vmul.f32 %v733_v62, %v678_v18 }
 0x1d7   :  { %v735_v20 = vadd.f32 1.0, %v734_v37  ;;  %v2930_v25 = vsub.f32 %v2883_v31, %v2926_v4 }
 0x1d9   :  { %1889 = vrsqrt.f32 %v735_v20  ;;  %v766_v10 = vand.u32 2147483647, %v2930_v25 }
 0x1db   :  { %v768_v3 = vadd.f32 %v767_v16, %v766_v10 }
 0x1dd   :  { %v769_v7 = vmul.f32 1e-12, %v768_v3 }
 0x1df   :  { %v770_v63 = vadd.f32 1e-30, %v769_v7 }
 0x1e3   :  { %v1890_v46 = vpop.eup %1889 }
 0x1e4   :  { %v737_v49 = vmul.f32 %v1890_v46, %v733_v62  ;;  %v741_v47 = vmul.f32 %v1890_v46, %v681_v29  ;;  %v745_v27 = vmul.f32 0.0, %v1890_v46  ;;  %v747_v18 = vmul.f32 %v1890_v46, %v2867_v2 }
 0x1e5   :  { %v751_v52 = vmul.f32 %v1890_v46, %v684_v17  ;;  %v753_v24 = vmul.f32 %v1890_v46, %v2869_v13  ;;  %v757_v41 = vmul.f32 %v1890_v46, %v690_v32  ;;  %v759_v31 = vmul.f32 %v1890_v46, %v2865_v15 }
 0x1e6   :  { %v742_v14 = vmul.f32 0.0, %v737_v49  ;;  %v744_v26 = vmul.f32 %v737_v49, %v681_v29  ;;  %v748_v60 = vmul.f32 %v737_v49, %v684_v17  ;;  %v750_v40 = vmul.f32 %v737_v49, %v2867_v2 }
 0x1e7   :  { %v754_v30 = vmul.f32 %v737_v49, %v690_v32  ;;  %v756_v23 = vmul.f32 %v737_v49, %v2869_v13  ;;  %v760_v12 = vmul.f32 %v737_v49, %v2906_v51  ;;  %v762_v11 = vmul.f32 %v737_v49, %v2865_v15 }
 0x1e8   :  { %v743_v62 = vsub.f32 %v741_v47, %v742_v14  ;;  %v746_v37 = vadd.f32 %v745_v27, %v744_v26  ;;  %v749_v20 = vsub.f32 %v747_v18, %v748_v60  ;;  %v2941_v16 = vadd.f32 %v751_v52, %v750_v40 }
 0x1e9   :  { %v755_v10 = vsub.f32 %v753_v24, %v754_v30  ;;  %v2943_v3 = vadd.f32 %v757_v41, %v756_v23  ;;  %v761_v7 = vsub.f32 %v759_v31, %v760_v12  ;;  %v763_v17 = vmul.f32 %v1890_v46, %v2906_v51 }
 0x1ea   :  { %v765_v29 = vand.u32 2147483647, %v743_v62  ;;  %v773_v13 = vsub.f32 %v2922_v38, %v2930_v25 }
 0x1eb   :  { %v2946_v2 = vadd.f32 %v763_v17, %v762_v11 }
 0x1ec   :  { %vm2948_vm0 = vcmp.le.f32.partialorder %v765_v29, %v770_v63  ;;  %v774_v27 = vmul.f32 0.5, %v773_v13 }
 0x1ed   :  { %v772_v15 = vsel %vm2948_vm0, 1.0, %v743_v62 }
 0x1ee   :  { %1891 = vrcp.f32 %v772_v15 }
 0x1f8   :  { %v1892_v49 = vpop.eup %1891 }
 0x1f9   :  { %v776_v47 = vmul.f32 %v1892_v49, %v772_v15  ;;  %v2959_v15 = vadd.f32 %v2926_v4, %v2891_v53 }
 0x1fb   :  { %v777_v18 = vsub.f32 2.0, %v776_v47 }
 0x1fd   :  { %v778_v52 = vmul.f32 %v1892_v49, %v777_v18 }
 0x1ff   :  { %v779_v51 = vmul.f32 %v778_v52, %v774_v27  ;;  %v831_v52 = vand.u32 2147483647, %v2959_v15 }
 0x201   :  { %v783_v46 = vmul.f32 %v779_v51, %v779_v51  ;;  %v782_v31 = vand.u32 2147483647, %v779_v51  ;;  %vm780_vm3 = vcmp.ge.f32.partialorder %v779_v51, 0.0 }
 0x202   :  { %v781_v11 = vsel %vm780_vm3, 1.0, %v4146_v21 }
 0x203   :  { %v784_v24 = vadd.f32 1.0, %v783_v46 }
 0x205   :  { %1893 = vrsqrt.f32 %v784_v24  ;;  %vm787_vm1 = vcmp.eq.f32.partialorder %v784_v24, inf  ;;  %v790_v41 = vand.u32 2147483648, %v784_v24  ;;  %vm789_vm2 = vcmp.eq.f32.partialorder %v784_v24, 0.0 }
 0x20f   :  { %v1894_v63 = vpop.eup %1893 }
 0x210   :  { %v786_v14 = vmul.f32 %v1894_v63, %v784_v24 }
 0x212   :  { %v788_v26 = vsel %vm787_vm1, %v784_v24, %v786_v14 }
 0x213   :  { %v791_v60 = vsel %vm789_vm2, %v790_v41, %v788_v26 }
 0x214   :  { %v792_v40 = vadd.f32 %v791_v60, %v782_v31 }
 0x216   :  { %1895 = vrcp.f32 %v792_v40 }
 0x220   :  { %v1896_v30 = vpop.eup %1895 }
 0x221   :  { %v794_v23 = vmul.f32 %v1896_v30, %v792_v40 }
 0x223   :  { %v795_v12 = vsub.f32 2.0, %v794_v23 }
 0x225   :  { %v796_v17 = vmul.f32 %v1896_v30, %v795_v12 }
 0x227   :  { %v797_v29 = vmul.f32 %v796_v17, %v781_v11 }
 0x229   :  { %v798_v13 = vsel %vm2948_vm0, 0.0, %v797_v29 }
 0x22a   :  { %v799_v49 = vmul.f32 %v798_v13, %v798_v13  ;;  %v2963_v47 = vmul.f32 %v798_v13, %v743_v62 }
 0x22c   :  { %v800_v27 = vadd.f32 1.0, %v799_v49  ;;  %v2967_v18 = vadd.f32 %v2963_v47, %v2922_v38 }
 0x22e   :  { %1897 = vrsqrt.f32 %v800_v27  ;;  %v832_v51 = vand.u32 2147483647, %v2967_v18 }
 0x230   :  { %v833_v46 = vadd.f32 %v832_v51, %v831_v52 }
 0x232   :  { %v834_v24 = vmul.f32 1e-12, %v833_v46 }
 0x234   :  { %v835_v4 = vadd.f32 1e-30, %v834_v24 }
 0x238   :  { %v1898_v53 = vpop.eup %1897 }
 0x239   :  { %v802_v63 = vmul.f32 %v1898_v53, %v798_v13  ;;  %v806_v32 = vmul.f32 0.0, %v1898_v53  ;;  %v810_v41 = vmul.f32 %v1898_v53, %v746_v37  ;;  %v812_v31 = vmul.f32 %v1898_v53, %v749_v20 }
 0x23a   :  { %v816_v62 = vmul.f32 %v1898_v53, %v2902_v22  ;;  %v818_v14 = vmul.f32 %v1898_v53, %v755_v10  ;;  %v822_v26 = vmul.f32 %v1898_v53, %v2904_v0  ;;  %v824_v38 = vmul.f32 %v1898_v53, %v761_v7 }
 0x23b   :  { %v807_v60 = vmul.f32 %v802_v63, %v746_v37  ;;  %v809_v40 = vmul.f32 0.0, %v802_v63  ;;  %v813_v30 = vmul.f32 %v802_v63, %v2902_v22  ;;  %v815_v23 = vmul.f32 %v802_v63, %v749_v20 }
 0x23c   :  { %v819_v12 = vmul.f32 %v802_v63, %v2904_v0  ;;  %v821_v11 = vmul.f32 %v802_v63, %v755_v10  ;;  %v825_v17 = vmul.f32 %v802_v63, %v2909_v45  ;;  %v827_v29 = vmul.f32 %v802_v63, %v761_v7 }
 0x23d   :  { %v808_v13 = vsub.f32 %v806_v32, %v807_v60  ;;  %v811_v49 = vadd.f32 %v810_v41, %v809_v40  ;;  %v2976_v27 = vsub.f32 %v812_v31, %v813_v30  ;;  %v817_v52 = vadd.f32 %v816_v62, %v815_v23 }
 0x23e   :  { %v2978_v51 = vsub.f32 %v818_v14, %v819_v12  ;;  %v823_v46 = vadd.f32 %v822_v26, %v821_v11  ;;  %v2980_v24 = vsub.f32 %v824_v38, %v825_v17  ;;  %v828_v37 = vmul.f32 %v1898_v53, %v2909_v45 }
 0x23f   :  { %v830_v22 = vand.u32 2147483647, %v811_v49  ;;  %v838_v7 = vsub.f32 %v2967_v18, %v2959_v15 }
 0x240   :  { %v2983_v20 = vadd.f32 %v828_v37, %v827_v29 }
 0x241   :  { %vm2985_vm4 = vcmp.le.f32.partialorder %v830_v22, %v835_v4  ;;  %v839_v41 = vmul.f32 0.5, %v838_v7 }
 0x242   :  { %v837_v10 = vsel %vm2985_vm4, 1.0, %v811_v49 }
 0x243   :  { %1899 = vrcp.f32 %v837_v10 }
 0x24d   :  { %v1900_v63 = vpop.eup %1899 }
 0x24e   :  { %v841_v32 = vmul.f32 %v1900_v63, %v837_v10  ;;  %v2996_v10 = vsub.f32 %v2930_v25, %v2963_v47 }
 0x250   :  { %v842_v31 = vsub.f32 2.0, %v841_v32 }
 0x252   :  { %v843_v62 = vmul.f32 %v1900_v63, %v842_v31 }
 0x254   :  { %v844_v45 = vmul.f32 %v843_v62, %v839_v41  ;;  %v896_v62 = vand.u32 2147483647, %v2996_v10 }
 0x256   :  { %v848_v53 = vmul.f32 %v844_v45, %v844_v45  ;;  %v847_v38 = vand.u32 2147483647, %v844_v45  ;;  %vm845_vm7 = vcmp.ge.f32.partialorder %v844_v45, 0.0 }
 0x257   :  { %v846_v29 = vsel %vm845_vm7, 1.0, %v4146_v21 }
 0x258   :  { %v849_v14 = vadd.f32 1.0, %v848_v53 }
 0x25a   :  { %1901 = vrsqrt.f32 %v849_v14  ;;  %vm852_vm5 = vcmp.eq.f32.partialorder %v849_v14, inf  ;;  %v855_v26 = vand.u32 2147483648, %v849_v14  ;;  %vm854_vm6 = vcmp.eq.f32.partialorder %v849_v14, 0.0 }
 0x264   :  { %v1902_v4 = vpop.eup %1901 }
 0x265   :  { %v851_v60 = vmul.f32 %v1902_v4, %v849_v14 }
 0x267   :  { %v853_v40 = vsel %vm852_vm5, %v849_v14, %v851_v60 }
 0x268   :  { %v856_v30 = vsel %vm854_vm6, %v855_v26, %v853_v40 }
 0x269   :  { %v857_v23 = vadd.f32 %v856_v30, %v847_v38 }
 0x26b   :  { %1903 = vrcp.f32 %v857_v23 }
 0x275   :  { %v1904_v12 = vpop.eup %1903 }
 0x276   :  { %v859_v11 = vmul.f32 %v1904_v12, %v857_v23 }
 0x278   :  { %v860_v17 = vsub.f32 2.0, %v859_v11 }
 0x27a   :  { %v861_v37 = vmul.f32 %v1904_v12, %v860_v17 }
 0x27c   :  { %v862_v22 = vmul.f32 %v861_v37, %v846_v29 }
 0x27e   :  { %v863_v7 = vsel %vm2985_vm4, 0.0, %v862_v22 }
 0x27f   :  { %v864_v63 = vmul.f32 %v863_v7, %v863_v7  ;;  %v3000_v32 = vmul.f32 %v863_v7, %v811_v49 }
 0x281   :  { %v865_v41 = vadd.f32 1.0, %v864_v63  ;;  %v3004_v31 = vsub.f32 %v2959_v15, %v3000_v32 }
 0x283   :  { %1905 = vrsqrt.f32 %v865_v41  ;;  %v897_v45 = vand.u32 2147483647, %v3004_v31 }
 0x285   :  { %v898_v53 = vadd.f32 %v897_v45, %v896_v62 }
 0x287   :  { %v899_v14 = vmul.f32 1e-12, %v898_v53 }
 0x289   :  { %v900_v47 = vadd.f32 1e-30, %v899_v14 }
 0x28d   :  { %v1906_v25 = vpop.eup %1905 }
 0x28e   :  { %v867_v4 = vmul.f32 %v1906_v25, %v863_v7  ;;  %v871_v0 = vmul.f32 %v1906_v25, %v808_v13  ;;  %v875_v26 = vmul.f32 0.0, %v1906_v25  ;;  %v877_v49 = vmul.f32 %v1906_v25, %v2941_v16 }
 0x28f   :  { %v881_v38 = vmul.f32 %v1906_v25, %v817_v52  ;;  %v883_v60 = vmul.f32 %v1906_v25, %v2943_v3  ;;  %v887_v40 = vmul.f32 %v1906_v25, %v823_v46  ;;  %v889_v15 = vmul.f32 %v1906_v25, %v2946_v2 }
 0x290   :  { %v872_v30 = vmul.f32 0.0, %v867_v4  ;;  %v874_v23 = vmul.f32 %v867_v4, %v808_v13  ;;  %v878_v12 = vmul.f32 %v867_v4, %v817_v52  ;;  %v880_v11 = vmul.f32 %v867_v4, %v2941_v16 }
 0x291   :  { %v884_v17 = vmul.f32 %v867_v4, %v823_v46  ;;  %v886_v29 = vmul.f32 %v867_v4, %v2943_v3  ;;  %v890_v37 = vmul.f32 %v867_v4, %v2983_v20  ;;  %v892_v22 = vmul.f32 %v867_v4, %v2946_v2 }
 0x292   :  { %v873_v7 = vsub.f32 %v871_v0, %v872_v30  ;;  %v876_v63 = vadd.f32 %v875_v26, %v874_v23  ;;  %v879_v41 = vsub.f32 %v877_v49, %v878_v12  ;;  %v3015_v62 = vadd.f32 %v881_v38, %v880_v11 }
 0x293   :  { %v885_v45 = vsub.f32 %v883_v60, %v884_v17  ;;  %v3017_v53 = vadd.f32 %v887_v40, %v886_v29  ;;  %v3019_v14 = vsub.f32 %v889_v15, %v890_v37  ;;  %v893_v13 = vmul.f32 %v1906_v25, %v2983_v20 }
 0x294   :  { %v895_v16 = vand.u32 2147483647, %v873_v7  ;;  %v903_v46 = vsub.f32 %v3004_v31, %v2996_v10 }
 0x295   :  { %v3022_v52 = vadd.f32 %v893_v13, %v892_v22 }
 0x296   :  { %vm3024_vm8 = vcmp.le.f32.partialorder %v895_v16, %v900_v47  ;;  %v904_v26 = vmul.f32 0.5, %v903_v46 }
 0x297   :  { %v902_v2 = vsel %vm3024_vm8, 1.0, %v873_v7 }
 0x298   :  { %1907 = vrcp.f32 %v902_v2 }
 0x2a2   :  { %v1908_v4 = vpop.eup %1907 }
 0x2a3   :  { %v906_v0 = vmul.f32 %v1908_v4, %v902_v2  ;;  %v3035_v2 = vadd.f32 %v3000_v32, %v2967_v18 }
 0x2a5   :  { %v907_v49 = vsub.f32 2.0, %v906_v0 }
 0x2a7   :  { %v908_v38 = vmul.f32 %v1908_v4, %v907_v49 }
 0x2a9   :  { %v909_v20 = vmul.f32 %v908_v38, %v904_v26  ;;  %v962_v38 = vand.u32 2147483647, %v3035_v2 }
 0x2ab   :  { %v913_v25 = vmul.f32 %v909_v20, %v909_v20  ;;  %v912_v15 = vand.u32 2147483647, %v909_v20  ;;  %vm910_vm11 = vcmp.ge.f32.partialorder %v909_v20, 0.0 }
 0x2ac   :  { %v911_v22 = vsel %vm910_vm11, 1.0, %v4146_v21 }
 0x2ad   :  { %v914_v60 = vadd.f32 1.0, %v913_v25 }
 0x2af   :  { %1909 = vrsqrt.f32 %v914_v60  ;;  %vm917_vm9 = vcmp.eq.f32.partialorder %v914_v60, inf  ;;  %v920_v40 = vand.u32 2147483648, %v914_v60  ;;  %vm919_vm10 = vcmp.eq.f32.partialorder %v914_v60, 0.0 }
 0x2b9   :  { %v1910_v47 = vpop.eup %1909 }
 0x2ba   :  { %v916_v30 = vmul.f32 %v1910_v47, %v914_v60 }
 0x2bc   :  { %v918_v23 = vsel %vm917_vm9, %v914_v60, %v916_v30 }
 0x2bd   :  { %v921_v12 = vsel %vm919_vm10, %v920_v40, %v918_v23 }
 0x2be   :  { %v922_v11 = vadd.f32 %v921_v12, %v912_v15 }
 0x2c0   :  { %1911 = vrcp.f32 %v922_v11 }
 0x2ca   :  { %v1912_v17 = vpop.eup %1911 }
 0x2cb   :  { %v924_v29 = vmul.f32 %v1912_v17, %v922_v11 }
 0x2cd   :  { %v925_v37 = vsub.f32 2.0, %v924_v29 }
 0x2cf   :  { %v926_v13 = vmul.f32 %v1912_v17, %v925_v37 }
 0x2d1   :  { %v927_v16 = vmul.f32 %v926_v13, %v911_v22 }
 0x2d3   :  { %v928_v46 = vsel %vm3024_vm8, 0.0, %v927_v16 }
 0x2d4   :  { %v929_v4 = vmul.f32 %v928_v46, %v928_v46  ;;  %v3039_v0 = vmul.f32 %v928_v46, %v873_v7 }
 0x2d6   :  { %v930_v26 = vadd.f32 1.0, %v929_v4  ;;  %v3043_v49 = vsub.f32 %v2996_v10, %v3039_v0 }
 0x2d8   :  { %1913 = vrsqrt.f32 %v930_v26  ;;  %v961_v20 = vand.u32 2147483647, %v3043_v49 }
 0x2da   :  { %v963_v25 = vadd.f32 %v962_v38, %v961_v20 }
 0x2dc   :  { %v964_v60 = vmul.f32 1e-12, %v963_v25 }
 0x2de   :  { %v965_v32 = vadd.f32 1e-30, %v964_v60 }
 0x2e2   :  { %v1914_v18 = vpop.eup %1913 }
 0x2e3   :  { %v932_v47 = vmul.f32 %v1914_v18, %v928_v46  ;;  %v936_v3 = vmul.f32 %v1914_v18, %v876_v63  ;;  %v940_v40 = vmul.f32 0.0, %v1914_v18  ;;  %v942_v7 = vmul.f32 %v1914_v18, %v2976_v27 }
 0x2e4   :  { %v946_v15 = vmul.f32 %v1914_v18, %v879_v41  ;;  %v948_v30 = vmul.f32 %v1914_v18, %v2978_v51  ;;  %v952_v23 = vmul.f32 %v1914_v18, %v885_v45  ;;  %v954_v10 = vmul.f32 %v1914_v18, %v2980_v24 }
 0x2e5   :  { %v937_v12 = vmul.f32 0.0, %v932_v47  ;;  %v939_v11 = vmul.f32 %v932_v47, %v876_v63  ;;  %v943_v17 = vmul.f32 %v932_v47, %v879_v41  ;;  %v945_v29 = vmul.f32 %v932_v47, %v2976_v27 }
 0x2e6   :  { %v949_v37 = vmul.f32 %v932_v47, %v885_v45  ;;  %v951_v22 = vmul.f32 %v932_v47, %v2978_v51  ;;  %v955_v13 = vmul.f32 %v932_v47, %v3019_v14  ;;  %v957_v16 = vmul.f32 %v932_v47, %v2980_v24 }
 0x2e7   :  { %v938_v46 = vsub.f32 %v936_v3, %v937_v12  ;;  %v941_v4 = vadd.f32 %v940_v40, %v939_v11  ;;  %v944_v26 = vsub.f32 %v942_v7, %v943_v17  ;;  %v3054_v38 = vadd.f32 %v946_v15, %v945_v29 }
 0x2e8   :  { %v950_v20 = vsub.f32 %v948_v30, %v949_v37  ;;  %v3056_v25 = vadd.f32 %v952_v23, %v951_v22  ;;  %v956_v60 = vsub.f32 %v954_v10, %v955_v13  ;;  %v958_v63 = vmul.f32 %v1914_v18, %v3019_v14 }
 0x2e9   :  { %v960_v41 = vand.u32 2147483647, %v938_v46  ;;  %v968_v45 = vsub.f32 %v3035_v2, %v3043_v49 }
 0x2ea   :  { %v3059_v27 = vadd.f32 %v958_v63, %v957_v16 }
 0x2eb   :  { %vm3061_vm12 = vcmp.le.f32.partialorder %v960_v41, %v965_v32  ;;  %v969_v40 = vmul.f32 0.5, %v968_v45 }
 0x2ec   :  { %v967_v24 = vsel %vm3061_vm12, 1.0, %v938_v46 }
 0x2ed   :  { %1915 = vrcp.f32 %v967_v24 }
 0x2f7   :  { %v1916_v47 = vpop.eup %1915 }
 0x2f8   :  { %v971_v3 = vmul.f32 %v1916_v47, %v967_v24  ;;  %v3072_v24 = vadd.f32 %v3039_v0, %v3004_v31 }
 0x2fa   :  { %v972_v7 = vsub.f32 2.0, %v971_v3 }
 0x2fc   :  { %v973_v15 = vmul.f32 %v1916_v47, %v972_v7 }
 0x2fe   :  { %v974_v14 = vmul.f32 %v973_v15, %v969_v40  ;;  %v1026_v15 = vand.u32 2147483647, %v3072_v24 }
 0x300   :  { %v978_v18 = vmul.f32 %v974_v14, %v974_v14  ;;  %v977_v10 = vand.u32 2147483647, %v974_v14  ;;  %vm975_vm15 = vcmp.ge.f32.partialorder %v974_v14, 0.0 }
 0x301   :  { %v976_v16 = vsel %vm975_vm15, 1.0, %v4146_v21 }
 0x302   :  { %v979_v30 = vadd.f32 1.0, %v978_v18 }
 0x304   :  { %1917 = vrsqrt.f32 %v979_v30  ;;  %vm982_vm13 = vcmp.eq.f32.partialorder %v979_v30, inf  ;;  %v985_v23 = vand.u32 2147483648, %v979_v30  ;;  %vm984_vm14 = vcmp.eq.f32.partialorder %v979_v30, 0.0 }
 0x30e   :  { %v1918_v32 = vpop.eup %1917 }
 0x30f   :  { %v981_v12 = vmul.f32 %v1918_v32, %v979_v30 }
 0x311   :  { %v983_v11 = vsel %vm982_vm13, %v979_v30, %v981_v12 }
 0x312   :  { %v986_v17 = vsel %vm984_vm14, %v985_v23, %v983_v11 }
 0x313   :  { %v987_v29 = vadd.f32 %v986_v17, %v977_v10 }
 0x315   :  { %1919 = vrcp.f32 %v987_v29 }
 0x31f   :  { %v1920_v37 = vpop.eup %1919 }
 0x320   :  { %v989_v22 = vmul.f32 %v1920_v37, %v987_v29 }
 0x322   :  { %v990_v13 = vsub.f32 2.0, %v989_v22 }
 0x324   :  { %v991_v63 = vmul.f32 %v1920_v37, %v990_v13 }
 0x326   :  { %v992_v41 = vmul.f32 %v991_v63, %v976_v16 }
 0x328   :  { %v993_v45 = vsel %vm3061_vm12, 0.0, %v992_v41 }
 0x329   :  { %v994_v47 = vmul.f32 %v993_v45, %v993_v45  ;;  %v3076_v3 = vmul.f32 %v993_v45, %v938_v46 }
 0x32b   :  { %v995_v40 = vadd.f32 1.0, %v994_v47  ;;  %v3080_v7 = vadd.f32 %v3076_v3, %v3035_v2 }
 0x32d   :  { %1921 = vrsqrt.f32 %v995_v40  ;;  %v1027_v14 = vand.u32 2147483647, %v3080_v7 }
 0x32f   :  { %v1028_v18 = vadd.f32 %v1027_v14, %v1026_v15 }
 0x331   :  { %v1029_v30 = vmul.f32 1e-12, %v1028_v18 }
 0x333   :  { %v1030_v0 = vadd.f32 1e-30, %v1029_v30 }
 0x337   :  { %v1922_v31 = vpop.eup %1921 }
 0x338   :  { %v997_v32 = vmul.f32 %v1922_v31, %v993_v45  ;;  %v1001_v51 = vmul.f32 0.0, %v1922_v31  ;;  %v1005_v23 = vmul.f32 %v1922_v31, %v941_v4  ;;  %v1007_v10 = vmul.f32 %v1922_v31, %v944_v26 }
 0x339   :  { %v1011_v46 = vmul.f32 %v1922_v31, %v3015_v62  ;;  %v1013_v12 = vmul.f32 %v1922_v31, %v950_v20  ;;  %v1017_v11 = vmul.f32 %v1922_v31, %v3017_v53  ;;  %v1019_v2 = vmul.f32 %v1922_v31, %v956_v60 }
 0x33a   :  { %v1002_v17 = vmul.f32 %v997_v32, %v941_v4  ;;  %v1004_v29 = vmul.f32 0.0, %v997_v32  ;;  %v1008_v37 = vmul.f32 %v997_v32, %v3015_v62  ;;  %v1010_v22 = vmul.f32 %v997_v32, %v944_v26 }
 0x33b   :  { %v1014_v13 = vmul.f32 %v997_v32, %v3017_v53  ;;  %v1016_v16 = vmul.f32 %v997_v32, %v950_v20  ;;  %v1020_v63 = vmul.f32 %v997_v32, %v3022_v52  ;;  %v1022_v41 = vmul.f32 %v997_v32, %v956_v60 }
 0x33c   :  { %v1003_v45 = vsub.f32 %v1001_v51, %v1002_v17  ;;  %v1006_v47 = vadd.f32 %v1005_v23, %v1004_v29  ;;  %v3089_v40 = vsub.f32 %v1007_v10, %v1008_v37  ;;  %v1012_v15 = vadd.f32 %v1011_v46, %v1010_v22 }
 0x33d   :  { %v3091_v14 = vsub.f32 %v1013_v12, %v1014_v13  ;;  %v1018_v18 = vadd.f32 %v1017_v11, %v1016_v16  ;;  %v3093_v30 = vsub.f32 %v1019_v2, %v1020_v63  ;;  %v1023_v4 = vmul.f32 %v1922_v31, %v3022_v52 }
 0x33e   :  { %v1025_v62 = vand.u32 2147483647, %v1006_v47  ;;  %v1033_v60 = vsub.f32 %v3080_v7, %v3072_v24 }
 0x33f   :  { %v3096_v26 = vadd.f32 %v1023_v4, %v1022_v41 }
 0x340   :  { %vm3098_vm0 = vcmp.le.f32.partialorder %v1025_v62, %v1030_v0  ;;  %v1034_v23 = vmul.f32 0.5, %v1033_v60 }
 0x341   :  { %v1032_v20 = vsel %vm3098_vm0, 1.0, %v1006_v47 }
 0x342   :  { %1923 = vrcp.f32 %v1032_v20 }
 0x34c   :  { %v1924_v32 = vpop.eup %1923 }
 0x34d   :  { %v1036_v51 = vmul.f32 %v1924_v32, %v1032_v20  ;;  %v3109_v20 = vsub.f32 %v3043_v49, %v3076_v3 }
 0x34f   :  { %v1037_v10 = vsub.f32 2.0, %v1036_v51 }
 0x351   :  { %v1038_v46 = vmul.f32 %v1924_v32, %v1037_v10 }
 0x353   :  { %v1039_v52 = vmul.f32 %v1038_v46, %v1034_v23  ;;  %v1091_v46 = vand.u32 2147483647, %v3109_v20 }
 0x355   :  { %v1043_v31 = vmul.f32 %v1039_v52, %v1039_v52  ;;  %v1042_v2 = vand.u32 2147483647, %v1039_v52  ;;  %vm1040_vm3 = vcmp.ge.f32.partialorder %v1039_v52, 0.0 }
 0x356   :  { %v1041_v41 = vsel %vm1040_vm3, 1.0, %v4146_v21 }
 0x357   :  { %v1044_v12 = vadd.f32 1.0, %v1043_v31 }
 0x359   :  { %1925 = vrsqrt.f32 %v1044_v12  ;;  %vm1047_vm1 = vcmp.eq.f32.partialorder %v1044_v12, inf  ;;  %v1050_v11 = vand.u32 2147483648, %v1044_v12  ;;  %vm1049_vm2 = vcmp.eq.f32.partialorder %v1044_v12, 0.0 }
 0x363   :  { %v1926_v0 = vpop.eup %1925 }
 0x364   :  { %v1046_v17 = vmul.f32 %v1926_v0, %v1044_v12 }
 0x366   :  { %v1048_v29 = vsel %vm1047_vm1, %v1044_v12, %v1046_v17 }
 0x367   :  { %v1051_v37 = vsel %vm1049_vm2, %v1050_v11, %v1048_v29 }
 0x368   :  { %v1052_v22 = vadd.f32 %v1051_v37, %v1042_v2 }
 0x36a   :  { %1927 = vrcp.f32 %v1052_v22 }
 0x374   :  { %v1928_v13 = vpop.eup %1927 }
 0x375   :  { %v1054_v16 = vmul.f32 %v1928_v13, %v1052_v22 }
 0x377   :  { %v1055_v63 = vsub.f32 2.0, %v1054_v16 }
 0x379   :  { %v1056_v4 = vmul.f32 %v1928_v13, %v1055_v63 }
 0x37b   :  { %v1057_v62 = vmul.f32 %v1056_v4, %v1041_v41 }
 0x37d   :  { %v1058_v60 = vsel %vm3098_vm0, 0.0, %v1057_v62 }
 0x37e   :  { %v1059_v32 = vmul.f32 %v1058_v60, %v1058_v60  ;;  %v3113_v51 = vmul.f32 %v1058_v60, %v1006_v47 }
 0x380   :  { %v1060_v23 = vadd.f32 1.0, %v1059_v32  ;;  %v3117_v10 = vsub.f32 %v3072_v24, %v3113_v51 }
 0x382   :  { %1929 = vrsqrt.f32 %v1060_v23  ;;  %v1092_v52 = vand.u32 2147483647, %v3117_v10 }
 0x384   :  { %v1093_v31 = vadd.f32 %v1092_v52, %v1091_v46 }
 0x386   :  { %v1094_v12 = vmul.f32 1e-12, %v1093_v31 }
 0x388   :  { %v1095_v3 = vadd.f32 1e-30, %v1094_v12 }
 0x38c   :  { %v1930_v49 = vpop.eup %1929 }
 0x38d   :  { %v1062_v0 = vmul.f32 %v1930_v49, %v1058_v60  ;;  %v1066_v53 = vmul.f32 %v1930_v49, %v1003_v45  ;;  %v1070_v11 = vmul.f32 0.0, %v1930_v49  ;;  %v1072_v47 = vmul.f32 %v1930_v49, %v3054_v38 }
 0x38e   :  { %v1076_v2 = vmul.f32 %v1930_v49, %v1012_v15  ;;  %v1078_v17 = vmul.f32 %v1930_v49, %v3056_v25  ;;  %v1082_v29 = vmul.f32 %v1930_v49, %v1018_v18  ;;  %v1084_v24 = vmul.f32 %v1930_v49, %v3059_v27 }
 0x38f   :  { %v1067_v37 = vmul.f32 0.0, %v1062_v0  ;;  %v1069_v22 = vmul.f32 %v1062_v0, %v1003_v45  ;;  %v1073_v13 = vmul.f32 %v1062_v0, %v1012_v15  ;;  %v1075_v16 = vmul.f32 %v1062_v0, %v3054_v38 }
 0x390   :  { %v1079_v63 = vmul.f32 %v1062_v0, %v1018_v18  ;;  %v1081_v41 = vmul.f32 %v1062_v0, %v3056_v25  ;;  %v1085_v4 = vmul.f32 %v1062_v0, %v3096_v26  ;;  %v1087_v62 = vmul.f32 %v1062_v0, %v3059_v27 }
 0x391   :  { %v1068_v60 = vsub.f32 %v1066_v53, %v1067_v37  ;;  %v1071_v32 = vadd.f32 %v1070_v11, %v1069_v22  ;;  %v1074_v23 = vsub.f32 %v1072_v47, %v1073_v13  ;;  %v3128_v46 = vadd.f32 %v1076_v2, %v1075_v16 }
 0x392   :  { %v1080_v52 = vsub.f32 %v1078_v17, %v1079_v63  ;;  %v3130_v31 = vadd.f32 %v1082_v29, %v1081_v41  ;;  %v3132_v12 = vsub.f32 %v1084_v24, %v1085_v4  ;;  %v1088_v45 = vmul.f32 %v1930_v49, %v3096_v26 }
 0x393   :  { %v1090_v38 = vand.u32 2147483647, %v1068_v60  ;;  %v1098_v18 = vsub.f32 %v3117_v10, %v3109_v20 }
 0x394   :  { %v3135_v15 = vadd.f32 %v1088_v45, %v1087_v62 }
 0x395   :  { %vm3137_vm4 = vcmp.le.f32.partialorder %v1090_v38, %v1095_v3  ;;  %v1099_v11 = vmul.f32 0.5, %v1098_v18 }
 0x396   :  { %v1097_v27 = vsel %vm3137_vm4, 1.0, %v1068_v60 }
 0x397   :  { %1931 = vrcp.f32 %v1097_v27 }
 0x3a1   :  { %v1932_v0 = vpop.eup %1931 }
 0x3a2   :  { %v1101_v53 = vmul.f32 %v1932_v0, %v1097_v27  ;;  %v3148_v27 = vadd.f32 %v3113_v51, %v3080_v7 }
 0x3a4   :  { %v1102_v47 = vsub.f32 2.0, %v1101_v53 }
 0x3a6   :  { %v1103_v2 = vmul.f32 %v1932_v0, %v1102_v47 }
 0x3a8   :  { %v1104_v26 = vmul.f32 %v1103_v2, %v1099_v11  ;;  %v1157_v2 = vand.u32 2147483647, %v3148_v27 }
 0x3aa   :  { %v1108_v49 = vmul.f32 %v1104_v26, %v1104_v26  ;;  %v1107_v24 = vand.u32 2147483647, %v1104_v26  ;;  %vm1105_vm7 = vcmp.ge.f32.partialorder %v1104_v26, 0.0 }
 0x3ab   :  { %v1106_v62 = vsel %vm1105_vm7, 1.0, %v4146_v21 }
 0x3ac   :  { %v1109_v17 = vadd.f32 1.0, %v1108_v49 }
 0x3ae   :  { %1933 = vrsqrt.f32 %v1109_v17  ;;  %vm1112_vm5 = vcmp.eq.f32.partialorder %v1109_v17, inf  ;;  %v1115_v29 = vand.u32 2147483648, %v1109_v17  ;;  %vm1114_vm6 = vcmp.eq.f32.partialorder %v1109_v17, 0.0 }
 0x3b8   :  { %v1934_v3 = vpop.eup %1933 }
 0x3b9   :  { %v1111_v37 = vmul.f32 %v1934_v3, %v1109_v17 }
 0x3bb   :  { %v1113_v22 = vsel %vm1112_vm5, %v1109_v17, %v1111_v37 }
 0x3bc   :  { %v1116_v13 = vsel %vm1114_vm6, %v1115_v29, %v1113_v22 }
 0x3bd   :  { %v1117_v16 = vadd.f32 %v1116_v13, %v1107_v24 }
 0x3bf   :  { %1935 = vrcp.f32 %v1117_v16 }
 0x3c9   :  { %v1936_v63 = vpop.eup %1935 }
 0x3ca   :  { %v1119_v41 = vmul.f32 %v1936_v63, %v1117_v16 }
 0x3cc   :  { %v1120_v4 = vsub.f32 2.0, %v1119_v41 }
 0x3ce   :  { %v1121_v45 = vmul.f32 %v1936_v63, %v1120_v4 }
 0x3d0   :  { %v1122_v38 = vmul.f32 %v1121_v45, %v1106_v62 }
 0x3d2   :  { %v1123_v18 = vsel %vm3137_vm4, 0.0, %v1122_v38 }
 0x3d3   :  { %v1124_v0 = vmul.f32 %v1123_v18, %v1123_v18  ;;  %v3152_v53 = vmul.f32 %v1123_v18, %v1068_v60 }
 0x3d5   :  { %v1125_v11 = vadd.f32 1.0, %v1124_v0  ;;  %v3156_v47 = vsub.f32 %v3109_v20, %v3152_v53 }
 0x3d7   :  { %1937 = vrsqrt.f32 %v1125_v11  ;;  %v1156_v26 = vand.u32 2147483647, %v3156_v47 }
 0x3d9   :  { %v1158_v49 = vadd.f32 %v1157_v2, %v1156_v26 }
 0x3db   :  { %v1159_v17 = vmul.f32 1e-12, %v1158_v49 }
 0x3dd   :  { %v1160_v51 = vadd.f32 1e-30, %v1159_v17 }
 0x3e1   :  { %v1938_v7 = vpop.eup %1937 }
 0x3e2   :  { %v1127_v3 = vmul.f32 %v1938_v7, %v1123_v18  ;;  %v1131_v25 = vmul.f32 %v1938_v7, %v1071_v32  ;;  %v1135_v29 = vmul.f32 0.0, %v1938_v7  ;;  %v1137_v60 = vmul.f32 %v1938_v7, %v3089_v40 }
 0x3e3   :  { %v1141_v24 = vmul.f32 %v1938_v7, %v1074_v23  ;;  %v1143_v37 = vmul.f32 %v1938_v7, %v3091_v14  ;;  %v1147_v22 = vmul.f32 %v1938_v7, %v1080_v52  ;;  %v1149_v20 = vmul.f32 %v1938_v7, %v3093_v30 }
 0x3e4   :  { %v1132_v13 = vmul.f32 0.0, %v1127_v3  ;;  %v1134_v16 = vmul.f32 %v1127_v3, %v1071_v32  ;;  %v1138_v63 = vmul.f32 %v1127_v3, %v1074_v23  ;;  %v1140_v41 = vmul.f32 %v1127_v3, %v3089_v40 }
 0x3e5   :  { %v1144_v4 = vmul.f32 %v1127_v3, %v1080_v52  ;;  %v1146_v62 = vmul.f32 %v1127_v3, %v3091_v14  ;;  %v1150_v45 = vmul.f32 %v1127_v3, %v3132_v12  ;;  %v1152_v38 = vmul.f32 %v1127_v3, %v3093_v30 }
 0x3e6   :  { %v1133_v18 = vsub.f32 %v1131_v25, %v1132_v13  ;;  %v1136_v0 = vadd.f32 %v1135_v29, %v1134_v16  ;;  %v1139_v11 = vsub.f32 %v1137_v60, %v1138_v63  ;;  %v3167_v2 = vadd.f32 %v1141_v24, %v1140_v41 }
 0x3e7   :  { %v1145_v26 = vsub.f32 %v1143_v37, %v1144_v4  ;;  %v3169_v49 = vadd.f32 %v1147_v22, %v1146_v62  ;;  %v1151_v17 = vsub.f32 %v1149_v20, %v1150_v45  ;;  %v1153_v32 = vmul.f32 %v1938_v7, %v3132_v12 }
 0x3e8   :  { %v1155_v23 = vand.u32 2147483647, %v1133_v18  ;;  %v1163_v52 = vsub.f32 %v3148_v27, %v3156_v47 }
 0x3e9   :  { %v3172_v40 = vadd.f32 %v1153_v32, %v1152_v38 }
 0x3ea   :  { %vm3174_vm8 = vcmp.le.f32.partialorder %v1155_v23, %v1160_v51  ;;  %v1164_v29 = vmul.f32 0.5, %v1163_v52 }
 0x3eb   :  { %v1162_v30 = vsel %vm3174_vm8, 1.0, %v1133_v18 }
 0x3ec   :  { %1939 = vrcp.f32 %v1162_v30 }
 0x3f6   :  { %v1940_v3 = vpop.eup %1939 }
 0x3f7   :  { %v1166_v25 = vmul.f32 %v1940_v3, %v1162_v30 }
 0x3f9   :  { %v1167_v60 = vsub.f32 2.0, %v1166_v25  ;;  %v3189_v25 = vadd.f32 %v3152_v53, %v3117_v10 }
 0x3fb   :  { %v1168_v24 = vmul.f32 %v1940_v3, %v1167_v60 }
 0x3fd   :  { %v1169_v12 = vmul.f32 %v1168_v24, %v1164_v29  ;;  %v1218_v24 = vand.u32 2147483647, %v3189_v25 }
 0x3ff   :  { %v1173_v7 = vmul.f32 %v1169_v12, %v1169_v12  ;;  %v1172_v20 = vand.u32 2147483647, %v1169_v12  ;;  %vm1170_vm11 = vcmp.ge.f32.partialorder %v1169_v12, 0.0 }
 0x400   :  { %v1171_v38 = vsel %vm1170_vm11, 1.0, %v4146_v21 }
 0x401   :  { %v1174_v37 = vadd.f32 1.0, %v1173_v7 }
 0x403   :  { %1941 = vrsqrt.f32 %v1174_v37  ;;  %vm1177_vm9 = vcmp.eq.f32.partialorder %v1174_v37, inf  ;;  %v1180_v22 = vand.u32 2147483648, %v1174_v37  ;;  %vm1179_vm10 = vcmp.eq.f32.partialorder %v1174_v37, 0.0 }
 0x40d   :  { %v1942_v51 = vpop.eup %1941 }
 0x40e   :  { %v1176_v13 = vmul.f32 %v1942_v51, %v1174_v37 }
 0x410   :  { %v1178_v16 = vsel %vm1177_vm9, %v1174_v37, %v1176_v13 }
 0x411   :  { %v1181_v63 = vsel %vm1179_vm10, %v1180_v22, %v1178_v16 }
 0x412   :  { %v1182_v41 = vadd.f32 %v1181_v63, %v1172_v20 }
 0x414   :  { %1943 = vrcp.f32 %v1182_v41 }
 0x41e   :  { %v1944_v4 = vpop.eup %1943 }
 0x41f   :  { %v1184_v62 = vmul.f32 %v1944_v4, %v1182_v41 }
 0x421   :  { %v1185_v45 = vsub.f32 2.0, %v1184_v62 }
 0x423   :  { %v1186_v32 = vmul.f32 %v1944_v4, %v1185_v45 }
 0x425   :  { %v1187_v23 = vmul.f32 %v1186_v32, %v1171_v38 }
 0x427   :  { %v1188_v30 = vsel %vm3174_vm8, 0.0, %v1187_v23 }
 0x428   :  { %v1189_v52 = vmul.f32 %v1188_v30, %v1188_v30  ;;  %v3185_v3 = vmul.f32 %v1188_v30, %v1133_v18 }
 0x42a   :  { %v1190_v29 = vadd.f32 1.0, %v1189_v52  ;;  %v3193_v60 = vadd.f32 %v3185_v3, %v3148_v27 }
 0x42c   :  { %1945 = vrsqrt.f32 %v1190_v29  ;;  %v1219_v12 = vand.u32 2147483647, %v3193_v60 }
 0x42e   :  { %v1220_v7 = vadd.f32 %v1219_v12, %v1218_v24 }
 0x430   :  { %v1221_v37 = vmul.f32 1e-12, %v1220_v7 }
 0x436   :  { %v1946_v14 = vpop.eup %1945 }
 0x437   :  { %v1192_v51 = vmul.f32 %v1946_v14, %v1188_v30  ;;  %v1197_v18 = vmul.f32 %v1946_v14, %v1136_v0  ;;  %v1199_v22 = vmul.f32 %v1946_v14, %v1139_v11  ;;  %v1203_v20 = vmul.f32 %v1946_v14, %v3128_v46 }
 0x438   :  { %v1205_v10 = vmul.f32 %v1946_v14, %v1145_v26  ;;  %v1209_v53 = vmul.f32 %v1946_v14, %v3130_v31  ;;  %v1211_v13 = vmul.f32 %v1946_v14, %v1151_v17  ;;  %v1215_v27 = vmul.f32 %v1946_v14, %v3135_v15 }
 0x439   :  { %v1196_v16 = vmul.f32 0.0, %v1192_v51  ;;  %v1200_v63 = vmul.f32 %v1192_v51, %v3128_v46  ;;  %v1202_v41 = vmul.f32 %v1192_v51, %v1139_v11  ;;  %v1206_v4 = vmul.f32 %v1192_v51, %v3130_v31 }
 0x43a   :  { %v1208_v62 = vmul.f32 %v1192_v51, %v1145_v26  ;;  %v1212_v45 = vmul.f32 %v1192_v51, %v3135_v15  ;;  %v1214_v38 = vmul.f32 %v1192_v51, %v1151_v17  ;;  %v1222_v0 = vadd.f32 1e-30, %v1221_v37 }
 0x43b   :  { %v1198_v32 = vadd.f32 %v1197_v18, %v1196_v16  ;;  %v3203_v23 = vsub.f32 %v1199_v22, %v1200_v63  ;;  %v3205_v30 = vadd.f32 %v1203_v20, %v1202_v41  ;;  %v3207_v52 = vsub.f32 %v1205_v10, %v1206_v4 }
 0x43c   :  { %v3209_v29 = vadd.f32 %v1209_v53, %v1208_v62  ;;  %v3211_v24 = vsub.f32 %v1211_v13, %v1212_v45  ;;  %v3213_v46 = vadd.f32 %v1215_v27, %v1214_v38  ;;  %v1225_v26 = vsub.f32 %v3193_v60, %v3189_v25 }
 0x43d   :  { %v1217_v11 = vand.u32 2147483647, %v1198_v32 }
 0x43e   :  { %v1226_v7 = vmul.f32 0.5, %v1225_v26 }
 0x43f   :  { %vm3215_vm12 = vcmp.le.f32.partialorder %v1217_v11, %v1222_v0 }
 0x440   :  { %v1224_v15 = vsel %vm3215_vm12, 1.0, %v1198_v32 }
 0x441   :  { %1947 = vrcp.f32 %v1224_v15 }
 0x44b   :  { %v1948_v17 = vpop.eup %1947 }
 0x44c   :  { %v1228_v12 = vmul.f32 %v1948_v17, %v1224_v15  ;;  %v1194_v15 = vsub.f32 %v3156_v47, %v3185_v3 }
 0x44e   :  { %v1229_v14 = vsub.f32 2.0, %v1228_v12 }
 0x450   :  { %v1230_v37 = vmul.f32 %v1948_v17, %v1229_v14 }
 0x452   :  { %v1231_v51 = vmul.f32 %v1230_v37, %v1226_v7 }
 0x454   :  { %v1235_v18 = vmul.f32 %v1231_v51, %v1231_v51  ;;  %v1234_v53 = vand.u32 2147483647, %v1231_v51  ;;  %vm1232_vm15 = vcmp.ge.f32.partialorder %v1231_v51, 0.0 }
 0x455   :  { %v1233_v45 = vsel %vm1232_vm15, 1.0, %v4146_v21 }
 0x456   :  { %v1236_v22 = vadd.f32 1.0, %v1235_v18 }
 0x458   :  { %1949 = vrsqrt.f32 %v1236_v22  ;;  %vm1239_vm13 = vcmp.eq.f32.partialorder %v1236_v22, inf  ;;  %v1242_v10 = vand.u32 2147483648, %v1236_v22  ;;  %vm1241_vm14 = vcmp.eq.f32.partialorder %v1236_v22, 0.0 }
 0x462   :  { %v1950_v20 = vpop.eup %1949 }
 0x463   :  { %v1238_v13 = vmul.f32 %v1950_v20, %v1236_v22 }
 0x465   :  { %v1240_v27 = vsel %vm1239_vm13, %v1236_v22, %v1238_v13 }
 0x466   :  { %v1243_v16 = vsel %vm1241_vm14, %v1242_v10, %v1240_v27 }
 0x467   :  { %v1244_v63 = vadd.f32 %v1243_v16, %v1234_v53 }
 0x469   :  { %1951 = vrcp.f32 %v1244_v63 }
 0x473   :  { %v1952_v41 = vpop.eup %1951 }
 0x474   :  { %v1246_v4 = vmul.f32 %v1952_v41, %v1244_v63 }
 0x476   :  { %v1247_v62 = vsub.f32 2.0, %v1246_v4 }
 0x478   :  { %v1248_v38 = vmul.f32 %v1952_v41, %v1247_v62 }
 0x47a   :  { %v1249_v0 = vmul.f32 %v1248_v38, %v1233_v45 }
 0x47c   :  { %v1250_v11 = vsel %vm3215_vm12, 0.0, %v1249_v0 }
 0x47d   :  { %v1251_v26 = vmul.f32 %v1250_v11, %v1250_v11  ;;  %v1255_v17 = vmul.f32 %v1250_v11, %v1198_v32 }
 0x47f   :  { %v1252_v12 = vadd.f32 1.0, %v1251_v26  ;;  %v1256_v7 = vsub.f32 %v3189_v25, %v1255_v17  ;;  %v1257_v14 = vadd.f32 %v1255_v17, %v3193_v60 }
 0x481   :  { %1953 = vrsqrt.f32 %v1252_v12  ;;  %vm3230_vm0 = vcmp.gt.f32.partialorder %v1194_v15, %v1256_v7 }
 0x482   :  { %v1277_v21 = vsel %vm3230_vm0, %v1256_v7, %v1194_v15  ;;  %v1278_v31 = vsel %vm3230_vm0, %v1194_v15, %v1256_v7 }
 0x483   :  { %vm3238_vm1 = vcmp.gt.f32.partialorder %v1278_v31, %v1257_v14 }
 0x484   :  { %v1286_v3 = vsel %vm3238_vm1, %v1257_v14, %v1278_v31  ;;  %v3246_v25 = vsel %vm3238_vm1, %v1278_v31, %v1257_v14 }
 0x485   :  { %vm3248_vm2 = vcmp.gt.f32.partialorder %v1277_v21, %v1286_v3  ;;  %vm1303_vm3 = vcmp.eq.f32.partialorder %v3246_v25, 0.0 }
 0x486   :  { %v1295_v32 = vsel %vm3248_vm2, %v1286_v3, %v1277_v21  ;;  %v1296_v51 = vsel %vm3248_vm2, %v1277_v21, %v1286_v3  ;;  %v1304_v18 = vsel %vm1303_vm3, 1.0, %v3246_v25 }
 0x487   :  { %1955 = vrcp.f32 %v1304_v18 }
 0x48b   :  { %v1954_v22 = vpop.eup %1953 }
 0x48c   :  { %v1254_v20 = vmul.f32 %v1954_v22, %v1250_v11  ;;  %v1258_v10 = vmul.f32 %v1954_v22, %v3167_v2  ;;  %v1262_v53 = vmul.f32 %v1954_v22, %v3205_v30  ;;  %v1264_v13 = vmul.f32 %v1954_v22, %v3169_v49 }
 0x48d   :  { %v1268_v27 = vmul.f32 %v1954_v22, %v3209_v29  ;;  %v1270_v16 = vmul.f32 %v1954_v22, %v3172_v40  ;;  %v1274_v63 = vmul.f32 %v1954_v22, %v3213_v46 }
 0x48e   :  { %v1259_v41 = vmul.f32 %v1254_v20, %v3205_v30  ;;  %v1261_v4 = vmul.f32 %v1254_v20, %v3167_v2  ;;  %v1265_v62 = vmul.f32 %v1254_v20, %v3209_v29  ;;  %v1267_v45 = vmul.f32 %v1254_v20, %v3169_v49 }
 0x48f   :  { %v1271_v38 = vmul.f32 %v1254_v20, %v3213_v46  ;;  %v1273_v0 = vmul.f32 %v1254_v20, %v3172_v40 }
 0x490   :  { %v1260_v11 = vsub.f32 %v1258_v10, %v1259_v41  ;;  %v1263_v15 = vadd.f32 %v1262_v53, %v1261_v4  ;;  %v1266_v26 = vsub.f32 %v1264_v13, %v1265_v62  ;;  %v1269_v17 = vadd.f32 %v1268_v27, %v1267_v45  ;;  %v3321_v62 = vld [vmem:[#allocation7 + $0x78] sm:$0xff] }
 0x491   :  { %v1272_v12 = vsub.f32 %v1270_v16, %v1271_v38  ;;  %v1275_v7 = vadd.f32 %v1274_v63, %v1273_v0  ;;  %v1956_v29 = vpop.eup %1955  ;;  %4177 = vst [vmem:[#allocation54_spill] sm:$0xff] %v3321_v62  ;;  %vm1324_vm4 = vcmp.lt.f32.partialorder %v3321_v62, 2.0  ;;  %v4185_v62 = vld [vmem:[#allocation46_spill] sm:$0xff] }
 0x492   :  { %v1279_v30 = vsel %vm3230_vm0, %v1260_v11, %v3203_v23  ;;  %v1280_v2 = vsel %vm3230_vm0, %v1266_v26, %v3207_v52  ;;  %v1282_v49 = vsel %vm3230_vm0, %v3203_v23, %v1260_v11  ;;  %v1283_v40 = vsel %vm3230_vm0, %v3207_v52, %v1266_v26 }
 0x493   :  { %v1281_v46 = vsel %vm3230_vm0, %v1272_v12, %v3211_v24  ;;  %v1284_v14 = vsel %vm3230_vm0, %v3211_v24, %v1272_v12  ;;  %v1288_v21 = vsel %vm3238_vm1, %v1263_v15, %v1282_v49  ;;  %v1289_v31 = vsel %vm3238_vm1, %v1269_v17, %v1283_v40 }
 0x494   :  { %v1290_v23 = vsel %vm3238_vm1, %v1275_v7, %v1284_v14  ;;  %v3298_v52 = vsel %vm3238_vm1, %v1282_v49, %v1263_v15  ;;  %v3302_v3 = vsel %vm3238_vm1, %v1283_v40, %v1269_v17  ;;  %v3306_v24 = vsel %vm3238_vm1, %v1284_v14, %v1275_v7 }
 0x495   :  { %4174 = vst [vmem:[#allocation51_spill] sm:$0xff] %v3298_v52  ;;  %4175 = vst [vmem:[#allocation52_spill] sm:$0xff] %v3302_v3  ;;  %v1297_v37 = vsel %vm3248_vm2, %v1288_v21, %v1279_v30  ;;  %v1298_v22 = vsel %vm3248_vm2, %v1289_v31, %v1280_v2  ;;  %v1299_v20 = vsel %vm3248_vm2, %v1290_v23, %v1281_v46 }
 0x496   :  { %4176 = vst [vmem:[#allocation53_spill] sm:$0xff] %v3306_v24  ;;  %v1300_v10 = vsel %vm3248_vm2, %v1279_v30, %v1288_v21  ;;  %v1301_v53 = vsel %vm3248_vm2, %v1280_v2, %v1289_v31  ;;  %v1302_v47 = vsel %vm3248_vm2, %v1281_v46, %v1290_v23  ;;  %v1306_v13 = vmul.f32 %v1956_v29, %v1304_v18 }
 0x498   :  { %v1307_v27 = vsub.f32 2.0, %v1306_v13 }
 0x49a   :  { %v1308_v16 = vmul.f32 %v1956_v29, %v1307_v27 }
 0x49c   :  { %v1309_v63 = vmul.f32 %v1308_v16, %v1296_v51  ;;  %v1320_v41 = vmul.f32 %v1308_v16, %v1295_v32  ;;  %v1323_v4 = vmul.f32 %v1308_v16, %v3246_v25 }
 0x49e   :  { %v1310_v45 = vsub.f32 1.0, %v1309_v63  ;;  %v1325_v38 = vmul.f32 %v1320_v41, %v1297_v37  ;;  %v1327_v0 = vmul.f32 %v1309_v63, %v1300_v10  ;;  %v1330_v11 = vmul.f32 %v1323_v4, %v3298_v52 }
 0x49f   :  { %v1349_v15 = vmul.f32 %v1320_v41, %v1298_v22  ;;  %v1351_v26 = vmul.f32 %v1309_v63, %v1301_v53  ;;  %v1354_v60 = vmul.f32 %v1323_v4, %v3302_v3  ;;  %v1366_v18 = vmul.f32 %v1320_v41, %v1299_v20 }
 0x4a0   :  { %v3328_v51 = vsel %vm1303_vm3, 0.0, %v1310_v45  ;;  %v1326_v32 = vmul.f32 %v1325_v38, %v1297_v37  ;;  %v1328_v17 = vmul.f32 %v1327_v0, %v1300_v10  ;;  %v1331_v12 = vmul.f32 %v1330_v11, %v3298_v52 }
 0x4a1   :  { %4178 = vst [vmem:[#allocation55_spill] sm:$0xff] %v3328_v51  ;;  %v1335_v7 = vmul.f32 %v1325_v38, %v1298_v22  ;;  %v1336_v30 = vmul.f32 %v1327_v0, %v1301_v53  ;;  %v1338_v2 = vmul.f32 %v1330_v11, %v3302_v3  ;;  %v1342_v49 = vmul.f32 %v1325_v38, %v1299_v20 }
 0x4a2   :  { %v1329_v40 = vadd.f32 %v1328_v17, %v1326_v32  ;;  %v1343_v29 = vmul.f32 %v1327_v0, %v1302_v47  ;;  %v1345_v46 = vmul.f32 %v1330_v11, %v3306_v24  ;;  %v1350_v14 = vmul.f32 %v1349_v15, %v1298_v22  ;;  %v4179_v17 = vld [vmem:[#allocation32_spill] sm:$0xff] }
 0x4a3   :  { %v1337_v21 = vadd.f32 %v1336_v30, %v1335_v7  ;;  %v1352_v31 = vmul.f32 %v1351_v26, %v1301_v53  ;;  %v1355_v25 = vmul.f32 %v1354_v60, %v3302_v3  ;;  %v1359_v23 = vmul.f32 %v1349_v15, %v1299_v20  ;;  %v4180_v7 = vld [vmem:[#allocation33_spill] sm:$0xff] }
 0x4a4   :  { %v1332_v13 = vadd.f32 %v1331_v12, %v1329_v40  ;;  %v1344_v37 = vadd.f32 %v1343_v29, %v1342_v49  ;;  %v1360_v10 = vmul.f32 %v1351_v26, %v1302_v47  ;;  %v1362_v27 = vmul.f32 %v1354_v60, %v3306_v24 }
 0x4a5   :  { %v1339_v16 = vadd.f32 %v1338_v2, %v1337_v21  ;;  %v1353_v41 = vadd.f32 %v1352_v31, %v1350_v14  ;;  %v1367_v45 = vmul.f32 %v1366_v18, %v1299_v20  ;;  %v1368_v51 = vmul.f32 %v1309_v63, %v1302_v47 }
 0x4a6   :  { %v1334_v38 = vsel %vm1324_vm4, 0.0, %v1332_v13  ;;  %v1346_v0 = vadd.f32 %v1345_v46, %v1344_v37  ;;  %v1361_v11 = vadd.f32 %v1360_v10, %v1359_v23  ;;  %v1371_v22 = vmul.f32 %v1323_v4, %v3306_v24 }
 0x4a7   :  { %v1341_v53 = vsel %vm1324_vm4, 0.0, %v1339_v16  ;;  %v1356_v15 = vadd.f32 %v1355_v25, %v1353_v41  ;;  %v1369_v32 = vmul.f32 %v1368_v51, %v1302_v47  ;;  %1790 = vst [vmem:[#allocation7 + $0x18] sm:$0xff] %v1334_v38  ;;  %v1376_v12 = vmul.f32 %v3298_v52, %v4179_v17 }
 0x4a8   :  { %v1348_v26 = vsel %vm1324_vm4, 0.0, %v1346_v0  ;;  %v1363_v60 = vadd.f32 %v1362_v27, %v1361_v11  ;;  %v1372_v20 = vmul.f32 %v1371_v22, %v3306_v24  ;;  %1792 = vst [vmem:[#allocation7 + $0x20] sm:$0xff] %v1341_v53  ;;  %1796 = vst [vmem:[#allocation7 + $0x30] sm:$0xff] %v1341_v53  ;;  %v1377_v30 = vmul.f32 %v3298_v52, %v4180_v7 }
 0x4a9   :  { %v1358_v63 = vsel %vm1324_vm4, 0.0, %v1356_v15  ;;  %v1370_v18 = vadd.f32 %v1369_v32, %v1367_v45  ;;  %1794 = vst [vmem:[#allocation7 + $0x28] sm:$0xff] %v1348_v26  ;;  %1802 = vst [vmem:[#allocation7 + $0x48] sm:$0xff] %v1348_v26  ;;  %v1378_v2 = vmul.f32 %v3298_v52, %v2421_v56  ;;  %v1379_v49 = vmul.f32 %v3298_v52, %v2424_v9  ;;  %v4181_v26 = vld [vmem:[#allocation42_spill] sm:$0xff] }
 0x4aa   :  { %v1365_v4 = vsel %vm1324_vm4, 0.0, %v1363_v60  ;;  %1798 = vst [vmem:[#allocation7 + $0x38] sm:$0xff] %v1358_v63  ;;  %v1380_v40 = vmul.f32 %v3298_v52, %v2427_v35  ;;  %v1381_v29 = vmul.f32 %v3298_v52, %v2430_v54  ;;  %v1382_v46 = vmul.f32 %v3298_v52, %v2433_v61 }
 0x4ab   :  { %v1373_v47 = vadd.f32 %v1372_v20, %v1370_v18  ;;  %1800 = vst [vmem:[#allocation7 + $0x40] sm:$0xff] %v1365_v4  ;;  %1804 = vst [vmem:[#allocation7 + $0x50] sm:$0xff] %v1365_v4  ;;  %v1383_v14 = vmul.f32 %v3298_v52, %v2436_v36  ;;  %v1384_v21 = vmul.f32 %v3298_v52, %v2439_v28  ;;  %v4182_v20 = vld [vmem:[#allocation43_spill] sm:$0xff]  ;;  %v4183_v18 = vld [vmem:[#allocation44_spill] sm:$0xff] }
 0x4ac   :  { %v1385_v31 = vmul.f32 %v3298_v52, %v2442_v33  ;;  %v1386_v25 = vmul.f32 %v3298_v52, %v2445_v50  ;;  %v1387_v23 = vmul.f32 %v3298_v52, %v2448_v19  ;;  %v1388_v13 = vmul.f32 %v3298_v52, %v2451_v44 }
 0x4ad   :  { %v1375_v51 = vsel %vm1324_vm4, 0.0, %v1373_v47  ;;  %v1389_v37 = vmul.f32 %v3298_v52, %v4141_v59  ;;  %v1390_v10 = vmul.f32 %v3298_v52, %v4132_v55  ;;  %v1391_v27 = vmul.f32 %v3298_v52, %v4134_v57  ;;  %v4184_v47 = vld [vmem:[#allocation45_spill] sm:$0xff] }
 0x4ae   :  { %1806 = vst [vmem:[#allocation7 + $0x58] sm:$0xff] %v1375_v51  ;;  %v1392_v16 = vmul.f32 %v3302_v3, %v2482_v42  ;;  %v1393_v41 = vmul.f32 %v3302_v3, %v2485_v1  ;;  %v1394_v45 = vmul.f32 %v3302_v3, %v2488_v5  ;;  %v1395_v38 = vmul.f32 %v3302_v3, %v2491_v8 }
 0x4af   :  { %v1396_v0 = vmul.f32 %v3302_v3, %v2494_v58  ;;  %v1397_v11 = vmul.f32 %v3302_v3, %v2497_v48  ;;  %v1398_v22 = vmul.f32 %v3302_v3, %v2500_v43  ;;  %v1399_v53 = vmul.f32 %v3302_v3, %v2503_v39  ;;  %v4186_v43 = vld [vmem:[#allocation47_spill] sm:$0xff] }
 0x4b0   :  { %v1400_v15 = vmul.f32 %v3302_v3, %v2506_v6  ;;  %v1401_v32 = vmul.f32 %v3302_v3, %v2509_v34  ;;  %v1402_v60 = vmul.f32 %v3302_v3, %v4181_v26  ;;  %v1403_v63 = vmul.f32 %v3302_v3, %v4182_v20 }
 0x4b1   :  { %v1404_v4 = vmul.f32 %v3302_v3, %v4183_v18  ;;  %v1405_v51 = vmul.f32 %v3302_v3, %v4184_v47  ;;  %v1406_v39 = vmul.f32 %v3302_v3, %v4185_v62  ;;  %v1407_v6 = vmul.f32 %v3302_v3, %v4186_v43  ;;  %v4187_v62 = vld [vmem:[#allocation11_spill] sm:$0xff]  ;;  %v4188_v43 = vld [vmem:[#allocation12_spill] sm:$0xff] }
 0x4b2   :  { %v1408_v48 = vadd.f32 %v1392_v16, %v1376_v12  ;;  %v1409_v34 = vadd.f32 %v1393_v41, %v1377_v30  ;;  %v1410_v58 = vadd.f32 %v1394_v45, %v1378_v2  ;;  %v1411_v8 = vadd.f32 %v1395_v38, %v1379_v49  ;;  %v4189_v30 = vld [vmem:[#allocation14_spill] sm:$0xff]  ;;  %v4190_v49 = vld [vmem:[#allocation16_spill] sm:$0xff]  ;;  %v4199_v38 = vld [vmem:[#allocation31_spill] sm:$0xff] }
 0x4b3   :  { %v1412_v26 = vadd.f32 %v1396_v0, %v1380_v40  ;;  %v1413_v5 = vadd.f32 %v1397_v11, %v1381_v29  ;;  %v1414_v1 = vadd.f32 %v1398_v22, %v1382_v46  ;;  %v1415_v20 = vadd.f32 %v1399_v53, %v1383_v14  ;;  %v4191_v29 = vld [vmem:[#allocation18_spill] sm:$0xff]  ;;  %v4192_v14 = vld [vmem:[#allocation20_spill] sm:$0xff]  ;;  %v4201_v53 = vld [vmem:[#allocation49_spill] sm:$0xff] }
 0x4b4   :  { %v1416_v42 = vadd.f32 %v1400_v15, %v1384_v21  ;;  %v1417_v57 = vadd.f32 %v1401_v32, %v1385_v31  ;;  %v1418_v18 = vadd.f32 %v1402_v60, %v1386_v25  ;;  %v1419_v55 = vadd.f32 %v1403_v63, %v1387_v23  ;;  %v4194_v31 = vld [vmem:[#allocation24_spill] sm:$0xff]  ;;  %v4195_v23 = vld [vmem:[#allocation26_spill] sm:$0xff] }
 0x4b5   :  { %v1420_v59 = vadd.f32 %v1404_v4, %v1388_v13  ;;  %v1421_v47 = vadd.f32 %v1405_v51, %v1389_v37  ;;  %v1422_v44 = vadd.f32 %v1406_v39, %v1390_v10  ;;  %v1423_v19 = vadd.f32 %v1407_v6, %v1391_v27  ;;  %v4193_v39 = vld [vmem:[#allocation22_spill] sm:$0xff]  ;;  %v4196_v37 = vld [vmem:[#allocation28_spill] sm:$0xff]  ;;  %v4197_v27 = vld [vmem:[#allocation29_spill] sm:$0xff] }
 0x4b6   :  { %v1424_v50 = vmul.f32 %v3306_v24, %v4187_v62  ;;  %v1425_v12 = vmul.f32 %v3306_v24, %v4188_v43  ;;  %v1426_v2 = vmul.f32 %v3306_v24, %v4189_v30  ;;  %v1427_v40 = vmul.f32 %v3306_v24, %v4190_v49  ;;  %v4198_v41 = vld [vmem:[#allocation30_spill] sm:$0xff]  ;;  %v4200_v11 = vld [vmem:[#allocation48_spill] sm:$0xff] }
 0x4b7   :  { %v1428_v46 = vmul.f32 %v3306_v24, %v4191_v29  ;;  %v1429_v21 = vmul.f32 %v3306_v24, %v4192_v14  ;;  %v1430_v6 = vmul.f32 %v3306_v24, %v4193_v39  ;;  %v1431_v25 = vmul.f32 %v3306_v24, %v4194_v31  ;;  %v4202_v32 = vld [vmem:[#allocation50_spill] sm:$0xff] }
 0x4b8   :  { %v1432_v13 = vmul.f32 %v3306_v24, %v4195_v23  ;;  %v1433_v10 = vmul.f32 %v3306_v24, %v4196_v37  ;;  %v1434_v16 = vmul.f32 %v3306_v24, %v4197_v27  ;;  %v1435_v45 = vmul.f32 %v3306_v24, %v4198_v41 }
 0x4b9   :  { %v1436_v0 = vmul.f32 %v3306_v24, %v4199_v38  ;;  %v1437_v22 = vmul.f32 %v3306_v24, %v4200_v11  ;;  %v1438_v15 = vmul.f32 %v3306_v24, %v4201_v53  ;;  %v1439_v60 = vmul.f32 %v3306_v24, %v4202_v32  ;;  %v4235_v32 = vld [vmem:[#allocation40_spill] sm:$0xff] }
 0x4ba   :  { %v3445_v63 = vadd.f32 %v1424_v50, %v1408_v48  ;;  %v3447_v4 = vadd.f32 %v1425_v12, %v1409_v34  ;;  %v3449_v51 = vadd.f32 %v1426_v2, %v1410_v58  ;;  %v3451_v27 = vadd.f32 %v1427_v40, %v1411_v8 }
 0x4bb   :  { %v3453_v41 = vadd.f32 %v1428_v46, %v1412_v26  ;;  %v3455_v38 = vadd.f32 %v1429_v21, %v1413_v5  ;;  %v3457_v37 = vadd.f32 %v1430_v6, %v1414_v1  ;;  %v3459_v11 = vadd.f32 %v1431_v25, %v1415_v20 }
 0x4bc   :  { %v3461_v53 = vadd.f32 %v1432_v13, %v1416_v42  ;;  %v3463_v23 = vadd.f32 %v1433_v10, %v1417_v57  ;;  %v3465_v50 = vadd.f32 %v1434_v16, %v1418_v18  ;;  %v3467_v48 = vadd.f32 %v1435_v45, %v1419_v55 }
 0x4bd   :  { %v3469_v58 = vadd.f32 %v1436_v0, %v1420_v59  ;;  %v3471_v8 = vadd.f32 %v1437_v22, %v1421_v47  ;;  %v3473_v34 = vadd.f32 %v1438_v15, %v1422_v44  ;;  %v3475_v5 = vadd.f32 %v1439_v60, %v1423_v19 }
 0x4be   :  { %4203 = vst [vmem:[#allocation32_spill] sm:$0xff] %v3461_v53  ;;  %4204 = vst [vmem:[#allocation33_spill] sm:$0xff] %v3463_v23  ;;  %v1456_v1 = vmul.f32 %v3445_v63, %v3298_v52  ;;  %v1457_v42 = vmul.f32 %v3447_v4, %v3298_v52  ;;  %v1458_v57 = vmul.f32 %v3449_v51, %v3298_v52 }
 0x4bf   :  { %4205 = vst [vmem:[#allocation11_spill] sm:$0xff] %v3465_v50  ;;  %4206 = vst [vmem:[#allocation12_spill] sm:$0xff] %v3467_v48  ;;  %v1459_v55 = vmul.f32 %v3451_v27, %v3298_v52  ;;  %v1460_v59 = vmul.f32 %v3453_v41, %v3298_v52  ;;  %v1461_v44 = vmul.f32 %v3455_v38, %v3298_v52 }
 0x4c0   :  { %4207 = vst [vmem:[#allocation14_spill] sm:$0xff] %v3469_v58  ;;  %4208 = vst [vmem:[#allocation16_spill] sm:$0xff] %v3471_v8  ;;  %v1462_v19 = vmul.f32 %v3457_v37, %v3298_v52  ;;  %v1463_v26 = vmul.f32 %v3459_v11, %v3298_v52  ;;  %v1464_v20 = vmul.f32 %v3461_v53, %v3298_v52 }
 0x4c1   :  { %4209 = vst [vmem:[#allocation18_spill] sm:$0xff] %v3473_v34  ;;  %v1465_v18 = vmul.f32 %v3463_v23, %v3298_v52  ;;  %v1466_v47 = vmul.f32 %v3465_v50, %v3298_v52  ;;  %v1467_v12 = vmul.f32 %v3467_v48, %v3298_v52  ;;  %v1468_v2 = vmul.f32 %v3469_v58, %v3298_v52 }
 0x4c2   :  { %v1469_v40 = vmul.f32 %v3471_v8, %v3298_v52  ;;  %v1470_v46 = vmul.f32 %v3473_v34, %v3298_v52  ;;  %v1471_v21 = vmul.f32 %v3475_v5, %v3298_v52  ;;  %v3510_v6 = vsub.f32 %v4179_v17, %v1456_v1  ;;  %v4229_v52 = vld [vmem:[#allocation17_spill] sm:$0xff] }
 0x4c3   :  { %v3513_v25 = vsub.f32 %v4180_v7, %v1457_v42  ;;  %v3516_v13 = vsub.f32 %v2421_v56, %v1458_v57  ;;  %v3519_v10 = vsub.f32 %v2424_v9, %v1459_v55  ;;  %v3522_v16 = vsub.f32 %v2427_v35, %v1460_v59  ;;  %v4215_v9 = vld [vmem:[#allocation34_spill] sm:$0xff]  ;;  %v4217_v35 = vld [vmem:[#allocation35_spill] sm:$0xff] }
 0x4c4   :  { %v3525_v45 = vsub.f32 %v2430_v54, %v1461_v44  ;;  %v3528_v0 = vsub.f32 %v2433_v61, %v1462_v19  ;;  %v3531_v17 = vsub.f32 %v2436_v36, %v1463_v26  ;;  %v3534_v7 = vsub.f32 %v2439_v28, %v1464_v20  ;;  %v4219_v54 = vld [vmem:[#allocation36_spill] sm:$0xff]  ;;  %v4221_v61 = vld [vmem:[#allocation37_spill] sm:$0xff]  ;;  %v4223_v36 = vld [vmem:[#allocation38_spill] sm:$0xff] }
 0x4c5   :  { %v3537_v56 = vsub.f32 %v2442_v33, %v1465_v18  ;;  %v3540_v22 = vsub.f32 %v4215_v9, %v1466_v47  ;;  %v3543_v15 = vsub.f32 %v4217_v35, %v1467_v12  ;;  %v3546_v60 = vsub.f32 %v4219_v54, %v1468_v2  ;;  %v4225_v28 = vld [vmem:[#allocation39_spill] sm:$0xff]  ;;  %v4227_v54 = vld [vmem:[#allocation13_spill] sm:$0xff] }
 0x4c6   :  { %4210 = vst [vmem:[#allocation20_spill] sm:$0xff] %v3525_v45  ;;  %4211 = vst [vmem:[#allocation22_spill] sm:$0xff] %v3528_v0  ;;  %v3549_v1 = vsub.f32 %v4221_v61, %v1469_v40  ;;  %v3552_v42 = vsub.f32 %v4223_v36, %v1470_v46  ;;  %v3555_v57 = vsub.f32 %v4225_v28, %v1471_v21  ;;  %v4228_v36 = vld [vmem:[#allocation15_spill] sm:$0xff] }
 0x4c7   :  { %4212 = vst [vmem:[#allocation24_spill] sm:$0xff] %v3531_v17  ;;  %4213 = vst [vmem:[#allocation56_spill] sm:$0xff] %v3534_v7  ;;  %v1488_v33 = vmul.f32 %v3445_v63, %v3302_v3  ;;  %v1489_v55 = vmul.f32 %v3447_v4, %v3302_v3  ;;  %v1490_v59 = vmul.f32 %v3449_v51, %v3302_v3  ;;  %v4233_v7 = vld [vmem:[#allocation25_spill] sm:$0xff]  ;;  %v4234_v0 = vld [vmem:[#allocation27_spill] sm:$0xff] }
 0x4c8   :  { %4214 = vst [vmem:[#allocation57_spill] sm:$0xff] %v3537_v56  ;;  %4216 = vst [vmem:[#allocation34_spill] sm:$0xff] %v3540_v22  ;;  %v1491_v44 = vmul.f32 %v3451_v27, %v3302_v3  ;;  %v1492_v19 = vmul.f32 %v3453_v41, %v3302_v3  ;;  %v1493_v26 = vmul.f32 %v3455_v38, %v3302_v3  ;;  %v4232_v22 = vld [vmem:[#allocation23_spill] sm:$0xff] }
 0x4c9   :  { %4218 = vst [vmem:[#allocation35_spill] sm:$0xff] %v3543_v15  ;;  %4220 = vst [vmem:[#allocation36_spill] sm:$0xff] %v3546_v60  ;;  %v1494_v20 = vmul.f32 %v3457_v37, %v3302_v3  ;;  %v1495_v18 = vmul.f32 %v3459_v11, %v3302_v3  ;;  %v1496_v47 = vmul.f32 %v3461_v53, %v3302_v3  ;;  %v4231_v60 = vld [vmem:[#allocation21_spill] sm:$0xff] }
 0x4ca   :  { %4222 = vst [vmem:[#allocation37_spill] sm:$0xff] %v3549_v1  ;;  %4224 = vst [vmem:[#allocation38_spill] sm:$0xff] %v3552_v42  ;;  %v1497_v12 = vmul.f32 %v3463_v23, %v3302_v3  ;;  %v1498_v2 = vmul.f32 %v3465_v50, %v3302_v3  ;;  %v1499_v40 = vmul.f32 %v3467_v48, %v3302_v3  ;;  %v4230_v42 = vld [vmem:[#allocation19_spill] sm:$0xff] }
 0x4cb   :  { %4226 = vst [vmem:[#allocation39_spill] sm:$0xff] %v3555_v57  ;;  %v1500_v46 = vmul.f32 %v3469_v58, %v3302_v3  ;;  %v1501_v21 = vmul.f32 %v3471_v8, %v3302_v3  ;;  %v1502_v9 = vmul.f32 %v3473_v34, %v3302_v3  ;;  %v1503_v35 = vmul.f32 %v3475_v5, %v3302_v3 }
 0x4cc   :  { %v1504_v61 = vsub.f32 %v4227_v54, %v1488_v33  ;;  %v1505_v28 = vsub.f32 %v4228_v36, %v1489_v55  ;;  %v1506_v57 = vsub.f32 %v4229_v52, %v1490_v59  ;;  %v1507_v1 = vsub.f32 %v4230_v42, %v1491_v44  ;;  %v4236_v33 = vld [vmem:[#allocation41_spill] sm:$0xff]  ;;  %v4237_v55 = vld [vmem:[#allocation42_spill] sm:$0xff]  ;;  %v4238_v42 = vld [vmem:[#allocation43_spill] sm:$0xff] }
 0x4cd   :  { %v1508_v15 = vsub.f32 %v4231_v60, %v1492_v19  ;;  %v1509_v56 = vsub.f32 %v4232_v22, %v1493_v26  ;;  %v3596_v17 = vsub.f32 %v4233_v7, %v1494_v20  ;;  %v3599_v45 = vsub.f32 %v4234_v0, %v1495_v18  ;;  %v4239_v60 = vld [vmem:[#allocation44_spill] sm:$0xff]  ;;  %v4240_v7 = vld [vmem:[#allocation45_spill] sm:$0xff]  ;;  %v4241_v0 = vld [vmem:[#allocation46_spill] sm:$0xff] }
 0x4ce   :  { %v3602_v3 = vsub.f32 %v4235_v32, %v1496_v47  ;;  %v3605_v54 = vsub.f32 %v4236_v33, %v1497_v12  ;;  %v3608_v52 = vsub.f32 %v4237_v55, %v1498_v2  ;;  %v3611_v59 = vsub.f32 %v4238_v42, %v1499_v40  ;;  %v4242_v32 = vld [vmem:[#allocation47_spill] sm:$0xff] }
 0x4cf   :  { %v3614_v22 = vsub.f32 %v4239_v60, %v1500_v46  ;;  %v3617_v44 = vsub.f32 %v4240_v7, %v1501_v21  ;;  %v3620_v19 = vsub.f32 %v4241_v0, %v1502_v9  ;;  %v3623_v26 = vsub.f32 %v4242_v32, %v1503_v35 }
 0x4d0   :  { %v1520_v20 = vmul.f32 %v3445_v63, %v3306_v24  ;;  %v1521_v18 = vmul.f32 %v3447_v4, %v3306_v24  ;;  %v1522_v47 = vmul.f32 %v3449_v51, %v3306_v24  ;;  %v1523_v12 = vmul.f32 %v3451_v27, %v3306_v24 }
 0x4d1   :  { %v1524_v2 = vmul.f32 %v3453_v41, %v3306_v24  ;;  %v1525_v40 = vmul.f32 %v3455_v38, %v3306_v24  ;;  %v1526_v46 = vmul.f32 %v3457_v37, %v3306_v24  ;;  %v1527_v21 = vmul.f32 %v3459_v11, %v3306_v24 }
 0x4d2   :  { %v1528_v9 = vmul.f32 %v3461_v53, %v3306_v24  ;;  %v1529_v35 = vmul.f32 %v3463_v23, %v3306_v24  ;;  %v1530_v36 = vmul.f32 %v3465_v50, %v3306_v24  ;;  %v1531_v33 = vmul.f32 %v3467_v48, %v3306_v24 }
 0x4d3   :  { %v1532_v55 = vmul.f32 %v3469_v58, %v3306_v24  ;;  %v1533_v42 = vmul.f32 %v3471_v8, %v3306_v24  ;;  %v1534_v60 = vmul.f32 %v3473_v34, %v3306_v24  ;;  %v1536_v7 = vsub.f32 %v4187_v62, %v1520_v20 }
 0x4d4   :  { %v1552_v0 = vmul.f32 %v3510_v6, %v3510_v6  ;;  %v1568_v32 = vmul.f32 %v1504_v61, %v1504_v61  ;;  %v1535_v50 = vmul.f32 %v3475_v5, %v3306_v24  ;;  %v1537_v48 = vsub.f32 %v4188_v43, %v1521_v18  ;;  %v4243_v18 = vld [vmem:[#allocation26_spill] sm:$0xff] }
 0x4d5   :  { %v1553_v58 = vmul.f32 %v3513_v25, %v3513_v25  ;;  %v1569_v23 = vmul.f32 %v1505_v28, %v1505_v28  ;;  %v1538_v8 = vsub.f32 %v4189_v30, %v1522_v47  ;;  %v1539_v53 = vsub.f32 %v4190_v49, %v1523_v12  ;;  %v4244_v25 = vld [vmem:[#allocation28_spill] sm:$0xff] }
 0x4d6   :  { %v1540_v34 = vsub.f32 %v4191_v29, %v1524_v2  ;;  %v1541_v62 = vsub.f32 %v4192_v14, %v1525_v40  ;;  %v1542_v6 = vsub.f32 %v4193_v39, %v1526_v46  ;;  %v1543_v61 = vsub.f32 %v4194_v31, %v1527_v21  ;;  %v4245_v39 = vld [vmem:[#allocation29_spill] sm:$0xff]  ;;  %v4246_v31 = vld [vmem:[#allocation30_spill] sm:$0xff]  ;;  %v4247_v46 = vld [vmem:[#allocation31_spill] sm:$0xff] }
 0x4d7   :  { %v1554_v20 = vmul.f32 %v3516_v13, %v3516_v13  ;;  %v1570_v43 = vmul.f32 %v1506_v57, %v1506_v57  ;;  %v1544_v24 = vsub.f32 %v4243_v18, %v1528_v9  ;;  %v3673_v28 = vsub.f32 %v4244_v25, %v1529_v35  ;;  %v4248_v57 = vld [vmem:[#allocation48_spill] sm:$0xff] }
 0x4d8   :  { %v1584_v30 = vadd.f32 %v1568_v32, %v1552_v0  ;;  %v1600_v47 = vmul.f32 %v1536_v7, %v1536_v7  ;;  %v1555_v49 = vmul.f32 %v3519_v10, %v3519_v10  ;;  %v1571_v29 = vmul.f32 %v1507_v1, %v1507_v1  ;;  %v4249_v10 = vld [vmem:[#allocation49_spill] sm:$0xff] }
 0x4d9   :  { %v1585_v14 = vadd.f32 %v1569_v23, %v1553_v58  ;;  %v1601_v12 = vmul.f32 %v1537_v48, %v1537_v48  ;;  %v1546_v2 = vsub.f32 %v4245_v39, %v1530_v36  ;;  %v1547_v40 = vsub.f32 %v4246_v31, %v1531_v33  ;;  %v4250_v23 = vld [vmem:[#allocation50_spill] sm:$0xff]  ;;  %v4251_v58 = vld [vmem:[#allocation20_spill] sm:$0xff] }
 0x4da   :  { %v3680_v13 = vsub.f32 %v4247_v46, %v1532_v55  ;;  %v3683_v21 = vsub.f32 %v4248_v57, %v1533_v42  ;;  %v1556_v9 = vmul.f32 %v3522_v16, %v3522_v16  ;;  %v1572_v35 = vmul.f32 %v1508_v15, %v1508_v15  ;;  %v4252_v16 = vld [vmem:[#allocation22_spill] sm:$0xff] }
 0x4db   :  { %v1586_v7 = vadd.f32 %v1570_v43, %v1554_v20  ;;  %v1602_v0 = vmul.f32 %v1538_v8, %v1538_v8  ;;  %v3688_v1 = vsub.f32 %v4249_v10, %v1534_v60  ;;  %v3691_v48 = vsub.f32 %v4250_v23, %v1535_v50  ;;  %v4253_v8 = vld [vmem:[#allocation24_spill] sm:$0xff]  ;;  %v4255_v43 = vld [vmem:[#allocation57_spill] sm:$0xff] }
 0x4dc   :  { %v1557_v36 = vmul.f32 %v4251_v58, %v4251_v58  ;;  %v3695_v33 = vadd.f32 %v1600_v47, %v1584_v30  ;;  %v1573_v55 = vmul.f32 %v1509_v56, %v1509_v56  ;;  %v1587_v42 = vadd.f32 %v1571_v29, %v1555_v49  ;;  %v4254_v20 = vld [vmem:[#allocation56_spill] sm:$0xff]  ;;  %v4256_v49 = vld [vmem:[#allocation34_spill] sm:$0xff] }
 0x4dd   :  { %v1603_v32 = vmul.f32 %v1539_v53, %v1539_v53  ;;  %v3697_v18 = vadd.f32 %v1601_v12, %v1585_v14  ;;  %v1558_v15 = vmul.f32 %v4252_v16, %v4252_v16  ;;  %v1559_v60 = vmul.f32 %v4253_v8, %v4253_v8  ;;  %v4257_v14 = vld [vmem:[#allocation35_spill] sm:$0xff] }
 0x4de   :  { %v1560_v50 = vmul.f32 %v4254_v20, %v4254_v20  ;;  %v1561_v25 = vmul.f32 %v4255_v43, %v4255_v43  ;;  %v1574_v30 = vmul.f32 %v3596_v17, %v3596_v17  ;;  %v1588_v56 = vadd.f32 %v1572_v35, %v1556_v9  ;;  %v4259_v9 = vld [vmem:[#allocation37_spill] sm:$0xff] }
 0x4df   :  { %v1604_v47 = vmul.f32 %v1540_v34, %v1540_v34  ;;  %v3709_v53 = vadd.f32 %v1602_v0, %v1586_v7  ;;  %v1562_v29 = vmul.f32 %v4256_v49, %v4256_v49  ;;  %v1563_v12 = vmul.f32 %v4257_v14, %v4257_v14  ;;  %v4258_v34 = vld [vmem:[#allocation36_spill] sm:$0xff]  ;;  %v4260_v7 = vld [vmem:[#allocation38_spill] sm:$0xff] }
 0x4e0   :  { %v1575_v39 = vmul.f32 %v3599_v45, %v3599_v45  ;;  %1957 = vrsqrt.f32 %v3695_v33  ;;  %v1589_v31 = vadd.f32 %v1573_v55, %v1557_v36  ;;  %v1605_v46 = vmul.f32 %v1541_v62, %v1541_v62  ;;  %v4261_v62 = vld [vmem:[#allocation39_spill] sm:$0xff] }
 0x4e1   :  { %v3718_v57 = vadd.f32 %v1603_v32, %v1587_v42  ;;  %1959 = vrsqrt.f32 %v3697_v18  ;;  %v1564_v17 = vmul.f32 %v4258_v34, %v4258_v34  ;;  %v1565_v35 = vmul.f32 %v4259_v9, %v4259_v9 }
 0x4e2   :  { %v1566_v0 = vmul.f32 %v4260_v7, %v4260_v7  ;;  %v1576_v45 = vmul.f32 %v3602_v3, %v3602_v3  ;;  %v1590_v10 = vadd.f32 %v1574_v30, %v1558_v15  ;;  %v1606_v23 = vmul.f32 %v1542_v6, %v1542_v6 }
 0x4e3   :  { %v3729_v58 = vadd.f32 %v1604_v47, %v1588_v56  ;;  %1961 = vrsqrt.f32 %v3709_v53  ;;  %v1567_v36 = vmul.f32 %v4261_v62, %v4261_v62  ;;  %v1577_v55 = vmul.f32 %v3605_v54, %v3605_v54 }
 0x4e4   :  { %v1578_v42 = vmul.f32 %v3608_v52, %v3608_v52  ;;  %v1579_v32 = vmul.f32 %v3611_v59, %v3611_v59  ;;  %v1591_v16 = vadd.f32 %v1575_v39, %v1559_v60  ;;  %v1607_v3 = vmul.f32 %v1543_v61, %v1543_v61 }
 0x4e5   :  { %v3740_v15 = vadd.f32 %v1605_v46, %v1589_v31  ;;  %1963 = vrsqrt.f32 %v3718_v57  ;;  %v1580_v6 = vmul.f32 %v3614_v22, %v3614_v22  ;;  %v1581_v8 = vmul.f32 %v3617_v44, %v3617_v44 }
 0x4e6   :  { %v1582_v54 = vmul.f32 %v3620_v19, %v3620_v19  ;;  %v1583_v52 = vmul.f32 %v3623_v26, %v3623_v26  ;;  %v1592_v20 = vadd.f32 %v1576_v45, %v1560_v50  ;;  %v1608_v59 = vmul.f32 %v1544_v24, %v1544_v24 }
 0x4e7   :  { %v3751_v60 = vadd.f32 %v1606_v23, %v1590_v10  ;;  %1965 = vrsqrt.f32 %v3729_v58  ;;  %v1593_v61 = vadd.f32 %v1577_v55, %v1561_v25  ;;  %v1594_v43 = vadd.f32 %v1578_v42, %v1562_v29 }
 0x4e8   :  { %v1595_v30 = vadd.f32 %v1579_v32, %v1563_v12  ;;  %v1609_v22 = vmul.f32 %v3673_v28, %v3673_v28  ;;  %v1610_v56 = vmul.f32 %v1546_v2, %v1546_v2  ;;  %v1611_v44 = vmul.f32 %v1547_v40, %v1547_v40 }
 0x4e9   :  { %v3756_v47 = vadd.f32 %v1607_v3, %v1591_v16  ;;  %1967 = vrsqrt.f32 %v3740_v15  ;;  %v1596_v26 = vadd.f32 %v1580_v6, %v1564_v17  ;;  %v1597_v50 = vadd.f32 %v1581_v8, %v1565_v35 }
 0x4ea   :  { %v1958_v19 = vpop.eup %1957  ;;  %v1612_v24 = vmul.f32 %v3680_v13, %v3680_v13  ;;  %v1613_v25 = vmul.f32 %v3683_v21, %v3683_v21  ;;  %v1598_v29 = vadd.f32 %v1582_v54, %v1566_v0  ;;  %v1614_v28 = vmul.f32 %v3688_v1, %v3688_v1 }
 0x4eb   :  { %v1960_v49 = vpop.eup %1959  ;;  %v3765_v2 = vadd.f32 %v1608_v59, %v1592_v20  ;;  %1969 = vrsqrt.f32 %v3751_v60  ;;  %v1599_v40 = vadd.f32 %v1583_v52, %v1567_v36  ;;  %v1615_v14 = vmul.f32 %v3691_v48, %v3691_v48 }
 0x4ec   :  { %v3770_v39 = vadd.f32 %v1609_v22, %v1593_v61  ;;  %v3772_v13 = vadd.f32 %v1610_v56, %v1594_v43  ;;  %v3774_v31 = vadd.f32 %v1611_v44, %v1595_v30  ;;  %1971 = vrsqrt.f32 %v3756_v47 }
 0x4ed   :  { %v1962_v12 = vpop.eup %1961  ;;  %v3777_v21 = vadd.f32 %v1612_v24, %v1596_v26  ;;  %v3779_v1 = vadd.f32 %v1613_v25, %v1597_v50  ;;  %v1633_v46 = vmul.f32 %v1958_v19, %v3695_v33  ;;  %v1640_v34 = vmul.f32 %v1960_v49, %v3697_v18 }
 0x4ee   :  { %v3783_v9 = vadd.f32 %v1614_v28, %v1598_v29  ;;  %vm1634_vm5 = vcmp.eq.f32.partialorder %v3695_v33, inf  ;;  %vm1641_vm6 = vcmp.eq.f32.partialorder %v3697_v18, inf  ;;  %1973 = vrsqrt.f32 %v3765_v2 }
 0x4ef   :  { %v1964_v17 = vpop.eup %1963  ;;  %v3788_v48 = vadd.f32 %v1615_v14, %v1599_v40  ;;  %vm1636_vm7 = vcmp.eq.f32.partialorder %v3695_v33, 0.0  ;;  %v1637_v35 = vand.u32 2147483648, %v3695_v33  ;;  %v1647_v7 = vmul.f32 %v1962_v12, %v3709_v53 }
 0x4f0   :  { %vm1643_vm8 = vcmp.eq.f32.partialorder %v3697_v18, 0.0  ;;  %v1644_v45 = vand.u32 2147483648, %v3697_v18  ;;  %vm1648_vm9 = vcmp.eq.f32.partialorder %v3709_v53, inf  ;;  %1975 = vrsqrt.f32 %v3770_v39 }
 0x4f1   :  { %v1966_v0 = vpop.eup %1965  ;;  %v1635_v10 = vsel %vm1634_vm5, %v3695_v33, %v1633_v46  ;;  %v1642_v23 = vsel %vm1641_vm6, %v3697_v18, %v1640_v34  ;;  %vm1650_vm10 = vcmp.eq.f32.partialorder %v3709_v53, 0.0  ;;  %v1654_v62 = vmul.f32 %v1964_v17, %v3718_v57 }
 0x4f2   :  { %v1651_v55 = vand.u32 2147483648, %v3709_v53  ;;  %vm1655_vm11 = vcmp.eq.f32.partialorder %v3718_v57, inf  ;;  %vm1657_vm12 = vcmp.eq.f32.partialorder %v3718_v57, 0.0  ;;  %1977 = vrsqrt.f32 %v3772_v13 }
 0x4f3   :  { %v1968_v36 = vpop.eup %1967  ;;  %v1649_v42 = vsel %vm1648_vm9, %v3709_v53, %v1647_v7  ;;  %v1658_v32 = vand.u32 2147483648, %v3718_v57  ;;  %v1661_v16 = vmul.f32 %v1966_v0, %v3729_v58  ;;  %vm1662_vm13 = vcmp.eq.f32.partialorder %v3729_v58, inf }
 0x4f4   :  { %v1638_v6 = vsel %vm1636_vm7, %v1637_v35, %v1635_v10  ;;  %v1645_v8 = vsel %vm1643_vm8, %v1644_v45, %v1642_v23  ;;  %vm1664_vm14 = vcmp.eq.f32.partialorder %v3729_v58, 0.0  ;;  %1979 = vrsqrt.f32 %v3774_v31 }
 0x4f5   :  { %v1970_v3 = vpop.eup %1969  ;;  %v1656_v54 = vsel %vm1655_vm11, %v3718_v57, %v1654_v62  ;;  %v1665_v52 = vand.u32 2147483648, %v3729_v58  ;;  %v1668_v20 = vmul.f32 %v1968_v36, %v3740_v15  ;;  %vm1669_vm15 = vcmp.eq.f32.partialorder %v3740_v15, inf }
 0x4f6   :  { %v1972_v59 = vpop.eup %1971  ;;  %v1652_v33 = vsel %vm1650_vm10, %v1651_v55, %v1649_v42  ;;  %vm1671_vm0 = vcmp.eq.f32.partialorder %v3740_v15, 0.0  ;;  %v1672_v18 = vand.u32 2147483648, %v3740_v15  ;;  %1981 = vrsqrt.f32 %v3777_v21 }
 0x4f7   :  { %v1663_v61 = vsel %vm1662_vm13, %v3729_v58, %v1661_v16  ;;  %v1675_v43 = vmul.f32 %v1970_v3, %v3751_v60  ;;  %v1744_v30 = vmul.f32 %v1638_v6, %v3445_v63  ;;  %v1745_v22 = vmul.f32 %v1645_v8, %v3447_v4 }
 0x4f8   :  { %v1974_v56 = vpop.eup %1973  ;;  %v1659_v44 = vsel %vm1657_vm12, %v1658_v32, %v1656_v54  ;;  %vm1676_vm1 = vcmp.eq.f32.partialorder %v3751_v60, inf  ;;  %vm1678_vm2 = vcmp.eq.f32.partialorder %v3751_v60, 0.0  ;;  %1983 = vrsqrt.f32 %v3779_v1  ;;  %v4262_v54 = vld [vmem:[#allocation32_spill] sm:$0xff] }
 0x4f9   :  { %v1670_v53 = vsel %vm1669_vm15, %v3740_v15, %v1668_v20  ;;  %v1679_v19 = vand.u32 2147483648, %v3751_v60  ;;  %v1682_v26 = vmul.f32 %v1972_v59, %v3756_v47  ;;  %v1746_v63 = vmul.f32 %v1652_v33, %v3449_v51 }
 0x4fa   :  { %v1976_v50 = vpop.eup %1975  ;;  %v1666_v4 = vsel %vm1664_vm14, %v1665_v52, %v1663_v61  ;;  %vm1683_vm3 = vcmp.eq.f32.partialorder %v3756_v47, inf  ;;  %vm1685_vm5 = vcmp.eq.f32.partialorder %v3756_v47, 0.0  ;;  %1985 = vrsqrt.f32 %v3783_v9  ;;  %v4263_v61 = vld [vmem:[#allocation33_spill] sm:$0xff] }
 0x4fb   :  { %v1677_v57 = vsel %vm1676_vm1, %v3751_v60, %v1675_v43  ;;  %v1689_v24 = vmul.f32 %v1974_v56, %v3765_v2  ;;  %v1747_v25 = vmul.f32 %v1659_v44, %v3451_v27  ;;  %v1760_v49 = vadd.f32 %v1745_v22, %v1744_v30 }
 0x4fc   :  { %v1978_v29 = vpop.eup %1977  ;;  %v1673_v51 = vsel %vm1671_vm0, %v1672_v18, %v1670_v53  ;;  %v1686_v58 = vand.u32 2147483648, %v3756_v47  ;;  %vm1690_vm6 = vcmp.eq.f32.partialorder %v3765_v2, inf  ;;  %1987 = vrsqrt.f32 %v3788_v48  ;;  %v4264_v53 = vld [vmem:[#allocation11_spill] sm:$0xff] }
 0x4fd   :  { %v1684_v28 = vsel %vm1683_vm3, %v3756_v47, %v1682_v26  ;;  %v1696_v40 = vmul.f32 %v1976_v50, %v3770_v39  ;;  %v1748_v14 = vmul.f32 %v1666_v4, %v3453_v41  ;;  %v1761_v12 = vadd.f32 %v1760_v49, %v1746_v63  ;;  %v4265_v50 = vld [vmem:[#allocation12_spill] sm:$0xff]  ;;  %v4266_v49 = vld [vmem:[#allocation14_spill] sm:$0xff] }
 0x4fe   :  { %v1980_v46 = vpop.eup %1979  ;;  %v1680_v27 = vsel %vm1678_vm2, %v1679_v19, %v1677_v57  ;;  %vm1692_vm7 = vcmp.eq.f32.partialorder %v3765_v2, 0.0  ;;  %v1693_v15 = vand.u32 2147483648, %v3765_v2  ;;  %vm1697_vm8 = vcmp.eq.f32.partialorder %v3770_v39, inf }
 0x4ff   :  { %v1691_v34 = vsel %vm1690_vm6, %v3765_v2, %v1689_v24  ;;  %v1703_v17 = vmul.f32 %v1978_v29, %v3772_v13  ;;  %v1749_v35 = vmul.f32 %v1673_v51, %v3455_v38  ;;  %v1762_v7 = vadd.f32 %v1761_v12, %v1747_v25 }
 0x500   :  { %v1982_v0 = vpop.eup %1981  ;;  %v1687_v41 = vsel %vm1685_vm5, %v1686_v58, %v1684_v28  ;;  %vm1699_vm9 = vcmp.eq.f32.partialorder %v3770_v39, 0.0  ;;  %v1700_v60 = vand.u32 2147483648, %v3770_v39  ;;  %vm1704_vm10 = vcmp.eq.f32.partialorder %v3772_v13, inf  ;;  %v4267_v28 = vld [vmem:[#allocation16_spill] sm:$0xff] }
 0x501   :  { %v1698_v45 = vsel %vm1697_vm8, %v3770_v39, %v1696_v40  ;;  %v1710_v10 = vmul.f32 %v1980_v46, %v3774_v31  ;;  %v1750_v23 = vmul.f32 %v1680_v27, %v3457_v37  ;;  %v1763_v62 = vadd.f32 %v1762_v7, %v1748_v14  ;;  %v4268_v46 = vld [vmem:[#allocation18_spill] sm:$0xff] }
 0x502   :  { %v1984_v36 = vpop.eup %1983  ;;  %v1694_v38 = vsel %vm1692_vm7, %v1693_v15, %v1691_v34  ;;  %vm1706_vm11 = vcmp.eq.f32.partialorder %v3772_v13, 0.0  ;;  %v1707_v47 = vand.u32 2147483648, %v3772_v13  ;;  %vm1711_vm12 = vcmp.eq.f32.partialorder %v3774_v31, inf }
 0x503   :  { %v1705_v55 = vsel %vm1704_vm10, %v3772_v13, %v1703_v17  ;;  %v1717_v42 = vmul.f32 %v1982_v0, %v3777_v21  ;;  %v1751_v32 = vmul.f32 %v1687_v41, %v3459_v11  ;;  %v1764_v16 = vadd.f32 %v1763_v62, %v1749_v35  ;;  %v4272_v62 = vld [vmem:[#allocation53_spill] sm:$0xff] }
 0x504   :  { %v1986_v3 = vpop.eup %1985  ;;  %v1701_v37 = vsel %vm1699_vm9, %v1700_v60, %v1698_v45  ;;  %vm1713_vm13 = vcmp.eq.f32.partialorder %v3774_v31, 0.0  ;;  %v1714_v2 = vand.u32 2147483648, %v3774_v31  ;;  %vm1718_vm14 = vcmp.eq.f32.partialorder %v3777_v21, inf  ;;  %v4270_v60 = vld [vmem:[#allocation51_spill] sm:$0xff] }
 0x505   :  { %v1712_v6 = vsel %vm1711_vm12, %v3774_v31, %v1710_v10  ;;  %v1724_v8 = vmul.f32 %v1984_v36, %v3779_v1  ;;  %v1752_v52 = vmul.f32 %v1694_v38, %v4262_v54  ;;  %v1765_v20 = vadd.f32 %v1764_v16, %v1750_v23  ;;  %v4271_v10 = vld [vmem:[#allocation52_spill] sm:$0xff] }
 0x506   :  { %v1988_v59 = vpop.eup %1987  ;;  %v1708_v11 = vsel %vm1706_vm11, %v1707_v47, %v1705_v55  ;;  %vm1720_vm15 = vcmp.eq.f32.partialorder %v3777_v21, 0.0  ;;  %v1721_v39 = vand.u32 2147483648, %v3777_v21  ;;  %vm1725_vm0 = vcmp.eq.f32.partialorder %v3779_v1, inf }
 0x507   :  { %v1719_v33 = vsel %vm1718_vm14, %v3777_v21, %v1717_v42  ;;  %v1731_v18 = vmul.f32 %v1986_v3, %v3783_v9  ;;  %v1753_v43 = vmul.f32 %v1701_v37, %v4263_v61  ;;  %v1766_v30 = vadd.f32 %v1765_v20, %v1751_v32 }
 0x508   :  { %v1715_v22 = vsel %vm1713_vm13, %v1714_v2, %v1712_v6  ;;  %vm1727_vm1 = vcmp.eq.f32.partialorder %v3779_v1, 0.0  ;;  %v1728_v13 = vand.u32 2147483648, %v3779_v1  ;;  %vm1732_vm2 = vcmp.eq.f32.partialorder %v3783_v9, inf }
 0x509   :  { %v1726_v56 = vsel %vm1725_vm0, %v3779_v1, %v1724_v8  ;;  %v1738_v44 = vmul.f32 %v1988_v59, %v3788_v48  ;;  %v1754_v21 = vmul.f32 %v1708_v11, %v4264_v53  ;;  %v1767_v19 = vadd.f32 %v1766_v30, %v1752_v52 }
 0x50a   :  { %v1722_v26 = vsel %vm1720_vm15, %v1721_v39, %v1719_v33  ;;  %v1735_v63 = vand.u32 2147483648, %v3783_v9  ;;  %vm1739_vm3 = vcmp.eq.f32.partialorder %v3788_v48, inf  ;;  %v1733_v31 = vsel %vm1732_vm2, %v3783_v9, %v1731_v18 }
 0x50b   :  { %vm1734_vm5 = vcmp.eq.f32.partialorder %v3783_v9, 0.0  ;;  %v1755_v4 = vmul.f32 %v1715_v22, %v4265_v50  ;;  %v1768_v57 = vadd.f32 %v1767_v19, %v1753_v43  ;;  %v1729_v24 = vsel %vm1727_vm1, %v1728_v13, %v1726_v56 }
 0x50c   :  { %v1742_v1 = vand.u32 2147483648, %v3788_v48  ;;  %v1740_v25 = vsel %vm1739_vm3, %v3788_v48, %v1738_v44  ;;  %vm1741_vm6 = vcmp.eq.f32.partialorder %v3788_v48, 0.0  ;;  %v1756_v29 = vmul.f32 %v1722_v26, %v4266_v49  ;;  %v4269_v48 = vld [vmem:[#allocation55_spill] sm:$0xff] }
 0x50d   :  { %v1769_v51 = vadd.f32 %v1768_v57, %v1754_v21  ;;  %v1736_v58 = vsel %vm1734_vm5, %v1735_v63, %v1733_v31  ;;  %v1757_v40 = vmul.f32 %v1729_v24, %v4267_v28  ;;  %v2068_v7 = vmov 1.0  }
 0x50e   :  { %v1743_v12 = vsel %vm1741_vm6, %v1742_v1, %v1740_v25  ;;  %v1758_v9 = vmul.f32 %v1736_v58, %v4268_v46 }
 0x50f   :  { %v1770_v14 = vadd.f32 %v1769_v51, %v1755_v4  ;;  %v1759_v15 = vmul.f32 %v1743_v12, %v3475_v5 }
 0x511   :  { %v1771_v27 = vadd.f32 %v1770_v14, %v1756_v29 }
 0x513   :  { %v1772_v34 = vadd.f32 %v1771_v27, %v1757_v40 }
 0x515   :  { %v1773_v17 = vadd.f32 %v1772_v34, %v1758_v9 }
 0x517   :  { %v1774_v35 = vadd.f32 %v1773_v17, %v1759_v15 }
 0x519   :  { %vm1775_vm7 = vcmp.lt.f32.partialorder %v1774_v35, 0.0 }
 0x51a   :  { %v1776_v0 = vsel %vm1775_vm7, -1.0, %v2068_v7 }
 0x51b   :  { %v1777_v41 = vmul.f32 %v1776_v0, %v4269_v48 }
 0x51d   :  { %v1778_v45 = vmul.f32 %v1777_v41, %v4270_v60  ;;  %v1780_v23 = vmul.f32 %v1777_v41, %v4271_v10  ;;  %v1782_v36 = vmul.f32 %v1777_v41, %v4272_v62 }
 0x51f   :  { %v1779_v5 = vsel %vm1324_vm4, 0.0, %v1778_v45  ;;  %v1781_v47 = vsel %vm1324_vm4, 0.0, %v1780_v23  ;;  %v1783_v55 = vsel %vm1324_vm4, 0.0, %v1782_v36 }
 0x520   :  { %1808 = vst [vmem:[#allocation7 + $0x60] sm:$0xff] %v1779_v5  ;;  %1810 = vst [vmem:[#allocation7 + $0x68] sm:$0xff] %v1781_v47 }
 0x521   :  { %1812 = vst [vmem:[#allocation7 + $0x70] sm:$0xff] %v1783_v55 }
 0x522   :  { %2045 = shalt.err (!%p2042_p6)
}
 0x523   :  { %s2046_s10 = scalar_lea.hbm %s3940_s2, 2048 }
 0x524   :  { %p2047_p7 = scmp.ne.s32.totalorder %s3940_s2, %s2046_s10  ;;  %p2050_p8 = scmp.lt.u32.totalorder %s2046_s10, %s3940_s2 }
 0x526   :  { %p2052_p9 = pnand %p2050_p8, %p2047_p7 }
 0x528   :  { %2055 = shalt.err (!%p2052_p9)
}
 0x529   :  { %1826 = dma.vmem_to_hbm [thread:$0]  %s1821_s6, 2048, %s3940_s2, [#allocation4], %s2064_s0, %s2064_s0, %s2065_s3  }
 0x52a   :  { %2060 = dma.done.wait [#allocation4], 2048  }
 0x52b   :  { %2061 = vsyncadd [#allocation4], 4294965248 }
 0x52c   :  { %1830 = vsyncpa [#allocation3], 1 }
 0x52d   :  { %1831 = vsyncpa [#allocation6], 1 }
 0x52e   :  { %1832 = vsyncpa [#allocation4], 1 }

</bundles_post_ra>
